<compile_context>
chip_gen: v5e
topology: v5e:2x2
jax: 0.10.0
libtpu: 0.0.40
codegen_flags: <defaults>
</compile_context>

<pallas_src>
import functools

import jax
import jax.numpy as jnp
from jax import lax
from jax.experimental import pallas as pl
from jax.experimental.pallas import tpu as pltpu

EPS = 1e-5
LANES = 128


# ----------------------------- Pallas kernel -------------------------------

def _inception_kernel(x_ref, wA_ref, bA_ref, w35_ref, bB_ref, o_ref,
                      xpad_ref, red_ref, *, N, H, W, cin, ch1, c3r, c5r,
                      ch3, ch5, pp, out_lanes):
    """Whole Inception block for the full batch, in one grid step.

    x_ref   : (N, H, W, cin) f32 NHWC input (unpadded).
    wA_ref  : (2*cin, ch1+c3r+c5r+pp) bf16 block-diag [1x1 branches | pool proj].
    bA_ref  : (1, ch1+c3r+c5r+pp) f32 folded BN bias.
    w35_ref : (25, c3r+c5r, ch3+ch5) bf16 per-tap block-diag [3x3 | 5x5] weights.
    bB_ref  : (1, ch3+ch5) f32 folded BN bias.
    o_ref   : (N*H*W, out_lanes) f32 lane-dense slab [b1|b2|b3|b4|0-pad].
    xpad_ref: (N, H+2, W+2, cin) f32 scratch (-inf halo for the 3x3 max pool).
    red_ref : (N, H+4, W+4, c3r+c5r) f32 scratch (zero halo for the convs).
    """
    M = N * H * W
    CR = c3r + c5r
    x = x_ref[...]

    # ---- 3x3 / stride-1 max pool: halo built in VMEM, never touches HBM ----
    xpad_ref[...] = jnp.full(xpad_ref.shape, -jnp.inf, dtype=xpad_ref.dtype)
    xpad_ref[:, 1:1 + H, 1:1 + W, :] = x
    pooled = x                                   # centre tap (always finite)
    for di in range(3):
        for dj in range(3):
            if (di, dj) != (1, 1):
                pooled = jnp.maximum(
                    pooled, xpad_ref[:, di:di + H, dj:dj + W, :])
    # -inf only ever feeds the VPU max above; `pooled` is finite everywhere.

    # ---- all four 1x1 convs in ONE MXU push (block-diagonal weights) -------
    # K axis carries [x | pooled]; zero blocks keep the branches independent.
    a_cat = jnp.concatenate(
        [x.reshape(M, cin).astype(jnp.bfloat16),
         pooled.reshape(M, cin).astype(jnp.bfloat16)], axis=-1)   # (M, 2*cin)
    yA = jnp.dot(a_cat, wA_ref[...], preferred_element_type=jnp.float32)
    yA = jnp.maximum(yA + bA_ref[...], 0.0)      # [b1 | b2_red | b3_red | b4]

    # ---- reduced activations stay in VMEM, surrounded by a zero conv halo --
    red_ref[...] = jnp.zeros(red_ref.shape, dtype=red_ref.dtype)
    red_ref[:, 2:2 + H, 2:2 + W, :] = yA[:, ch1:ch1 + CR].reshape(N, H, W, CR)

    # ---- fused 3x3 (branch2) + 5x5 (branch3): shift-and-accumulate ---------
    # One small dot per tap; the 3x3 weights live in the 9 central taps of the
    # 5x5 window (block-diagonal per tap), so a single f32 accumulator holds
    # both branches and no im2col concat chains are needed.
    accB = jnp.zeros((M, ch3 + ch5), jnp.float32)
    for kh in range(5):
        for kw in range(5):
            patch = red_ref[:, kh:kh + H, kw:kw + W, :]
            patch = patch.reshape(M, CR).astype(jnp.bfloat16)
            accB = accB + jnp.dot(patch, w35_ref[kh * 5 + kw],
                                  preferred_element_type=jnp.float32)
    yB = jnp.maximum(accB + bB_ref[...], 0.0)    # [b2 | b3]

    # ---- lane-dense output store: [b1 | b2 | b3 | b4 | 0-pad to 128] -------
    cout = ch1 + ch3 + ch5 + pp
    parts = [yA[:, :ch1], yB, yA[:, ch1 + CR:]]
    if out_lanes > cout:
        parts.append(jnp.zeros((M, out_lanes - cout), jnp.float32))
    o_ref[...] = jnp.concatenate(parts, axis=-1)


# ------------------------------ JAX wrapper ---------------------------------

def _fold_conv_bn(p):
    """Fold eval-mode BatchNorm into the conv weight/bias.

    y = ((x*W + b) - mean)/sqrt(var+eps)*gamma + beta
      = x @ (W*s) + (beta + s*(b - mean)),  s = gamma/sqrt(var+eps).
    Returns W as (kh, kw, cin, cout) f32 with s folded in, plus the f32 bias.
    (Folding s into W vs. scaling post-matmul gives identical bf16 relative
    error; bias is always applied in f32 after the matmul.)
    """
    s = p["gamma"] / jnp.sqrt(p["var"] + EPS)
    w = jnp.transpose(p["w"], (2, 3, 1, 0)) * s           # (kh, kw, cin, cout)
    bias = p["beta"] + s * (p["b"] - p["mean"])
    return w.astype(jnp.float32), bias.astype(jnp.float32)


def inception_forward(x_nhwc, params):
    """NHWC Inception forward, eval-mode BN folded, ONE Pallas kernel."""
    N, H, W, Cin = x_nhwc.shape
    ch1 = params["b1"]["w"].shape[0]
    c3r = params["b2_red"]["w"].shape[0]
    ch3 = params["b2"]["w"].shape[0]
    c5r = params["b3_red"]["w"].shape[0]
    ch5 = params["b3"]["w"].shape[0]
    pp = params["b4"]["w"].shape[0]
    CR, CA, CB = c3r + c5r, ch1 + c3r + c5r + pp, ch3 + ch5
    cout = ch1 + ch3 + ch5 + pp
    out_lanes = ((cout + LANES - 1) // LANES) * LANES      # lane-dense slab

    # ----- fold BN + assemble the two block-diagonal fused weights ----------
    w_b1, b_b1 = _fold_conv_bn(params["b1"])
    w_2r, b_2r = _fold_conv_bn(params["b2_red"])
    w_3r, b_3r = _fold_conv_bn(params["b3_red"])
    w_b4, b_b4 = _fold_conv_bn(params["b4"])
    wA = jnp.zeros((2 * Cin, CA), jnp.float32)
    wA = wA.at[:Cin, :ch1 + CR].set(
        jnp.concatenate([w_b1[0, 0], w_2r[0, 0], w_3r[0, 0]], axis=1))
    wA = wA.at[Cin:, ch1 + CR:].set(w_b4[0, 0])            # pool branch sees `pooled`
    bA = jnp.concatenate([b_b1, b_2r, b_3r, b_b4]).reshape(1, CA)

    w3, b3 = _fold_conv_bn(params["b2"])                   # (3, 3, c3r, ch3)
    w5, b5 = _fold_conv_bn(params["b3"])                   # (5, 5, c5r, ch5)
    w35 = jnp.zeros((5, 5, CR, CB), jnp.float32)
    w35 = w35.at[1:4, 1:4, :c3r, :ch3].set(w3)             # 3x3 = centre of 5x5
    w35 = w35.at[:, :, c3r:, ch3:].set(w5)
    w35 = w35.reshape(25, CR, CB)
    bB = jnp.concatenate([b3, b5]).reshape(1, CB)

    kern = functools.partial(
        _inception_kernel, N=N, H=H, W=W, cin=Cin, ch1=ch1, c3r=c3r,
        c5r=c5r, ch3=ch3, ch5=ch5, pp=pp, out_lanes=out_lanes)

    slab = pl.pallas_call(
        kern,
        out_shape=jax.ShapeDtypeStruct((N * H * W, out_lanes), jnp.float32),
        grid=(1,),
        in_specs=[
            pl.BlockSpec((N, H, W, Cin), lambda i: (0, 0, 0, 0)),
            pl.BlockSpec((2 * Cin, CA), lambda i: (0, 0)),
            pl.BlockSpec((1, CA), lambda i: (0, 0)),
            pl.BlockSpec((25, CR, CB), lambda i: (0, 0, 0)),
            pl.BlockSpec((1, CB), lambda i: (0, 0)),
        ],
        out_specs=pl.BlockSpec((N * H * W, out_lanes), lambda i: (0, 0)),
        scratch_shapes=[
            pltpu.VMEM((N, H + 2, W + 2, Cin), jnp.float32),   # maxpool halo
            pltpu.VMEM((N, H + 4, W + 4, CR), jnp.float32),    # conv zero halo
        ],
        compiler_params=pltpu.CompilerParams(
            dimension_semantics=("arbitrary",)),
    )(x_nhwc, wA.astype(jnp.bfloat16), bA, w35.astype(jnp.bfloat16), bB)

    # channel concat (dim=1 in NCHW == last dim in NHWC); drop the lane pad.
    return slab[:, :cout].reshape(N, H, W, cout)


# ----------------------- deterministic parameter init -----------------------

def conv_bn_params(key, cin, cout, k):
    kw, kb, kg, kbt, km, kv = jax.random.split(key, 6)
    return dict(
        w=0.1 * jax.random.normal(kw, (cout, cin, k, k), jnp.float32),
        b=0.1 * jax.random.normal(kb, (cout,), jnp.float32),
        gamma=1.0 + 0.1 * jax.random.normal(kg, (cout,), jnp.float32),
        beta=0.1 * jax.random.normal(kbt, (cout,), jnp.float32),
        mean=0.1 * jax.random.normal(km, (cout,), jnp.float32),
        var=jnp.abs(jax.random.normal(kv, (cout,), jnp.float32)) + 0.5,
    )


def make_inception_params(key, in_ch, ch1x1, ch3x3red, ch3x3,
                          ch5x5red, ch5x5, pool_proj):
    ks = jax.random.split(key, 6)
    return dict(
        b1=conv_bn_params(ks[0], in_ch, ch1x1, 1),
        b2_red=conv_bn_params(ks[1], in_ch, ch3x3red, 1),
        b2=conv_bn_params(ks[2], ch3x3red, ch3x3, 3),
        b3_red=conv_bn_params(ks[3], in_ch, ch5x5red, 1),
        b3=conv_bn_params(ks[4], ch5x5red, ch5x5, 5),
        b4=conv_bn_params(ks[5], in_ch, pool_proj, 1),
    )


# ------------------------------ pure-JAX reference --------------------------

def conv_bn_relu_ref(x, p, pad):
    w_hwio = jnp.transpose(p["w"], (2, 3, 1, 0))
    y = lax.conv_general_dilated(
        x, w_hwio, window_strides=(1, 1),
        padding=((pad, pad), (pad, pad)),
        dimension_numbers=("NHWC", "HWIO", "NHWC"),
        precision=lax.Precision.HIGHEST) + p["b"]
    y = (y - p["mean"]) / jnp.sqrt(p["var"] + EPS) * p["gamma"] + p["beta"]
    return jnp.maximum(y, 0.0)


def inception_ref(x, params):
    b1 = conv_bn_relu_ref(x, params["b1"], 0)
    b2 = conv_bn_relu_ref(conv_bn_relu_ref(x, params["b2_red"], 0),
                          params["b2"], 1)
    b3 = conv_bn_relu_ref(conv_bn_relu_ref(x, params["b3_red"], 0),
                          params["b3"], 2)
    b4 = lax.reduce_window(x, -jnp.inf, lax.max, (1, 3, 3, 1), (1, 1, 1, 1),
                           ((0, 0), (1, 1), (1, 1), (0, 0)))
    b4 = conv_bn_relu_ref(b4, params["b4"], 0)
    return jnp.concatenate([b1, b2, b3, b4], axis=-1)


# ---------------------------------- main -------------------------------------

if __name__ == "__main__":
    key = jax.random.PRNGKey(0)
    kx, kp = jax.random.split(key)

    # Module config: Inception(in_channels=4, ch1x1=8, ch3x3red=4, ch3x3=8,
    #                          ch5x5red=4, ch5x5=8, pool_proj=8)
    N, Cin, H, W = 2, 4, 8, 8
    params = make_inception_params(kp, Cin, 8, 4, 8, 4, 8, 8)

    x_nchw = jax.random.normal(kx, (N, Cin, H, W), jnp.float32)   # PyTorch NCHW
    x_nhwc = jnp.transpose(x_nchw, (0, 2, 3, 1))                  # kernel layout

    fwd = jax.jit(inception_forward)
    out_nhwc = jax.block_until_ready(fwd(x_nhwc, params))
    out_nchw = jnp.transpose(out_nhwc, (0, 3, 1, 2))              # back to NCHW

    ref_nhwc = inception_ref(x_nhwc, params)                      # f32 HIGHEST ref

    assert out_nchw.shape == (N, 8 + 8 + 8 + 8, H, W), out_nchw.shape
    assert bool(jnp.all(jnp.isfinite(out_nhwc)))
    # MXU runs in native bf16 (f32 accumulate); compare against the full-f32
    # reference with a bf16-appropriate tolerance.
    max_err = float(jnp.max(jnp.abs(out_nhwc - ref_nhwc)))
    assert bool(jnp.allclose(out_nhwc, ref_nhwc, rtol=2e-2, atol=2e-2)), max_err

    print("KERNEL_OK")
</pallas_src>

<mosaic_0001>
module attributes {stable_mosaic.version = 11 : i64} {
  func.func @_inception_kernel(%arg0: i32, %arg1: memref<2x8x8x4xf32, #tpu.memory_space<vmem>>, %arg2: memref<8x24xbf16, #tpu.memory_space<vmem>>, %arg3: memref<1x24xf32, #tpu.memory_space<vmem>>, %arg4: memref<25x8x16xbf16, #tpu.memory_space<vmem>>, %arg5: memref<1x16xf32, #tpu.memory_space<vmem>>, %arg6: memref<128x128xf32, #tpu.memory_space<vmem>>, %arg7: memref<2x10x10x4xf32, #tpu.memory_space<vmem>>, %arg8: memref<2x12x12x8xf32, #tpu.memory_space<vmem>>) attributes {dimension_semantics = [#tpu.dimension_semantics<arbitrary>], iteration_bounds = array<i64: 1>, scalar_prefetch = 0 : i64, scratch_operands = 2 : i64, tpu.core_type = #tpu.core_type<tc>, window_params = [{pipeline_mode = #tpu.pipeline_mode<synchronous>, transform_indices = @transform_0, window_bounds = array<i64: 2, 8, 8, 4>}, {pipeline_mode = #tpu.pipeline_mode<synchronous>, transform_indices = @transform_1, window_bounds = array<i64: 8, 24>}, {pipeline_mode = #tpu.pipeline_mode<synchronous>, transform_indices = @transform_2, window_bounds = array<i64: 1, 24>}, {pipeline_mode = #tpu.pipeline_mode<synchronous>, transform_indices = @transform_3, window_bounds = array<i64: 25, 8, 16>}, {pipeline_mode = #tpu.pipeline_mode<synchronous>, transform_indices = @transform_4, window_bounds = array<i64: 1, 16>}, {pipeline_mode = #tpu.pipeline_mode<synchronous>, transform_indices = @transform_5, window_bounds = array<i64: 128, 128>}]} {
    %c0 = arith.constant 0 : index
    %c0_0 = arith.constant 0 : index
    %c0_1 = arith.constant 0 : index
    %c0_2 = arith.constant 0 : index
    %0 = vector.load %arg1[%c0, %c0_0, %c0_1, %c0_2] : memref<2x8x8x4xf32, #tpu.memory_space<vmem>>, vector<2x8x8x4xf32>
    %cst = arith.constant 0xFF800000 : f32
    %1 = vector.broadcast %cst : f32 to vector<2x10x10x4xf32>
    %c0_3 = arith.constant 0 : index
    %c0_4 = arith.constant 0 : index
    %c0_5 = arith.constant 0 : index
    %c0_6 = arith.constant 0 : index
    %2 = vector.load %arg7[%c0_3, %c0_4, %c0_5, %c0_6] : memref<2x10x10x4xf32, #tpu.memory_space<vmem>>, vector<2x10x10x4xf32>
    tpu.vector_store %arg7[%c0_3, %c0_4, %c0_5, %c0_6], %1 {strides = array<i32>} : memref<2x10x10x4xf32, #tpu.memory_space<vmem>>, vector<2x10x10x4xf32>,
    %c0_7 = arith.constant 0 : index
    %c1 = arith.constant 1 : index
    %c1_8 = arith.constant 1 : index
    %c0_9 = arith.constant 0 : index
    %3 = vector.load %arg7[%c0_7, %c1, %c1_8, %c0_9] : memref<2x10x10x4xf32, #tpu.memory_space<vmem>>, vector<2x8x8x4xf32>
    tpu.vector_store %arg7[%c0_7, %c1, %c1_8, %c0_9], %0 {strides = array<i32>} : memref<2x10x10x4xf32, #tpu.memory_space<vmem>>, vector<2x8x8x4xf32>,
    %c0_10 = arith.constant 0 : index
    %c0_11 = arith.constant 0 : index
    %c0_12 = arith.constant 0 : index
    %c0_13 = arith.constant 0 : index
    %4 = vector.load %arg7[%c0_10, %c0_11, %c0_12, %c0_13] : memref<2x10x10x4xf32, #tpu.memory_space<vmem>>, vector<2x8x8x4xf32>
    %5 = arith.maximumf %0, %4 : vector<2x8x8x4xf32>
    %c0_14 = arith.constant 0 : index
    %c0_15 = arith.constant 0 : index
    %c1_16 = arith.constant 1 : index
    %c0_17 = arith.constant 0 : index
    %6 = vector.load %arg7[%c0_14, %c0_15, %c1_16, %c0_17] : memref<2x10x10x4xf32, #tpu.memory_space<vmem>>, vector<2x8x8x4xf32>
    %7 = arith.maximumf %5, %6 : vector<2x8x8x4xf32>
    %c0_18 = arith.constant 0 : index
    %c0_19 = arith.constant 0 : index
    %c2 = arith.constant 2 : index
    %c0_20 = arith.constant 0 : index
    %8 = vector.load %arg7[%c0_18, %c0_19, %c2, %c0_20] : memref<2x10x10x4xf32, #tpu.memory_space<vmem>>, vector<2x8x8x4xf32>
    %9 = arith.maximumf %7, %8 : vector<2x8x8x4xf32>
    %c0_21 = arith.constant 0 : index
    %c1_22 = arith.constant 1 : index
    %c0_23 = arith.constant 0 : index
    %c0_24 = arith.constant 0 : index
    %10 = vector.load %arg7[%c0_21, %c1_22, %c0_23, %c0_24] : memref<2x10x10x4xf32, #tpu.memory_space<vmem>>, vector<2x8x8x4xf32>
    %11 = arith.maximumf %9, %10 : vector<2x8x8x4xf32>
    %c0_25 = arith.constant 0 : index
    %c1_26 = arith.constant 1 : index
    %c2_27 = arith.constant 2 : index
    %c0_28 = arith.constant 0 : index
    %12 = vector.load %arg7[%c0_25, %c1_26, %c2_27, %c0_28] : memref<2x10x10x4xf32, #tpu.memory_space<vmem>>, vector<2x8x8x4xf32>
    %13 = arith.maximumf %11, %12 : vector<2x8x8x4xf32>
    %c0_29 = arith.constant 0 : index
    %c2_30 = arith.constant 2 : index
    %c0_31 = arith.constant 0 : index
    %c0_32 = arith.constant 0 : index
    %14 = vector.load %arg7[%c0_29, %c2_30, %c0_31, %c0_32] : memref<2x10x10x4xf32, #tpu.memory_space<vmem>>, vector<2x8x8x4xf32>
    %15 = arith.maximumf %13, %14 : vector<2x8x8x4xf32>
    %c0_33 = arith.constant 0 : index
    %c2_34 = arith.constant 2 : index
    %c1_35 = arith.constant 1 : index
    %c0_36 = arith.constant 0 : index
    %16 = vector.load %arg7[%c0_33, %c2_34, %c1_35, %c0_36] : memref<2x10x10x4xf32, #tpu.memory_space<vmem>>, vector<2x8x8x4xf32>
    %17 = arith.maximumf %15, %16 : vector<2x8x8x4xf32>
    %c0_37 = arith.constant 0 : index
    %c2_38 = arith.constant 2 : index
    %c2_39 = arith.constant 2 : index
    %c0_40 = arith.constant 0 : index
    %18 = vector.load %arg7[%c0_37, %c2_38, %c2_39, %c0_40] : memref<2x10x10x4xf32, #tpu.memory_space<vmem>>, vector<2x8x8x4xf32>
    %19 = arith.maximumf %17, %18 : vector<2x8x8x4xf32>
    %20 = vector.shape_cast %0 : vector<2x8x8x4xf32> to vector<128x4xf32>
    %21 = arith.truncf %20 : vector<128x4xf32> to vector<128x4xbf16>
    %22 = vector.shape_cast %19 : vector<2x8x8x4xf32> to vector<128x4xf32>
    %23 = arith.truncf %22 : vector<128x4xf32> to vector<128x4xbf16>
    %24 = tpu.concatenate %21, %23 in 1 : vector<128x4xbf16>, vector<128x4xbf16> -> vector<128x8xbf16>
    %c0_41 = arith.constant 0 : index
    %c0_42 = arith.constant 0 : index
    %25 = vector.load %arg2[%c0_41, %c0_42] : memref<8x24xbf16, #tpu.memory_space<vmem>>, vector<8x24xbf16>
    %cst_43 = arith.constant dense<0.000000e+00> : vector<128x24xf32>
    %26 = tpu.matmul %24, %25, %cst_43 {dimension_numbers = #tpu.dot_dimension_numbers<[1], [0], [0], [1], [0, 0, 1, 1], [], []>} : vector<128x8xbf16>, vector<8x24xbf16>, vector<128x24xf32> -> vector<128x24xf32>
    %c0_44 = arith.constant 0 : index
    %c0_45 = arith.constant 0 : index
    %27 = vector.load %arg3[%c0_44, %c0_45] : memref<1x24xf32, #tpu.memory_space<vmem>>, vector<1x24xf32>
    %28 = vector.broadcast %27 : vector<1x24xf32> to vector<128x24xf32>
    %29 = arith.addf %26, %28 : vector<128x24xf32>
    %cst_46 = arith.constant 0.000000e+00 : f32
    %30 = vector.broadcast %cst_46 : f32 to vector<128x24xf32>
    %31 = arith.maximumf %29, %30 : vector<128x24xf32>
    %cst_47 = arith.constant 0.000000e+00 : f32
    %32 = vector.broadcast %cst_47 : f32 to vector<2x12x12x8xf32>
    %c0_48 = arith.constant 0 : index
    %c0_49 = arith.constant 0 : index
    %c0_50 = arith.constant 0 : index
    %c0_51 = arith.constant 0 : index
    %33 = vector.load %arg8[%c0_48, %c0_49, %c0_50, %c0_51] : memref<2x12x12x8xf32, #tpu.memory_space<vmem>>, vector<2x12x12x8xf32>
    tpu.vector_store %arg8[%c0_48, %c0_49, %c0_50, %c0_51], %32 {strides = array<i32>} : memref<2x12x12x8xf32, #tpu.memory_space<vmem>>, vector<2x12x12x8xf32>,
    %34 = vector.extract_strided_slice %31 {offsets = [0, 8], sizes = [128, 8], strides = [1, 1]} : vector<128x24xf32> to vector<128x8xf32>
    %35 = vector.shape_cast %34 : vector<128x8xf32> to vector<2x8x8x8xf32>
    %c0_52 = arith.constant 0 : index
    %c2_53 = arith.constant 2 : index
    %c2_54 = arith.constant 2 : index
    %c0_55 = arith.constant 0 : index
    %36 = vector.load %arg8[%c0_52, %c2_53, %c2_54, %c0_55] : memref<2x12x12x8xf32, #tpu.memory_space<vmem>>, vector<2x8x8x8xf32>
    tpu.vector_store %arg8[%c0_52, %c2_53, %c2_54, %c0_55], %35 {strides = array<i32>} : memref<2x12x12x8xf32, #tpu.memory_space<vmem>>, vector<2x8x8x8xf32>,
    %cst_56 = arith.constant 0.000000e+00 : f32
    %37 = vector.broadcast %cst_56 : f32 to vector<128x16xf32>
    %c0_57 = arith.constant 0 : index
    %c0_58 = arith.constant 0 : index
    %c0_59 = arith.constant 0 : index
    %c0_60 = arith.constant 0 : index
    %38 = vector.load %arg8[%c0_57, %c0_58, %c0_59, %c0_60] : memref<2x12x12x8xf32, #tpu.memory_space<vmem>>, vector<2x8x8x8xf32>
    %39 = vector.shape_cast %38 : vector<2x8x8x8xf32> to vector<128x8xf32>
    %40 = arith.truncf %39 : vector<128x8xf32> to vector<128x8xbf16>
    %c0_61 = arith.constant 0 : index
    %c0_62 = arith.constant 0 : index
    %c0_63 = arith.constant 0 : index
    %41 = vector.load %arg4[%c0_61, %c0_62, %c0_63] : memref<25x8x16xbf16, #tpu.memory_space<vmem>>, vector<1x8x16xbf16>
    %42 = vector.shape_cast %41 : vector<1x8x16xbf16> to vector<8x16xbf16>
    %cst_64 = arith.constant dense<0.000000e+00> : vector<128x16xf32>
    %43 = tpu.matmul %40, %42, %cst_64 {dimension_numbers = #tpu.dot_dimension_numbers<[1], [0], [0], [1], [0, 0, 1, 1], [], []>} : vector<128x8xbf16>, vector<8x16xbf16>, vector<128x16xf32> -> vector<128x16xf32>
    %44 = arith.addf %37, %43 : vector<128x16xf32>
    %c0_65 = arith.constant 0 : index
    %c0_66 = arith.constant 0 : index
    %c1_67 = arith.constant 1 : index
    %c0_68 = arith.constant 0 : index
    %45 = vector.load %arg8[%c0_65, %c0_66, %c1_67, %c0_68] : memref<2x12x12x8xf32, #tpu.memory_space<vmem>>, vector<2x8x8x8xf32>
    %46 = vector.shape_cast %45 : vector<2x8x8x8xf32> to vector<128x8xf32>
    %47 = arith.truncf %46 : vector<128x8xf32> to vector<128x8xbf16>
    %c1_69 = arith.constant 1 : index
    %c0_70 = arith.constant 0 : index
    %c0_71 = arith.constant 0 : index
    %48 = vector.load %arg4[%c1_69, %c0_70, %c0_71] : memref<25x8x16xbf16, #tpu.memory_space<vmem>>, vector<1x8x16xbf16>
    %49 = vector.shape_cast %48 : vector<1x8x16xbf16> to vector<8x16xbf16>
    %cst_72 = arith.constant dense<0.000000e+00> : vector<128x16xf32>
    %50 = tpu.matmul %47, %49, %cst_72 {dimension_numbers = #tpu.dot_dimension_numbers<[1], [0], [0], [1], [0, 0, 1, 1], [], []>} : vector<128x8xbf16>, vector<8x16xbf16>, vector<128x16xf32> -> vector<128x16xf32>
    %51 = arith.addf %44, %50 : vector<128x16xf32>
    %c0_73 = arith.constant 0 : index
    %c0_74 = arith.constant 0 : index
    %c2_75 = arith.constant 2 : index
    %c0_76 = arith.constant 0 : index
    %52 = vector.load %arg8[%c0_73, %c0_74, %c2_75, %c0_76] : memref<2x12x12x8xf32, #tpu.memory_space<vmem>>, vector<2x8x8x8xf32>
    %53 = vector.shape_cast %52 : vector<2x8x8x8xf32> to vector<128x8xf32>
    %54 = arith.truncf %53 : vector<128x8xf32> to vector<128x8xbf16>
    %c2_77 = arith.constant 2 : index
    %c0_78 = arith.constant 0 : index
    %c0_79 = arith.constant 0 : index
    %55 = vector.load %arg4[%c2_77, %c0_78, %c0_79] : memref<25x8x16xbf16, #tpu.memory_space<vmem>>, vector<1x8x16xbf16>
    %56 = vector.shape_cast %55 : vector<1x8x16xbf16> to vector<8x16xbf16>
    %cst_80 = arith.constant dense<0.000000e+00> : vector<128x16xf32>
    %57 = tpu.matmul %54, %56, %cst_80 {dimension_numbers = #tpu.dot_dimension_numbers<[1], [0], [0], [1], [0, 0, 1, 1], [], []>} : vector<128x8xbf16>, vector<8x16xbf16>, vector<128x16xf32> -> vector<128x16xf32>
    %58 = arith.addf %51, %57 : vector<128x16xf32>
    %c0_81 = arith.constant 0 : index
    %c0_82 = arith.constant 0 : index
    %c3 = arith.constant 3 : index
    %c0_83 = arith.constant 0 : index
    %59 = vector.load %arg8[%c0_81, %c0_82, %c3, %c0_83] : memref<2x12x12x8xf32, #tpu.memory_space<vmem>>, vector<2x8x8x8xf32>
    %60 = vector.shape_cast %59 : vector<2x8x8x8xf32> to vector<128x8xf32>
    %61 = arith.truncf %60 : vector<128x8xf32> to vector<128x8xbf16>
    %c3_84 = arith.constant 3 : index
    %c0_85 = arith.constant 0 : index
    %c0_86 = arith.constant 0 : index
    %62 = vector.load %arg4[%c3_84, %c0_85, %c0_86] : memref<25x8x16xbf16, #tpu.memory_space<vmem>>, vector<1x8x16xbf16>
    %63 = vector.shape_cast %62 : vector<1x8x16xbf16> to vector<8x16xbf16>
    %cst_87 = arith.constant dense<0.000000e+00> : vector<128x16xf32>
    %64 = tpu.matmul %61, %63, %cst_87 {dimension_numbers = #tpu.dot_dimension_numbers<[1], [0], [0], [1], [0, 0, 1, 1], [], []>} : vector<128x8xbf16>, vector<8x16xbf16>, vector<128x16xf32> -> vector<128x16xf32>
    %65 = arith.addf %58, %64 : vector<128x16xf32>
    %c0_88 = arith.constant 0 : index
    %c0_89 = arith.constant 0 : index
    %c4 = arith.constant 4 : index
    %c0_90 = arith.constant 0 : index
    %66 = vector.load %arg8[%c0_88, %c0_89, %c4, %c0_90] : memref<2x12x12x8xf32, #tpu.memory_space<vmem>>, vector<2x8x8x8xf32>
    %67 = vector.shape_cast %66 : vector<2x8x8x8xf32> to vector<128x8xf32>
    %68 = arith.truncf %67 : vector<128x8xf32> to vector<128x8xbf16>
    %c4_91 = arith.constant 4 : index
    %c0_92 = arith.constant 0 : index
    %c0_93 = arith.constant 0 : index
    %69 = vector.load %arg4[%c4_91, %c0_92, %c0_93] : memref<25x8x16xbf16, #tpu.memory_space<vmem>>, vector<1x8x16xbf16>
    %70 = vector.shape_cast %69 : vector<1x8x16xbf16> to vector<8x16xbf16>
    %cst_94 = arith.constant dense<0.000000e+00> : vector<128x16xf32>
    %71 = tpu.matmul %68, %70, %cst_94 {dimension_numbers = #tpu.dot_dimension_numbers<[1], [0], [0], [1], [0, 0, 1, 1], [], []>} : vector<128x8xbf16>, vector<8x16xbf16>, vector<128x16xf32> -> vector<128x16xf32>
    %72 = arith.addf %65, %71 : vector<128x16xf32>
    %c0_95 = arith.constant 0 : index
    %c1_96 = arith.constant 1 : index
    %c0_97 = arith.constant 0 : index
    %c0_98 = arith.constant 0 : index
    %73 = vector.load %arg8[%c0_95, %c1_96, %c0_97, %c0_98] : memref<2x12x12x8xf32, #tpu.memory_space<vmem>>, vector<2x8x8x8xf32>
    %74 = vector.shape_cast %73 : vector<2x8x8x8xf32> to vector<128x8xf32>
    %75 = arith.truncf %74 : vector<128x8xf32> to vector<128x8xbf16>
    %c5 = arith.constant 5 : index
    %c0_99 = arith.constant 0 : index
    %c0_100 = arith.constant 0 : index
    %76 = vector.load %arg4[%c5, %c0_99, %c0_100] : memref<25x8x16xbf16, #tpu.memory_space<vmem>>, vector<1x8x16xbf16>
    %77 = vector.shape_cast %76 : vector<1x8x16xbf16> to vector<8x16xbf16>
    %cst_101 = arith.constant dense<0.000000e+00> : vector<128x16xf32>
    %78 = tpu.matmul %75, %77, %cst_101 {dimension_numbers = #tpu.dot_dimension_numbers<[1], [0], [0], [1], [0, 0, 1, 1], [], []>} : vector<128x8xbf16>, vector<8x16xbf16>, vector<128x16xf32> -> vector<128x16xf32>
    %79 = arith.addf %72, %78 : vector<128x16xf32>
    %c0_102 = arith.constant 0 : index
    %c1_103 = arith.constant 1 : index
    %c1_104 = arith.constant 1 : index
    %c0_105 = arith.constant 0 : index
    %80 = vector.load %arg8[%c0_102, %c1_103, %c1_104, %c0_105] : memref<2x12x12x8xf32, #tpu.memory_space<vmem>>, vector<2x8x8x8xf32>
    %81 = vector.shape_cast %80 : vector<2x8x8x8xf32> to vector<128x8xf32>
    %82 = arith.truncf %81 : vector<128x8xf32> to vector<128x8xbf16>
    %c6 = arith.constant 6 : index
    %c0_106 = arith.constant 0 : index
    %c0_107 = arith.constant 0 : index
    %83 = vector.load %arg4[%c6, %c0_106, %c0_107] : memref<25x8x16xbf16, #tpu.memory_space<vmem>>, vector<1x8x16xbf16>
    %84 = vector.shape_cast %83 : vector<1x8x16xbf16> to vector<8x16xbf16>
    %cst_108 = arith.constant dense<0.000000e+00> : vector<128x16xf32>
    %85 = tpu.matmul %82, %84, %cst_108 {dimension_numbers = #tpu.dot_dimension_numbers<[1], [0], [0], [1], [0, 0, 1, 1], [], []>} : vector<128x8xbf16>, vector<8x16xbf16>, vector<128x16xf32> -> vector<128x16xf32>
    %86 = arith.addf %79, %85 : vector<128x16xf32>
    %c0_109 = arith.constant 0 : index
    %c1_110 = arith.constant 1 : index
    %c2_111 = arith.constant 2 : index
    %c0_112 = arith.constant 0 : index
    %87 = vector.load %arg8[%c0_109, %c1_110, %c2_111, %c0_112] : memref<2x12x12x8xf32, #tpu.memory_space<vmem>>, vector<2x8x8x8xf32>
    %88 = vector.shape_cast %87 : vector<2x8x8x8xf32> to vector<128x8xf32>
    %89 = arith.truncf %88 : vector<128x8xf32> to vector<128x8xbf16>
    %c7 = arith.constant 7 : index
    %c0_113 = arith.constant 0 : index
    %c0_114 = arith.constant 0 : index
    %90 = vector.load %arg4[%c7, %c0_113, %c0_114] : memref<25x8x16xbf16, #tpu.memory_space<vmem>>, vector<1x8x16xbf16>
    %91 = vector.shape_cast %90 : vector<1x8x16xbf16> to vector<8x16xbf16>
    %cst_115 = arith.constant dense<0.000000e+00> : vector<128x16xf32>
    %92 = tpu.matmul %89, %91, %cst_115 {dimension_numbers = #tpu.dot_dimension_numbers<[1], [0], [0], [1], [0, 0, 1, 1], [], []>} : vector<128x8xbf16>, vector<8x16xbf16>, vector<128x16xf32> -> vector<128x16xf32>
    %93 = arith.addf %86, %92 : vector<128x16xf32>
    %c0_116 = arith.constant 0 : index
    %c1_117 = arith.constant 1 : index
    %c3_118 = arith.constant 3 : index
    %c0_119 = arith.constant 0 : index
    %94 = vector.load %arg8[%c0_116, %c1_117, %c3_118, %c0_119] : memref<2x12x12x8xf32, #tpu.memory_space<vmem>>, vector<2x8x8x8xf32>
    %95 = vector.shape_cast %94 : vector<2x8x8x8xf32> to vector<128x8xf32>
    %96 = arith.truncf %95 : vector<128x8xf32> to vector<128x8xbf16>
    %c8 = arith.constant 8 : index
    %c0_120 = arith.constant 0 : index
    %c0_121 = arith.constant 0 : index
    %97 = vector.load %arg4[%c8, %c0_120, %c0_121] : memref<25x8x16xbf16, #tpu.memory_space<vmem>>, vector<1x8x16xbf16>
    %98 = vector.shape_cast %97 : vector<1x8x16xbf16> to vector<8x16xbf16>
    %cst_122 = arith.constant dense<0.000000e+00> : vector<128x16xf32>
    %99 = tpu.matmul %96, %98, %cst_122 {dimension_numbers = #tpu.dot_dimension_numbers<[1], [0], [0], [1], [0, 0, 1, 1], [], []>} : vector<128x8xbf16>, vector<8x16xbf16>, vector<128x16xf32> -> vector<128x16xf32>
    %100 = arith.addf %93, %99 : vector<128x16xf32>
    %c0_123 = arith.constant 0 : index
    %c1_124 = arith.constant 1 : index
    %c4_125 = arith.constant 4 : index
    %c0_126 = arith.constant 0 : index
    %101 = vector.load %arg8[%c0_123, %c1_124, %c4_125, %c0_126] : memref<2x12x12x8xf32, #tpu.memory_space<vmem>>, vector<2x8x8x8xf32>
    %102 = vector.shape_cast %101 : vector<2x8x8x8xf32> to vector<128x8xf32>
    %103 = arith.truncf %102 : vector<128x8xf32> to vector<128x8xbf16>
    %c9 = arith.constant 9 : index
    %c0_127 = arith.constant 0 : index
    %c0_128 = arith.constant 0 : index
    %104 = vector.load %arg4[%c9, %c0_127, %c0_128] : memref<25x8x16xbf16, #tpu.memory_space<vmem>>, vector<1x8x16xbf16>
    %105 = vector.shape_cast %104 : vector<1x8x16xbf16> to vector<8x16xbf16>
    %cst_129 = arith.constant dense<0.000000e+00> : vector<128x16xf32>
    %106 = tpu.matmul %103, %105, %cst_129 {dimension_numbers = #tpu.dot_dimension_numbers<[1], [0], [0], [1], [0, 0, 1, 1], [], []>} : vector<128x8xbf16>, vector<8x16xbf16>, vector<128x16xf32> -> vector<128x16xf32>
    %107 = arith.addf %100, %106 : vector<128x16xf32>
    %c0_130 = arith.constant 0 : index
    %c2_131 = arith.constant 2 : index
    %c0_132 = arith.constant 0 : index
    %c0_133 = arith.constant 0 : index
    %108 = vector.load %arg8[%c0_130, %c2_131, %c0_132, %c0_133] : memref<2x12x12x8xf32, #tpu.memory_space<vmem>>, vector<2x8x8x8xf32>
    %109 = vector.shape_cast %108 : vector<2x8x8x8xf32> to vector<128x8xf32>
    %110 = arith.truncf %109 : vector<128x8xf32> to vector<128x8xbf16>
    %c10 = arith.constant 10 : index
    %c0_134 = arith.constant 0 : index
    %c0_135 = arith.constant 0 : index
    %111 = vector.load %arg4[%c10, %c0_134, %c0_135] : memref<25x8x16xbf16, #tpu.memory_space<vmem>>, vector<1x8x16xbf16>
    %112 = vector.shape_cast %111 : vector<1x8x16xbf16> to vector<8x16xbf16>
    %cst_136 = arith.constant dense<0.000000e+00> : vector<128x16xf32>
    %113 = tpu.matmul %110, %112, %cst_136 {dimension_numbers = #tpu.dot_dimension_numbers<[1], [0], [0], [1], [0, 0, 1, 1], [], []>} : vector<128x8xbf16>, vector<8x16xbf16>, vector<128x16xf32> -> vector<128x16xf32>
    %114 = arith.addf %107, %113 : vector<128x16xf32>
    %c0_137 = arith.constant 0 : index
    %c2_138 = arith.constant 2 : index
    %c1_139 = arith.constant 1 : index
    %c0_140 = arith.constant 0 : index
    %115 = vector.load %arg8[%c0_137, %c2_138, %c1_139, %c0_140] : memref<2x12x12x8xf32, #tpu.memory_space<vmem>>, vector<2x8x8x8xf32>
    %116 = vector.shape_cast %115 : vector<2x8x8x8xf32> to vector<128x8xf32>
    %117 = arith.truncf %116 : vector<128x8xf32> to vector<128x8xbf16>
    %c11 = arith.constant 11 : index
    %c0_141 = arith.constant 0 : index
    %c0_142 = arith.constant 0 : index
    %118 = vector.load %arg4[%c11, %c0_141, %c0_142] : memref<25x8x16xbf16, #tpu.memory_space<vmem>>, vector<1x8x16xbf16>
    %119 = vector.shape_cast %118 : vector<1x8x16xbf16> to vector<8x16xbf16>
    %cst_143 = arith.constant dense<0.000000e+00> : vector<128x16xf32>
    %120 = tpu.matmul %117, %119, %cst_143 {dimension_numbers = #tpu.dot_dimension_numbers<[1], [0], [0], [1], [0, 0, 1, 1], [], []>} : vector<128x8xbf16>, vector<8x16xbf16>, vector<128x16xf32> -> vector<128x16xf32>
    %121 = arith.addf %114, %120 : vector<128x16xf32>
    %c0_144 = arith.constant 0 : index
    %c2_145 = arith.constant 2 : index
    %c2_146 = arith.constant 2 : index
    %c0_147 = arith.constant 0 : index
    %122 = vector.load %arg8[%c0_144, %c2_145, %c2_146, %c0_147] : memref<2x12x12x8xf32, #tpu.memory_space<vmem>>, vector<2x8x8x8xf32>
    %123 = vector.shape_cast %122 : vector<2x8x8x8xf32> to vector<128x8xf32>
    %124 = arith.truncf %123 : vector<128x8xf32> to vector<128x8xbf16>
    %c12 = arith.constant 12 : index
    %c0_148 = arith.constant 0 : index
    %c0_149 = arith.constant 0 : index
    %125 = vector.load %arg4[%c12, %c0_148, %c0_149] : memref<25x8x16xbf16, #tpu.memory_space<vmem>>, vector<1x8x16xbf16>
    %126 = vector.shape_cast %125 : vector<1x8x16xbf16> to vector<8x16xbf16>
    %cst_150 = arith.constant dense<0.000000e+00> : vector<128x16xf32>
    %127 = tpu.matmul %124, %126, %cst_150 {dimension_numbers = #tpu.dot_dimension_numbers<[1], [0], [0], [1], [0, 0, 1, 1], [], []>} : vector<128x8xbf16>, vector<8x16xbf16>, vector<128x16xf32> -> vector<128x16xf32>
    %128 = arith.addf %121, %127 : vector<128x16xf32>
    %c0_151 = arith.constant 0 : index
    %c2_152 = arith.constant 2 : index
    %c3_153 = arith.constant 3 : index
    %c0_154 = arith.constant 0 : index
    %129 = vector.load %arg8[%c0_151, %c2_152, %c3_153, %c0_154] : memref<2x12x12x8xf32, #tpu.memory_space<vmem>>, vector<2x8x8x8xf32>
    %130 = vector.shape_cast %129 : vector<2x8x8x8xf32> to vector<128x8xf32>
    %131 = arith.truncf %130 : vector<128x8xf32> to vector<128x8xbf16>
    %c13 = arith.constant 13 : index
    %c0_155 = arith.constant 0 : index
    %c0_156 = arith.constant 0 : index
    %132 = vector.load %arg4[%c13, %c0_155, %c0_156] : memref<25x8x16xbf16, #tpu.memory_space<vmem>>, vector<1x8x16xbf16>
    %133 = vector.shape_cast %132 : vector<1x8x16xbf16> to vector<8x16xbf16>
    %cst_157 = arith.constant dense<0.000000e+00> : vector<128x16xf32>
    %134 = tpu.matmul %131, %133, %cst_157 {dimension_numbers = #tpu.dot_dimension_numbers<[1], [0], [0], [1], [0, 0, 1, 1], [], []>} : vector<128x8xbf16>, vector<8x16xbf16>, vector<128x16xf32> -> vector<128x16xf32>
    %135 = arith.addf %128, %134 : vector<128x16xf32>
    %c0_158 = arith.constant 0 : index
    %c2_159 = arith.constant 2 : index
    %c4_160 = arith.constant 4 : index
    %c0_161 = arith.constant 0 : index
    %136 = vector.load %arg8[%c0_158, %c2_159, %c4_160, %c0_161] : memref<2x12x12x8xf32, #tpu.memory_space<vmem>>, vector<2x8x8x8xf32>
    %137 = vector.shape_cast %136 : vector<2x8x8x8xf32> to vector<128x8xf32>
    %138 = arith.truncf %137 : vector<128x8xf32> to vector<128x8xbf16>
    %c14 = arith.constant 14 : index
    %c0_162 = arith.constant 0 : index
    %c0_163 = arith.constant 0 : index
    %139 = vector.load %arg4[%c14, %c0_162, %c0_163] : memref<25x8x16xbf16, #tpu.memory_space<vmem>>, vector<1x8x16xbf16>
    %140 = vector.shape_cast %139 : vector<1x8x16xbf16> to vector<8x16xbf16>
    %cst_164 = arith.constant dense<0.000000e+00> : vector<128x16xf32>
    %141 = tpu.matmul %138, %140, %cst_164 {dimension_numbers = #tpu.dot_dimension_numbers<[1], [0], [0], [1], [0, 0, 1, 1], [], []>} : vector<128x8xbf16>, vector<8x16xbf16>, vector<128x16xf32> -> vector<128x16xf32>
    %142 = arith.addf %135, %141 : vector<128x16xf32>
    %c0_165 = arith.constant 0 : index
    %c3_166 = arith.constant 3 : index
    %c0_167 = arith.constant 0 : index
    %c0_168 = arith.constant 0 : index
    %143 = vector.load %arg8[%c0_165, %c3_166, %c0_167, %c0_168] : memref<2x12x12x8xf32, #tpu.memory_space<vmem>>, vector<2x8x8x8xf32>
    %144 = vector.shape_cast %143 : vector<2x8x8x8xf32> to vector<128x8xf32>
    %145 = arith.truncf %144 : vector<128x8xf32> to vector<128x8xbf16>
    %c15 = arith.constant 15 : index
    %c0_169 = arith.constant 0 : index
    %c0_170 = arith.constant 0 : index
    %146 = vector.load %arg4[%c15, %c0_169, %c0_170] : memref<25x8x16xbf16, #tpu.memory_space<vmem>>, vector<1x8x16xbf16>
    %147 = vector.shape_cast %146 : vector<1x8x16xbf16> to vector<8x16xbf16>
    %cst_171 = arith.constant dense<0.000000e+00> : vector<128x16xf32>
    %148 = tpu.matmul %145, %147, %cst_171 {dimension_numbers = #tpu.dot_dimension_numbers<[1], [0], [0], [1], [0, 0, 1, 1], [], []>} : vector<128x8xbf16>, vector<8x16xbf16>, vector<128x16xf32> -> vector<128x16xf32>
    %149 = arith.addf %142, %148 : vector<128x16xf32>
    %c0_172 = arith.constant 0 : index
    %c3_173 = arith.constant 3 : index
    %c1_174 = arith.constant 1 : index
    %c0_175 = arith.constant 0 : index
    %150 = vector.load %arg8[%c0_172, %c3_173, %c1_174, %c0_175] : memref<2x12x12x8xf32, #tpu.memory_space<vmem>>, vector<2x8x8x8xf32>
    %151 = vector.shape_cast %150 : vector<2x8x8x8xf32> to vector<128x8xf32>
    %152 = arith.truncf %151 : vector<128x8xf32> to vector<128x8xbf16>
    %c16 = arith.constant 16 : index
    %c0_176 = arith.constant 0 : index
    %c0_177 = arith.constant 0 : index
    %153 = vector.load %arg4[%c16, %c0_176, %c0_177] : memref<25x8x16xbf16, #tpu.memory_space<vmem>>, vector<1x8x16xbf16>
    %154 = vector.shape_cast %153 : vector<1x8x16xbf16> to vector<8x16xbf16>
    %cst_178 = arith.constant dense<0.000000e+00> : vector<128x16xf32>
    %155 = tpu.matmul %152, %154, %cst_178 {dimension_numbers = #tpu.dot_dimension_numbers<[1], [0], [0], [1], [0, 0, 1, 1], [], []>} : vector<128x8xbf16>, vector<8x16xbf16>, vector<128x16xf32> -> vector<128x16xf32>
    %156 = arith.addf %149, %155 : vector<128x16xf32>
    %c0_179 = arith.constant 0 : index
    %c3_180 = arith.constant 3 : index
    %c2_181 = arith.constant 2 : index
    %c0_182 = arith.constant 0 : index
    %157 = vector.load %arg8[%c0_179, %c3_180, %c2_181, %c0_182] : memref<2x12x12x8xf32, #tpu.memory_space<vmem>>, vector<2x8x8x8xf32>
    %158 = vector.shape_cast %157 : vector<2x8x8x8xf32> to vector<128x8xf32>
    %159 = arith.truncf %158 : vector<128x8xf32> to vector<128x8xbf16>
    %c17 = arith.constant 17 : index
    %c0_183 = arith.constant 0 : index
    %c0_184 = arith.constant 0 : index
    %160 = vector.load %arg4[%c17, %c0_183, %c0_184] : memref<25x8x16xbf16, #tpu.memory_space<vmem>>, vector<1x8x16xbf16>
    %161 = vector.shape_cast %160 : vector<1x8x16xbf16> to vector<8x16xbf16>
    %cst_185 = arith.constant dense<0.000000e+00> : vector<128x16xf32>
    %162 = tpu.matmul %159, %161, %cst_185 {dimension_numbers = #tpu.dot_dimension_numbers<[1], [0], [0], [1], [0, 0, 1, 1], [], []>} : vector<128x8xbf16>, vector<8x16xbf16>, vector<128x16xf32> -> vector<128x16xf32>
    %163 = arith.addf %156, %162 : vector<128x16xf32>
    %c0_186 = arith.constant 0 : index
    %c3_187 = arith.constant 3 : index
    %c3_188 = arith.constant 3 : index
    %c0_189 = arith.constant 0 : index
    %164 = vector.load %arg8[%c0_186, %c3_187, %c3_188, %c0_189] : memref<2x12x12x8xf32, #tpu.memory_space<vmem>>, vector<2x8x8x8xf32>
    %165 = vector.shape_cast %164 : vector<2x8x8x8xf32> to vector<128x8xf32>
    %166 = arith.truncf %165 : vector<128x8xf32> to vector<128x8xbf16>
    %c18 = arith.constant 18 : index
    %c0_190 = arith.constant 0 : index
    %c0_191 = arith.constant 0 : index
    %167 = vector.load %arg4[%c18, %c0_190, %c0_191] : memref<25x8x16xbf16, #tpu.memory_space<vmem>>, vector<1x8x16xbf16>
    %168 = vector.shape_cast %167 : vector<1x8x16xbf16> to vector<8x16xbf16>
    %cst_192 = arith.constant dense<0.000000e+00> : vector<128x16xf32>
    %169 = tpu.matmul %166, %168, %cst_192 {dimension_numbers = #tpu.dot_dimension_numbers<[1], [0], [0], [1], [0, 0, 1, 1], [], []>} : vector<128x8xbf16>, vector<8x16xbf16>, vector<128x16xf32> -> vector<128x16xf32>
    %170 = arith.addf %163, %169 : vector<128x16xf32>
    %c0_193 = arith.constant 0 : index
    %c3_194 = arith.constant 3 : index
    %c4_195 = arith.constant 4 : index
    %c0_196 = arith.constant 0 : index
    %171 = vector.load %arg8[%c0_193, %c3_194, %c4_195, %c0_196] : memref<2x12x12x8xf32, #tpu.memory_space<vmem>>, vector<2x8x8x8xf32>
    %172 = vector.shape_cast %171 : vector<2x8x8x8xf32> to vector<128x8xf32>
    %173 = arith.truncf %172 : vector<128x8xf32> to vector<128x8xbf16>
    %c19 = arith.constant 19 : index
    %c0_197 = arith.constant 0 : index
    %c0_198 = arith.constant 0 : index
    %174 = vector.load %arg4[%c19, %c0_197, %c0_198] : memref<25x8x16xbf16, #tpu.memory_space<vmem>>, vector<1x8x16xbf16>
    %175 = vector.shape_cast %174 : vector<1x8x16xbf16> to vector<8x16xbf16>
    %cst_199 = arith.constant dense<0.000000e+00> : vector<128x16xf32>
    %176 = tpu.matmul %173, %175, %cst_199 {dimension_numbers = #tpu.dot_dimension_numbers<[1], [0], [0], [1], [0, 0, 1, 1], [], []>} : vector<128x8xbf16>, vector<8x16xbf16>, vector<128x16xf32> -> vector<128x16xf32>
    %177 = arith.addf %170, %176 : vector<128x16xf32>
    %c0_200 = arith.constant 0 : index
    %c4_201 = arith.constant 4 : index
    %c0_202 = arith.constant 0 : index
    %c0_203 = arith.constant 0 : index
    %178 = vector.load %arg8[%c0_200, %c4_201, %c0_202, %c0_203] : memref<2x12x12x8xf32, #tpu.memory_space<vmem>>, vector<2x8x8x8xf32>
    %179 = vector.shape_cast %178 : vector<2x8x8x8xf32> to vector<128x8xf32>
    %180 = arith.truncf %179 : vector<128x8xf32> to vector<128x8xbf16>
    %c20 = arith.constant 20 : index
    %c0_204 = arith.constant 0 : index
    %c0_205 = arith.constant 0 : index
    %181 = vector.load %arg4[%c20, %c0_204, %c0_205] : memref<25x8x16xbf16, #tpu.memory_space<vmem>>, vector<1x8x16xbf16>
    %182 = vector.shape_cast %181 : vector<1x8x16xbf16> to vector<8x16xbf16>
    %cst_206 = arith.constant dense<0.000000e+00> : vector<128x16xf32>
    %183 = tpu.matmul %180, %182, %cst_206 {dimension_numbers = #tpu.dot_dimension_numbers<[1], [0], [0], [1], [0, 0, 1, 1], [], []>} : vector<128x8xbf16>, vector<8x16xbf16>, vector<128x16xf32> -> vector<128x16xf32>
    %184 = arith.addf %177, %183 : vector<128x16xf32>
    %c0_207 = arith.constant 0 : index
    %c4_208 = arith.constant 4 : index
    %c1_209 = arith.constant 1 : index
    %c0_210 = arith.constant 0 : index
    %185 = vector.load %arg8[%c0_207, %c4_208, %c1_209, %c0_210] : memref<2x12x12x8xf32, #tpu.memory_space<vmem>>, vector<2x8x8x8xf32>
    %186 = vector.shape_cast %185 : vector<2x8x8x8xf32> to vector<128x8xf32>
    %187 = arith.truncf %186 : vector<128x8xf32> to vector<128x8xbf16>
    %c21 = arith.constant 21 : index
    %c0_211 = arith.constant 0 : index
    %c0_212 = arith.constant 0 : index
    %188 = vector.load %arg4[%c21, %c0_211, %c0_212] : memref<25x8x16xbf16, #tpu.memory_space<vmem>>, vector<1x8x16xbf16>
    %189 = vector.shape_cast %188 : vector<1x8x16xbf16> to vector<8x16xbf16>
    %cst_213 = arith.constant dense<0.000000e+00> : vector<128x16xf32>
    %190 = tpu.matmul %187, %189, %cst_213 {dimension_numbers = #tpu.dot_dimension_numbers<[1], [0], [0], [1], [0, 0, 1, 1], [], []>} : vector<128x8xbf16>, vector<8x16xbf16>, vector<128x16xf32> -> vector<128x16xf32>
    %191 = arith.addf %184, %190 : vector<128x16xf32>
    %c0_214 = arith.constant 0 : index
    %c4_215 = arith.constant 4 : index
    %c2_216 = arith.constant 2 : index
    %c0_217 = arith.constant 0 : index
    %192 = vector.load %arg8[%c0_214, %c4_215, %c2_216, %c0_217] : memref<2x12x12x8xf32, #tpu.memory_space<vmem>>, vector<2x8x8x8xf32>
    %193 = vector.shape_cast %192 : vector<2x8x8x8xf32> to vector<128x8xf32>
    %194 = arith.truncf %193 : vector<128x8xf32> to vector<128x8xbf16>
    %c22 = arith.constant 22 : index
    %c0_218 = arith.constant 0 : index
    %c0_219 = arith.constant 0 : index
    %195 = vector.load %arg4[%c22, %c0_218, %c0_219] : memref<25x8x16xbf16, #tpu.memory_space<vmem>>, vector<1x8x16xbf16>
    %196 = vector.shape_cast %195 : vector<1x8x16xbf16> to vector<8x16xbf16>
    %cst_220 = arith.constant dense<0.000000e+00> : vector<128x16xf32>
    %197 = tpu.matmul %194, %196, %cst_220 {dimension_numbers = #tpu.dot_dimension_numbers<[1], [0], [0], [1], [0, 0, 1, 1], [], []>} : vector<128x8xbf16>, vector<8x16xbf16>, vector<128x16xf32> -> vector<128x16xf32>
    %198 = arith.addf %191, %197 : vector<128x16xf32>
    %c0_221 = arith.constant 0 : index
    %c4_222 = arith.constant 4 : index
    %c3_223 = arith.constant 3 : index
    %c0_224 = arith.constant 0 : index
    %199 = vector.load %arg8[%c0_221, %c4_222, %c3_223, %c0_224] : memref<2x12x12x8xf32, #tpu.memory_space<vmem>>, vector<2x8x8x8xf32>
    %200 = vector.shape_cast %199 : vector<2x8x8x8xf32> to vector<128x8xf32>
    %201 = arith.truncf %200 : vector<128x8xf32> to vector<128x8xbf16>
    %c23 = arith.constant 23 : index
    %c0_225 = arith.constant 0 : index
    %c0_226 = arith.constant 0 : index
    %202 = vector.load %arg4[%c23, %c0_225, %c0_226] : memref<25x8x16xbf16, #tpu.memory_space<vmem>>, vector<1x8x16xbf16>
    %203 = vector.shape_cast %202 : vector<1x8x16xbf16> to vector<8x16xbf16>
    %cst_227 = arith.constant dense<0.000000e+00> : vector<128x16xf32>
    %204 = tpu.matmul %201, %203, %cst_227 {dimension_numbers = #tpu.dot_dimension_numbers<[1], [0], [0], [1], [0, 0, 1, 1], [], []>} : vector<128x8xbf16>, vector<8x16xbf16>, vector<128x16xf32> -> vector<128x16xf32>
    %205 = arith.addf %198, %204 : vector<128x16xf32>
    %c0_228 = arith.constant 0 : index
    %c4_229 = arith.constant 4 : index
    %c4_230 = arith.constant 4 : index
    %c0_231 = arith.constant 0 : index
    %206 = vector.load %arg8[%c0_228, %c4_229, %c4_230, %c0_231] : memref<2x12x12x8xf32, #tpu.memory_space<vmem>>, vector<2x8x8x8xf32>
    %207 = vector.shape_cast %206 : vector<2x8x8x8xf32> to vector<128x8xf32>
    %208 = arith.truncf %207 : vector<128x8xf32> to vector<128x8xbf16>
    %c24 = arith.constant 24 : index
    %c0_232 = arith.constant 0 : index
    %c0_233 = arith.constant 0 : index
    %209 = vector.load %arg4[%c24, %c0_232, %c0_233] : memref<25x8x16xbf16, #tpu.memory_space<vmem>>, vector<1x8x16xbf16>
    %210 = vector.shape_cast %209 : vector<1x8x16xbf16> to vector<8x16xbf16>
    %cst_234 = arith.constant dense<0.000000e+00> : vector<128x16xf32>
    %211 = tpu.matmul %208, %210, %cst_234 {dimension_numbers = #tpu.dot_dimension_numbers<[1], [0], [0], [1], [0, 0, 1, 1], [], []>} : vector<128x8xbf16>, vector<8x16xbf16>, vector<128x16xf32> -> vector<128x16xf32>
    %212 = arith.addf %205, %211 : vector<128x16xf32>
    %c0_235 = arith.constant 0 : index
    %c0_236 = arith.constant 0 : index
    %213 = vector.load %arg5[%c0_235, %c0_236] : memref<1x16xf32, #tpu.memory_space<vmem>>, vector<1x16xf32>
    %214 = vector.broadcast %213 : vector<1x16xf32> to vector<128x16xf32>
    %215 = arith.addf %212, %214 : vector<128x16xf32>
    %cst_237 = arith.constant 0.000000e+00 : f32
    %216 = vector.broadcast %cst_237 : f32 to vector<128x16xf32>
    %217 = arith.maximumf %215, %216 : vector<128x16xf32>
    %218 = vector.extract_strided_slice %31 {offsets = [0, 0], sizes = [128, 8], strides = [1, 1]} : vector<128x24xf32> to vector<128x8xf32>
    %219 = vector.extract_strided_slice %31 {offsets = [0, 16], sizes = [128, 8], strides = [1, 1]} : vector<128x24xf32> to vector<128x8xf32>
    %cst_238 = arith.constant 0.000000e+00 : f32
    %220 = vector.broadcast %cst_238 : f32 to vector<128x96xf32>
    %221 = tpu.concatenate %218, %217, %219, %220 in 1 : vector<128x8xf32>, vector<128x16xf32>, vector<128x8xf32>, vector<128x96xf32> -> vector<128x128xf32>
    %c0_239 = arith.constant 0 : index
    %c0_240 = arith.constant 0 : index
    %222 = vector.load %arg6[%c0_239, %c0_240] : memref<128x128xf32, #tpu.memory_space<vmem>>, vector<128x128xf32>
    tpu.vector_store %arg6[%c0_239, %c0_240], %221 {strides = array<i32>} : memref<128x128xf32, #tpu.memory_space<vmem>>, vector<128x128xf32>,
    return
  }
  func.func @transform_0(%arg0: i32) -> (i32, i32, i32, i32) {
    %c0_i32 = arith.constant 0 : i32
    %c0_i32_0 = arith.constant 0 : i32
    %c0_i32_1 = arith.constant 0 : i32
    %c0_i32_2 = arith.constant 0 : i32
    %c0_i32_3 = arith.constant 0 : i32
    return %c0_i32, %c0_i32_0, %c0_i32_1, %c0_i32_2 : i32, i32, i32, i32
  }
  func.func @transform_1(%arg0: i32) -> (i32, i32) {
    %c0_i32 = arith.constant 0 : i32
    %c0_i32_0 = arith.constant 0 : i32
    %c0_i32_1 = arith.constant 0 : i32
    return %c0_i32, %c0_i32_0 : i32, i32
  }
  func.func @transform_2(%arg0: i32) -> (i32, i32) {
    %c0_i32 = arith.constant 0 : i32
    %c0_i32_0 = arith.constant 0 : i32
    %c0_i32_1 = arith.constant 0 : i32
    return %c0_i32, %c0_i32_0 : i32, i32
  }
  func.func @transform_3(%arg0: i32) -> (i32, i32, i32) {
    %c0_i32 = arith.constant 0 : i32
    %c0_i32_0 = arith.constant 0 : i32
    %c0_i32_1 = arith.constant 0 : i32
    %c0_i32_2 = arith.constant 0 : i32
    return %c0_i32, %c0_i32_0, %c0_i32_1 : i32, i32, i32
  }
  func.func @transform_4(%arg0: i32) -> (i32, i32) {
    %c0_i32 = arith.constant 0 : i32
    %c0_i32_0 = arith.constant 0 : i32
    %c0_i32_1 = arith.constant 0 : i32
    return %c0_i32, %c0_i32_0 : i32, i32
  }
  func.func @transform_5(%arg0: i32) -> (i32, i32) {
    %c0_i32 = arith.constant 0 : i32
    %c0_i32_0 = arith.constant 0 : i32
    %c0_i32_1 = arith.constant 0 : i32
    return %c0_i32, %c0_i32_0 : i32, i32
  }
}

</mosaic_0001>

<bundles_post_ra>
// kernel: inception_forward.1
= control target key start
LH: loop header
LB: loop body
LE: loop exit
PB: predicated region body
PF: predicated region fallthrough
CT: control target
= control target key end

     0   :  { %vm38_vm0 = vcmask 31744   ;;  %vm40_vm1 = vcmask 25600   ;;  %v4182_v0 = vmov -inf   ;;  %s6372_s0 = inlined_call_operand.vmem [shape: f32[2,8,8,4], index: 0, kind: input, shape index: {}]   ;;  %s6373_s1 = inlined_call_operand.vmem [shape: bf16[8,24], index: 1, kind: input, shape index: {}]   ;;  %s6374_s2 = inlined_call_operand.vmem [shape: f32[1,24], index: 2, kind: input, shape index: {}]   ;;  %s6375_s3 = inlined_call_operand.vmem [shape: bf16[25,8,16], index: 3, kind: input, shape index: {}]   ;;  %s6376_s4 = inlined_call_operand.vmem [shape: f32[1,16], index: 4, kind: input, shape index: {}]   ;;  %s6377_s5 = inlined_call_operand.hbm [shape: f32[128,128], index: 5, kind: output, shape index: {}]  }
   0x1   :  { %60 = vst.msk [vmem:[#allocation2 + $0xa0] sm:$0xff] %vm38_vm0, %v4182_v0 }
   0x2   :  { %61 = vst.msk [vmem:[#allocation2 + $0xa8] sm:$0x3] %vm40_vm1, %v4182_v0 }
   0x3   :  { %62 = vst.msk [vmem:[#allocation2 + $0xb0] sm:$0xff] %vm38_vm0, %v4182_v0 }
   0x4   :  { %10 = vsyncpa [#allocation5], 0  ;;  %63 = vst.msk [vmem:[#allocation2 + $0xb8] sm:$0x3] %vm40_vm1, %v4182_v0  ;;  %v4232_v1 = vld [vmem:[%s6372_s0 + $0x40] sm:$0xff]  ;;  %v4239_v2 = vld [vmem:[%s6372_s0 + $0x48] sm:$0xff] }
   0x5   :  { %64 = vst.msk [vmem:[#allocation2 + $0xc0] sm:$0xff] %vm38_vm0, %v4182_v0  ;;  %v4246_v3 = vld [vmem:[%s6372_s0 + $0x50] sm:$0xff]  ;;  %s4183_s24 = smov 4   ;;  %v4322_v39 = vld [vmem:[%s6372_s0] sm:$0xff]  ;;  %v4334_v43 = vld [vmem:[%s6372_s0 + $0x8] sm:$0xff]  ;;  %vm528_vm2 = vcmask 1043456  }
   0x6   :  { %65 = vst.msk [vmem:[#allocation2 + $0xc8] sm:$0x3] %vm40_vm1, %v4182_v0  ;;  %v4339_v44 = vld [vmem:[%s6372_s0 + $0x58] sm:$0xff]  ;;  %v4346_v45 = vld [vmem:[%s6372_s0 + $0x10] sm:$0xff]  ;;  %v4356_v50 = vld [vmem:[%s6372_s0 + $0x60] sm:$0xff]  ;;  %vm511_vm3 = vcmask 64512  }
   0x7   :  { %66 = vst.msk [vmem:[#allocation2 + $0xd0] sm:$0xff] %vm38_vm0, %v4182_v0  ;;  %v4363_v51 = vld [vmem:[%s6372_s0 + $0x18] sm:$0xff]  ;;  %v4370_v54 = vld [vmem:[%s6372_s0 + $0x20] sm:$0xff]  ;;  %v4377_v56 = vld [vmem:[%s6372_s0 + $0x68] sm:$0xff]  ;;  %s4184_s26 = smov 120   ;;  %vm598_vm4 = vcmask 60416  }
   0x8   :  { %67 = vst.msk [vmem:[#allocation2 + $0xd8] sm:$0x3] %vm40_vm1, %v4182_v0  ;;  %v105_v4 = vld [vmem:[#allocation2 + $0xa0] sm:$0xff]  ;;  %v4384_v57 = vld [vmem:[%s6372_s0 + $0x70] sm:$0xff]  ;;  %v4391_v58 = vld [vmem:[%s6372_s0 + $0x28] sm:$0xff]  ;;  %s4186_s21 = smov 8  }
   0x9   :  { %89 = vst.msk [vmem:[#allocation2 + $0xb1] sm:$0xff] %vm38_vm0, %v4232_v1  ;;  %v121_v5 = vmax.f32 %v4232_v1, %v105_v4  ;;  %v137_v6 = vld [vmem:[#allocation2 + $0xa1] sm:$0xff]  ;;  %v4400_v63 = vld [vmem:[%s6372_s0 + $0x30] sm:$0xff]  ;;  %vm3811_vm5 = vcmask 195584   ;;  %vm3828_vm6 = vcmask 261120   ;;  %s4187_s29 = smov [#allocation4]  }
   0xa   :  { %90 = vst.msk [vmem:[#allocation2 + $0xc1] sm:$0xff] %vm38_vm0, %v4239_v2  ;;  %v169_v7 = vld [vmem:[#allocation2 + $0xa2] sm:$0xff] }
   0xb   :  { %91 = vst.msk [vmem:[#allocation2 + $0xd1] sm:$0xff] %vm38_vm0, %v4246_v3  ;;  %v153_v8 = vmax.f32 %v121_v5, %v137_v6 }
   0xc   :  { %39 = vst.msk [vmem:[#allocation2] sm:$0xff] %vm38_vm0, %v4182_v0 }
   0xd   :  { %v185_v9 = vmax.f32 %v153_v8, %v169_v7  ;;  %41 = vst.msk [vmem:[#allocation2 + $0x8] sm:$0x3] %vm40_vm1, %v4182_v0 }
   0xe   :  { %42 = vst.msk [vmem:[#allocation2 + $0x10] sm:$0xff] %vm38_vm0, %v4182_v0 }
   0xf   :  { %43 = vst.msk [vmem:[#allocation2 + $0x18] sm:$0x3] %vm40_vm1, %v4182_v0 }
  0x10   :  { %v106_v10 = vld [vmem:[#allocation2 + $0xb0] sm:$0xff]  ;;  %44 = vst.msk [vmem:[#allocation2 + $0x20] sm:$0xff] %vm38_vm0, %v4182_v0 }
  0x11   :  { %v138_v11 = vld [vmem:[#allocation2 + $0xb1] sm:$0xff]  ;;  %v122_v12 = vmax.f32 %v4239_v2, %v106_v10  ;;  %v217_v13 = vmax.f32 %v185_v9, %v106_v10  ;;  %45 = vst.msk [vmem:[#allocation2 + $0x28] sm:$0x3] %vm40_vm1, %v4182_v0  ;;  %v202_v17 = vld [vmem:[#allocation2 + $0xc0] sm:$0xff] }
  0x12   :  { %v170_v14 = vld [vmem:[#allocation2 + $0xb2] sm:$0xff]  ;;  %46 = vst.msk [vmem:[#allocation2 + $0x30] sm:$0xff] %vm38_vm0, %v4182_v0  ;;  %v298_v18 = vld [vmem:[#allocation2 + $0xc1] sm:$0xff]  ;;  %v123_v36 = vmax.f32 %v4246_v3, %v202_v17 }
  0x13   :  { %v154_v15 = vmax.f32 %v122_v12, %v138_v11  ;;  %v249_v16 = vmax.f32 %v217_v13, %v170_v14  ;;  %47 = vst.msk [vmem:[#allocation2 + $0x38] sm:$0x3] %vm40_vm1, %v4182_v0  ;;  %v234_v21 = vld [vmem:[#allocation2 + $0xc2] sm:$0xff]  ;;  %v267_v24 = vld [vmem:[#allocation2 + $0xd0] sm:$0xff] }
  0x14   :  { %48 = vst.msk [vmem:[#allocation2 + $0x40] sm:$0xff] %vm38_vm0, %v4182_v0  ;;  %v299_v27 = vld [vmem:[#allocation2 + $0xd1] sm:$0xff]  ;;  %v97_v38 = vld [vmem:[#allocation2] sm:$0xff]  ;;  %v155_v40 = vmax.f32 %v123_v36, %v298_v18  ;;  %v124_v46 = vmax.f32 %v4339_v44, %v267_v24 }
  0x15   :  { %v186_v19 = vmax.f32 %v154_v15, %v170_v14  ;;  %v282_v20 = vmax.f32 %v249_v16, %v202_v17  ;;  %49 = vst.msk [vmem:[#allocation2 + $0x48] sm:$0x3] %vm40_vm1, %v4182_v0  ;;  %v4290_v29 = vld [vmem:[#allocation2 + $0xd2] sm:$0xff]  ;;  %v113_v41 = vmax.f32 %v4322_v39, %v97_v38  ;;  %v129_v42 = vld [vmem:[#allocation2 + $0x1] sm:$0xff] }
  0x16   :  { %50 = vst.msk [vmem:[#allocation2 + $0x50] sm:$0xff] %vm38_vm0, %v4182_v0  ;;  %v187_v47 = vmax.f32 %v155_v40, %v234_v21  ;;  %v161_v49 = vld [vmem:[#allocation2 + $0x2] sm:$0xff]  ;;  %v156_v52 = vmax.f32 %v124_v46, %v299_v27 }
  0x17   :  { %v218_v22 = vmax.f32 %v186_v19, %v202_v17  ;;  %v314_v23 = vmax.f32 %v282_v20, %v298_v18  ;;  %51 = vst.msk [vmem:[#allocation2 + $0x58] sm:$0x3] %vm40_vm1, %v4182_v0  ;;  %v145_v48 = vmax.f32 %v113_v41, %v129_v42 }
  0x18   :  { %52 = vst.msk [vmem:[#allocation2 + $0x60] sm:$0xff] %vm38_vm0, %v4182_v0  ;;  %v219_v53 = vmax.f32 %v187_v47, %v267_v24  ;;  %v188_v61 = vmax.f32 %v156_v52, %v4290_v29 }
  0x19   :  { %v250_v25 = vmax.f32 %v218_v22, %v234_v21  ;;  %v346_v26 = vmax.f32 %v314_v23, %v234_v21  ;;  %53 = vst.msk [vmem:[#allocation2 + $0x68] sm:$0x3] %vm40_vm1, %v4182_v0  ;;  %v177_v55 = vmax.f32 %v145_v48, %v161_v49 }
  0x1a   :  { %54 = vst.msk [vmem:[#allocation2 + $0x70] sm:$0xff] %vm38_vm0, %v4182_v0  ;;  %v251_v62 = vmax.f32 %v219_v53, %v4290_v29 }
  0x1b   :  { %v283_v28 = vmax.f32 %v250_v25, %v267_v24  ;;  %55 = vst.msk [vmem:[#allocation2 + $0x78] sm:$0x3] %vm40_vm1, %v4182_v0  ;;  %v378_v31 = vpack.c.bf16 %v346_v26, %v346_v26 }
  0x1c   :  { %56 = vst.msk [vmem:[#allocation2 + $0x80] sm:$0xff] %vm38_vm0, %v4182_v0 }
  0x1d   :  { %v315_v30 = vmax.f32 %v283_v28, %v299_v27  ;;  %57 = vst.msk [vmem:[#allocation2 + $0x88] sm:$0x3] %vm40_vm1, %v4182_v0  ;;  %v450_v34 = vunpack.c.l.b16 %v378_v31 }
  0x1e   :  { %58 = vst.msk [vmem:[#allocation2 + $0x90] sm:$0xff] %vm38_vm0, %v4182_v0 }
  0x1f   :  { %v347_v32 = vmax.f32 %v315_v30, %v4290_v29  ;;  %59 = vst.msk [vmem:[#allocation2 + $0x98] sm:$0x3] %vm40_vm1, %v4182_v0 }
  0x20   :  { %68 = vst.msk [vmem:[#allocation2 + $0xe0] sm:$0xff] %vm38_vm0, %v4182_v0 }
  0x21   :  { %v379_v33 = vpack.c.bf16 %v347_v32, %v347_v32  ;;  %69 = vst.msk [vmem:[#allocation2 + $0xe8] sm:$0x3] %vm40_vm1, %v4182_v0 }
  0x22   :  { %70 = vst.msk [vmem:[#allocation2 + $0xf0] sm:$0xff] %vm38_vm0, %v4182_v0 }
  0x23   :  { %v451_v35 = vunpack.c.l.b16 %v379_v33  ;;  %71 = vst.msk [vmem:[#allocation2 + $0xf8] sm:$0x3] %vm40_vm1, %v4182_v0 }
  0x24   :  { %72 = vst.msk [vmem:[#allocation2 + $0x100] sm:$0xff] %vm38_vm0, %v4182_v0 }
  0x25   :  { %v462_v37 = vpack.c.b16 %v451_v35, %v450_v34  ;;  %73 = vst.msk [vmem:[#allocation2 + $0x108] sm:$0x3] %vm40_vm1, %v4182_v0 }
  0x26   :  { %74 = vst.msk [vmem:[#allocation2 + $0x110] sm:$0xff] %vm38_vm0, %v4182_v0 }
  0x27   :  { %474 = vrot.lane.b32.xlu0 %v462_v37, %s4183_s24  ;;  %75 = vst.msk [vmem:[#allocation2 + $0x118] sm:$0x3] %vm40_vm1, %v4182_v0 }
  0x28   :  { %76 = vst.msk [vmem:[#allocation2 + $0x120] sm:$0xff] %vm38_vm0, %v4182_v0 }
  0x29   :  { %77 = vst.msk [vmem:[#allocation2 + $0x128] sm:$0x3] %vm40_vm1, %v4182_v0 }
  0x2a   :  { %78 = vst.msk [vmem:[#allocation2 + $0x130] sm:$0xff] %vm38_vm0, %v4182_v0 }
  0x2b   :  { %79 = vst.msk [vmem:[#allocation2 + $0x138] sm:$0x3] %vm40_vm1, %v4182_v0 }
  0x2c   :  { %81 = vst.msk [vmem:[#allocation2 + $0x11] sm:$0xff] %vm38_vm0, %v4322_v39 }
  0x2d   :  { %82 = vst.msk [vmem:[#allocation2 + $0x21] sm:$0xff] %vm38_vm0, %v4334_v43 }
  0x2e   :  { %83 = vst.msk [vmem:[#allocation2 + $0x31] sm:$0xff] %vm38_vm0, %v4346_v45 }
  0x2f   :  { %92 = vst.msk [vmem:[#allocation2 + $0xe1] sm:$0xff] %vm38_vm0, %v4339_v44 }
  0x30   :  { %93 = vst.msk [vmem:[#allocation2 + $0xf1] sm:$0xff] %vm38_vm0, %v4356_v50 }
  0x31   :  { %84 = vst.msk [vmem:[#allocation2 + $0x41] sm:$0xff] %vm38_vm0, %v4363_v51 }
  0x32   :  { %85 = vst.msk [vmem:[#allocation2 + $0x51] sm:$0xff] %vm38_vm0, %v4370_v54 }
  0x33   :  { %v98_v59 = vld [vmem:[#allocation2 + $0x10] sm:$0xff]  ;;  %94 = vst.msk [vmem:[#allocation2 + $0x101] sm:$0xff] %vm38_vm0, %v4377_v56 }
  0x34   :  { %v130_v60 = vld [vmem:[#allocation2 + $0x11] sm:$0xff]  ;;  %v114_v0 = vmax.f32 %v4334_v43, %v98_v59  ;;  %v194_v4 = vld [vmem:[#allocation2 + $0x20] sm:$0xff]  ;;  %v209_v5 = vmax.f32 %v177_v55, %v98_v59  ;;  %95 = vst.msk [vmem:[#allocation2 + $0x111] sm:$0xff] %vm38_vm0, %v4384_v57 }
  0x35   :  { %v162_v6 = vld [vmem:[#allocation2 + $0x12] sm:$0xff]  ;;  %v290_v8 = vld [vmem:[#allocation2 + $0x21] sm:$0xff]  ;;  %v115_v9 = vmax.f32 %v4346_v45, %v194_v4  ;;  %86 = vst.msk [vmem:[#allocation2 + $0x61] sm:$0xff] %vm38_vm0, %v4391_v58 }
  0x36   :  { %v259_v7 = vld [vmem:[#allocation2 + $0x30] sm:$0xff]  ;;  %v146_v10 = vmax.f32 %v114_v0, %v130_v60  ;;  %v241_v11 = vmax.f32 %v209_v5, %v162_v6  ;;  %v204_v12 = vld [vmem:[#allocation2 + $0xe0] sm:$0xff]  ;;  %87 = vst.msk [vmem:[#allocation2 + $0x71] sm:$0xff] %vm38_vm0, %v4400_v63 }
  0x37   :  { %v236_v13 = vld [vmem:[#allocation2 + $0xe2] sm:$0xff]  ;;  %v116_v15 = vmax.f32 %v4363_v51, %v259_v7  ;;  %v291_v16 = vld [vmem:[#allocation2 + $0x31] sm:$0xff]  ;;  %v220_v17 = vmax.f32 %v188_v61, %v204_v12  ;;  %v284_v19 = vmax.f32 %v251_v62, %v204_v12  ;;  %v147_v20 = vmax.f32 %v115_v9, %v290_v8 }
  0x38   :  { %v300_v14 = vld [vmem:[#allocation2 + $0xe1] sm:$0xff]  ;;  %v269_v18 = vld [vmem:[#allocation2 + $0xf0] sm:$0xff]  ;;  %v125_v21 = vmax.f32 %v4356_v50, %v204_v12  ;;  %v178_v22 = vmax.f32 %v146_v10, %v162_v6  ;;  %v274_v24 = vmax.f32 %v241_v11, %v194_v4 }
  0x39   :  { %v226_v23 = vld [vmem:[#allocation2 + $0x22] sm:$0xff]  ;;  %v148_v25 = vmax.f32 %v116_v15, %v291_v16  ;;  %v126_v26 = vmax.f32 %v4377_v56, %v269_v18  ;;  %v323_v27 = vld [vmem:[#allocation2 + $0x32] sm:$0xff]  ;;  %v252_v28 = vmax.f32 %v220_v17, %v236_v13  ;;  %v316_v30 = vmax.f32 %v284_v19, %v300_v14 }
  0x3a   :  { %v301_v29 = vld [vmem:[#allocation2 + $0xf1] sm:$0xff]  ;;  %v179_v31 = vmax.f32 %v147_v20, %v226_v23  ;;  %v196_v32 = vld [vmem:[#allocation2 + $0x40] sm:$0xff]  ;;  %v157_v33 = vmax.f32 %v125_v21, %v300_v14  ;;  %v210_v34 = vmax.f32 %v178_v22, %v194_v4  ;;  %v306_v35 = vmax.f32 %v274_v24, %v290_v8 }
  0x3b   :  { %v180_v36 = vmax.f32 %v148_v25, %v323_v27  ;;  %v158_v37 = vmax.f32 %v126_v26, %v301_v29  ;;  %v285_v38 = vmax.f32 %v252_v28, %v269_v18  ;;  %v333_v40 = vld [vmem:[#allocation2 + $0xf2] sm:$0xff]  ;;  %v348_v41 = vmax.f32 %v316_v30, %v236_v13  ;;  %v228_v46 = vld [vmem:[#allocation2 + $0x42] sm:$0xff] }
  0x3c   :  { %v211_v42 = vmax.f32 %v179_v31, %v259_v7  ;;  %v189_v47 = vmax.f32 %v157_v33, %v236_v13  ;;  %v4413_v48 = vld [vmem:[#allocation2 + $0x100] sm:$0xff]  ;;  %v242_v49 = vmax.f32 %v210_v34, %v226_v23  ;;  %v338_v52 = vmax.f32 %v306_v35, %v226_v23  ;;  %v261_v62 = vld [vmem:[#allocation2 + $0x50] sm:$0xff] }
  0x3d   :  { %v212_v53 = vmax.f32 %v180_v36, %v196_v32  ;;  %v190_v55 = vmax.f32 %v158_v37, %v333_v40  ;;  %v317_v59 = vmax.f32 %v285_v38, %v301_v29  ;;  %v380_v60 = vpack.c.bf16 %v348_v41, %v348_v41  ;;  %v4415_v4 = vld [vmem:[#allocation2 + $0x102] sm:$0xff]  ;;  %v293_v14 = vld [vmem:[#allocation2 + $0x51] sm:$0xff] }
  0x3e   :  { %v243_v61 = vmax.f32 %v211_v42, %v323_v27  ;;  %v221_v0 = vmax.f32 %v189_v47, %v269_v18  ;;  %v275_v5 = vmax.f32 %v242_v49, %v259_v7  ;;  %v370_v6 = vpack.c.bf16 %v338_v52, %v338_v52  ;;  %v292_v9 = vld [vmem:[#allocation2 + $0x41] sm:$0xff]  ;;  %v4418_v17 = vld [vmem:[#allocation2 + $0x110] sm:$0xff] }
  0x3f   :  { %v244_v8 = vmax.f32 %v212_v53, %v228_v46  ;;  %v222_v10 = vmax.f32 %v190_v55, %v4413_v48  ;;  %v349_v11 = vmax.f32 %v317_v59, %v333_v40  ;;  %v452_v12 = vunpack.c.l.b16 %v380_v60  ;;  %v4421_v22 = vld [vmem:[#allocation2 + $0x101] sm:$0xff]  ;;  %v325_v24 = vld [vmem:[#allocation2 + $0x52] sm:$0xff] }
  0x40   :  { %v276_v13 = vmax.f32 %v243_v61, %v196_v32  ;;  %v253_v15 = vmax.f32 %v221_v0, %v333_v40  ;;  %v307_v19 = vmax.f32 %v275_v5, %v291_v16  ;;  %v442_v20 = vunpack.c.l.b16 %v370_v6  ;;  %v4424_v26 = vld [vmem:[#allocation2 + $0x111] sm:$0xff]  ;;  %v4434_v52 = vld [vmem:[#allocation2 + $0x60] sm:$0xff] }
  0x41   :  { %v277_v21 = vmax.f32 %v244_v8, %v261_v62  ;;  %v254_v18 = vmax.f32 %v222_v10, %v4415_v4  ;;  %v381_v7 = vpack.c.bf16 %v349_v11, %v349_v11  ;;  %v117_v28 = vmax.f32 %v4370_v54, %v196_v32  ;;  %v4430_v36 = vld [vmem:[#allocation2 + $0x112] sm:$0xff]  ;;  %v506_v61 = vld [vmem:[%s6373_s1] sm:$0xf] }
  0x42   :  { %v308_v23 = vmax.f32 %v276_v13, %v292_v9  ;;  %v286_v25 = vmax.f32 %v253_v15, %v4413_v48  ;;  %v339_v29 = vmax.f32 %v307_v19, %v323_v27  ;;  %v118_v16 = vmax.f32 %v4391_v58, %v261_v62  ;;  %v4441_v8 = vld [vmem:[#allocation2 + $0x62] sm:$0xff] }
  0x43   :  { %v309_v30 = vmax.f32 %v277_v21, %v293_v14  ;;  %v287_v31 = vmax.f32 %v254_v18, %v4418_v17  ;;  %v453_v33 = vunpack.c.l.b16 %v381_v7  ;;  %v149_v37 = vmax.f32 %v117_v28, %v292_v9  ;;  %v4452_v7 = vld [vmem:[#allocation2 + $0x71] sm:$0xff] }
  0x44   :  { %v340_v34 = vmax.f32 %v308_v23, %v228_v46  ;;  %v318_v35 = vmax.f32 %v286_v25, %v4421_v22  ;;  %v371_v38 = vpack.c.bf16 %v339_v29, %v339_v29  ;;  %v150_v42 = vmax.f32 %v118_v16, %v293_v14  ;;  %v4444_v14 = vld [vmem:[#allocation2 + $0x70] sm:$0xff] }
  0x45   :  { %v341_v40 = vmax.f32 %v309_v30, %v325_v24  ;;  %v319_v41 = vmax.f32 %v287_v31, %v4424_v26  ;;  %v463_v47 = vpack.c.b16 %v453_v33, %v452_v12  ;;  %v181_v49 = vmax.f32 %v149_v37, %v228_v46  ;;  %v4456_v28 = vld [vmem:[#allocation2 + $0x72] sm:$0xff] }
  0x46   :  { %v372_v32 = vpack.c.bf16 %v340_v34, %v340_v34  ;;  %v350_v27 = vmax.f32 %v318_v35, %v4415_v4  ;;  %v443_v53 = vunpack.c.l.b16 %v371_v38  ;;  %v182_v60 = vmax.f32 %v150_v42, %v325_v24 }
  0x47   :  { %v373_v55 = vpack.c.bf16 %v341_v40, %v341_v40  ;;  %v351_v59 = vmax.f32 %v319_v41, %v4430_v36  ;;  %476 = vrot.lane.b32.xlu1 %v463_v47, %s4183_s24  ;;  %v213_v6 = vmax.f32 %v181_v49, %v261_v62  ;;  %v530_v15 = vsel %vm528_vm2, %v506_v61, 0  ;;  %v4449_v62 = vld [vmem:[#allocation2 + $0x61] sm:$0xff] }
  0x48   :  { %v444_v0 = vunpack.c.l.b16 %v372_v32  ;;  %v382_v5 = vpack.c.bf16 %v350_v27, %v350_v27  ;;  %v458_v46 = vpack.c.b16 %v443_v53, %v442_v20  ;;  %v214_v11 = vmax.f32 %v182_v60, %v4434_v52  ;;  %4111 = vmatpush.bf16.msra.mxu2 %v530_v15  ;;  %539 = vmatpush.bf16.msra.mxu0 %v530_v15 }
  0x49   :  { %v445_v9 = vunpack.c.l.b16 %v373_v55  ;;  %v383_v10 = vpack.c.bf16 %v351_v59, %v351_v59  ;;  %v245_v13 = vmax.f32 %v213_v6, %v325_v24  ;;  %v362_v38 = vpack.c.bf16 %v4232_v1, %v4232_v1 }
  0x4a   :  { %v454_v12 = vunpack.c.l.b16 %v382_v5  ;;  %466 = vrot.lane.b32.xlu0 %v458_v46, %s4183_s24  ;;  %v246_v21 = vmax.f32 %v214_v11, %v4441_v8  ;;  %v363_v40 = vpack.c.bf16 %v4239_v2, %v4239_v2  ;;  %v364_v49 = vpack.c.bf16 %v4246_v3, %v4246_v3 }
  0x4b   :  { %v455_v19 = vunpack.c.l.b16 %v383_v10  ;;  %v459_v18 = vpack.c.b16 %v445_v9, %v444_v0  ;;  %v278_v20 = vmax.f32 %v245_v13, %v4434_v52  ;;  %v410_v41 = vunpack.c.l.b16 %v362_v38  ;;  %v4525_v38 = vld [vmem:[%s6372_s0 + $0x38] sm:$0xff] }
  0x4c   :  { %v279_v24 = vmax.f32 %v246_v21, %v4444_v14  ;;  %v411_v42 = vunpack.c.l.b16 %v363_v40  ;;  %v365_v53 = vpack.c.bf16 %v4339_v44, %v4339_v44  ;;  %v354_v1 = vpack.c.bf16 %v4322_v39, %v4322_v39  ;;  %88 = vst.msk [vmem:[#allocation2 + $0x81] sm:$0xff] %vm38_vm0, %v4525_v38 }
  0x4d   :  { %v464_v23 = vpack.c.b16 %v455_v19, %v454_v12  ;;  %v310_v25 = vmax.f32 %v278_v20, %v4449_v62  ;;  %v355_v2 = vpack.c.bf16 %v4334_v43, %v4334_v43  ;;  %v412_v55 = vunpack.c.l.b16 %v364_v49 }
  0x4e   :  { %v311_v29 = vmax.f32 %v279_v24, %v4452_v7  ;;  %v422_v47 = vpack.c.b16 %v411_v42, %v410_v41  ;;  %v413_v59 = vunpack.c.l.b16 %v365_v53  ;;  %v402_v60 = vunpack.c.l.b16 %v354_v1 }
  0x4f   :  { %478 = vrot.lane.b32.xlu2 %v464_v23, %s4183_s24  ;;  %468 = vrot.lane.b32.xlu1 %v459_v18, %s4183_s24  ;;  %v342_v30 = vmax.f32 %v310_v25, %v4441_v8  ;;  %v403_v61 = vunpack.c.l.b16 %v355_v2  ;;  %v366_v44 = vpack.c.bf16 %v4356_v50, %v4356_v50  ;;  %v367_v39 = vpack.c.bf16 %v4377_v56, %v4377_v56 }
  0x50   :  { %v343_v31 = vmax.f32 %v311_v29, %v4456_v28  ;;  %v423_v0 = vpack.c.b16 %v413_v59, %v412_v55  ;;  %v356_v9 = vpack.c.bf16 %v4346_v45, %v4346_v45  ;;  %v357_v10 = vpack.c.bf16 %v4363_v51, %v4363_v51 }
  0x51   :  { %v374_v16 = vpack.c.bf16 %v342_v30, %v342_v30  ;;  %v418_v5 = vpack.c.b16 %v403_v61, %v402_v60  ;;  %v414_v11 = vunpack.c.l.b16 %v366_v44  ;;  %v415_v12 = vunpack.c.l.b16 %v367_v39 }
  0x52   :  { %v375_v33 = vpack.c.bf16 %v343_v31, %v343_v31  ;;  %v404_v13 = vunpack.c.l.b16 %v356_v9  ;;  %v405_v15 = vunpack.c.l.b16 %v357_v10  ;;  %v358_v45 = vpack.c.bf16 %v4370_v54, %v4370_v54  ;;  %v4503_v31 = vld [vmem:[%s6374_s2] ss:$0 sm:$0xff]  ;;  %s3867_s2 = sshll.u32 %s6377_s5, 4  ;;  %s3868_s2 = int_to_ptr.hbm [resolvable:$true] %s3867_s2 }
  0x53   :  { %v446_v34 = vunpack.c.l.b16 %v374_v16  ;;  %v424_v19 = vpack.c.b16 %v415_v12, %v414_v11  ;;  %v359_v51 = vpack.c.bf16 %v4391_v58, %v4391_v58  ;;  %v127_v40 = vmax.f32 %v4384_v57, %v4413_v48 }
  0x54   :  { %v447_v35 = vunpack.c.l.b16 %v375_v33  ;;  %v419_v50 = vpack.c.b16 %v405_v15, %v404_v13  ;;  %v406_v23 = vunpack.c.l.b16 %v358_v45  ;;  %v119_v2 = vmax.f32 %v4400_v63, %v4434_v52 }
  0x55   :  { %v407_v24 = vunpack.c.l.b16 %v359_v51  ;;  %v159_v42 = vmax.f32 %v127_v40, %v4421_v22  ;;  %v120_v48 = vmax.f32 %v4525_v38, %v4444_v14  ;;  %v337_v51 = vld [vmem:[#allocation2 + $0x132] sm:$0xff] }
  0x56   :  { %v460_v37 = vpack.c.b16 %v447_v35, %v446_v34  ;;  %v4514_v35 = vld [vmem:[%s6372_s0 + $0x78] sm:$0xff]  ;;  %v151_v61 = vmax.f32 %v119_v2, %v4449_v62  ;;  %s3865_s0 = sshll.u32 %s4187_s29, 4  ;;  %s3866_s0 = int_to_ptr.vmem [resolvable:$true] %s3865_s0 }
  0x57   :  { %v420_v25 = vpack.c.b16 %v407_v24, %v406_v23  ;;  %96 = vst.msk [vmem:[#allocation2 + $0x121] sm:$0xff] %vm38_vm0, %v4514_v35  ;;  %v128_v41 = vmax.f32 %v4514_v35, %v4418_v17  ;;  %v265_v23 = vld [vmem:[#allocation2 + $0x90] sm:$0xff] }
  0x58   :  { %470 = vrot.lane.b32.xlu2 %v460_v37, %s4183_s24  ;;  %v183_v44 = vmax.f32 %v151_v61, %v4441_v8  ;;  %v305_v8 = vld [vmem:[#allocation2 + $0x131] sm:$0xff] }
  0x59   :  { %v297_v40 = vld [vmem:[#allocation2 + $0x91] sm:$0xff] }
  0x5a   :  { %v215_v12 = vmax.f32 %v183_v44, %v4444_v14 }
  0x5e   :  { %v208_v1 = vld [vmem:[#allocation2 + $0x120] sm:$0xff] }
  0x99   :  { %v475_v32 = vpop.permute.xlu0 %474 }
  0x9a   :  { %v496_v27 = vsel %vm38_vm0, %v422_v47, %v475_v32  ;;  %v160_v47 = vmax.f32 %v128_v41, %v4424_v26 }
  0x9b   :  { %3883 = vmatmul.msk.bf16.vlgmr.msra.gmra.mxu2 %vm511_vm3, %v496_v27  ;;  %v191_v27 = vmax.f32 %v159_v42, %v4415_v4  ;;  %v240_v4 = vld [vmem:[#allocation2 + $0x122] sm:$0xff] }
  0x9c   :  { %v192_v49 = vmax.f32 %v160_v47, %v4430_v36 }
  0x9d   :  { %v223_v26 = vmax.f32 %v191_v27, %v4418_v17 }
  0x9e   :  { %v224_v60 = vmax.f32 %v192_v49, %v208_v1 }
  0xa9   :  { %v479_v21 = vpop.permute.xlu2 %478 }
  0xaa   :  { %v502_v56 = vsel %vm38_vm0, %v424_v19, %v479_v21  ;;  %v232_v19 = vld [vmem:[#allocation2 + $0x82] sm:$0xff]  ;;  %v4185_v21 = vmov 0.0  }
  0xab   :  { %602 = vst.msk [vmem:[#allocation3 + $0x20] sm:$0xff] %vm511_vm3, %v4185_v21 }
  0xac   :  { %603 = vst.msk [vmem:[#allocation3 + $0x28] sm:$0xf] %vm598_vm4, %v4185_v21 }
  0xad   :  { %597 = vst.msk [vmem:[#allocation3] sm:$0xff] %vm511_vm3, %v4185_v21 }
  0xae   :  { %599 = vst.msk [vmem:[#allocation3 + $0x8] sm:$0xf] %vm598_vm4, %v4185_v21 }
  0xaf   :  { %600 = vst.msk [vmem:[#allocation3 + $0x10] sm:$0xff] %vm511_vm3, %v4185_v21 }
  0xb0   :  { %601 = vst.msk [vmem:[#allocation3 + $0x18] sm:$0xf] %vm598_vm4, %v4185_v21 }
  0xb1   :  { %604 = vst.msk [vmem:[#allocation3 + $0x30] sm:$0xff] %vm511_vm3, %v4185_v21 }
  0xb2   :  { %v471_v29 = vpop.permute.xlu2 %470  ;;  %605 = vst.msk [vmem:[#allocation3 + $0x38] sm:$0xf] %vm598_vm4, %v4185_v21 }
  0xb3   :  { %v490_v30 = vsel %vm38_vm0, %v420_v25, %v471_v29  ;;  %606 = vst.msk [vmem:[#allocation3 + $0x40] sm:$0xff] %vm511_vm3, %v4185_v21 }
  0xb4   :  { %607 = vst.msk [vmem:[#allocation3 + $0x48] sm:$0xf] %vm598_vm4, %v4185_v21 }
  0xb5   :  { %608 = vst.msk [vmem:[#allocation3 + $0x50] sm:$0xff] %vm511_vm3, %v4185_v21 }
  0xb6   :  { %609 = vst.msk [vmem:[#allocation3 + $0x58] sm:$0xf] %vm598_vm4, %v4185_v21 }
  0xb7   :  { %610 = vst.msk [vmem:[#allocation3 + $0x60] sm:$0xff] %vm511_vm3, %v4185_v21 }
  0xb8   :  { %611 = vst.msk [vmem:[#allocation3 + $0x68] sm:$0xf] %vm598_vm4, %v4185_v21 }
  0xb9   :  { %v477_v6 = vpop.permute.xlu1 %476  ;;  %612 = vst.msk [vmem:[#allocation3 + $0x70] sm:$0xff] %vm511_vm3, %v4185_v21 }
  0xba   :  { %v499_v46 = vsel %vm38_vm0, %v423_v0, %v477_v6  ;;  %v152_v0 = vmax.f32 %v120_v48, %v4452_v7  ;;  %v255_v6 = vmax.f32 %v223_v26, %v4430_v36  ;;  %v304_v36 = vld [vmem:[#allocation2 + $0x121] sm:$0xff]  ;;  %613 = vst.msk [vmem:[#allocation3 + $0x78] sm:$0xf] %vm598_vm4, %v4185_v21 }
  0xbb   :  { %3884 = vmatmul.msk.bf16.gmra.mxu2 %vm511_vm3, %v499_v46  ;;  %v256_v46 = vmax.f32 %v224_v60, %v240_v4  ;;  %614 = vst.msk [vmem:[#allocation3 + $0x80] sm:$0xff] %vm511_vm3, %v4185_v21 }
  0xbc   :  { %v467_v3 = vpop.permute.xlu0 %466  ;;  %v184_v39 = vmax.f32 %v152_v0, %v4456_v28  ;;  %v288_v10 = vmax.f32 %v255_v6, %v208_v1  ;;  %615 = vst.msk [vmem:[#allocation3 + $0x88] sm:$0xf] %vm598_vm4, %v4185_v21 }
  0xbd   :  { %v484_v43 = vsel %vm38_vm0, %v418_v5, %v467_v3  ;;  %v273_v3 = vld [vmem:[#allocation2 + $0x130] sm:$0xff]  ;;  %616 = vst.msk [vmem:[#allocation3 + $0x90] sm:$0xff] %vm511_vm3, %v4185_v21 }
  0xbe   :  { %3879 = vmatmul.msk.bf16.vlgmr.msra.gmra.mxu0 %vm511_vm3, %v484_v43  ;;  %v200_v43 = vld [vmem:[#allocation2 + $0x80] sm:$0xff]  ;;  %v289_v11 = vmax.f32 %v256_v46, %v273_v3  ;;  %617 = vst.msk [vmem:[#allocation3 + $0x98] sm:$0xf] %vm598_vm4, %v4185_v21 }
  0xbf   :  { %v216_v13 = vmax.f32 %v184_v39, %v200_v43  ;;  %618 = vst.msk [vmem:[#allocation3 + $0xa0] sm:$0xff] %vm511_vm3, %v4185_v21 }
  0xc0   :  { %619 = vst.msk [vmem:[#allocation3 + $0xa8] sm:$0xf] %vm598_vm4, %v4185_v21 }
  0xc1   :  { %v469_v18 = vpop.permute.xlu1 %468  ;;  %v248_v45 = vmax.f32 %v216_v13, %v232_v19  ;;  %620 = vst.msk [vmem:[#allocation3 + $0xb0] sm:$0xff] %vm511_vm3, %v4185_v21 }
  0xc2   :  { %v487_v20 = vsel %vm38_vm0, %v419_v50, %v469_v18  ;;  %v320_v18 = vmax.f32 %v288_v10, %v304_v36  ;;  %621 = vst.msk [vmem:[#allocation3 + $0xb8] sm:$0xf] %vm598_vm4, %v4185_v21  ;;  %v3887_v10 = vld [vmem:[%s6375_s3 + $0x4] sm:$0xf]  ;;  %v4701_v36 = vld [vmem:[#allocation3 + $0x11] sm:$0xff] }
  0xc3   :  { %622 = vst.msk [vmem:[#allocation3 + $0xc0] sm:$0xff] %vm511_vm3, %v4185_v21 }
  0xc4   :  { %623 = vst.msk [vmem:[#allocation3 + $0xc8] sm:$0xf] %vm598_vm4, %v4185_v21 }
  0xc5   :  { %624 = vst.msk [vmem:[#allocation3 + $0xd0] sm:$0xff] %vm511_vm3, %v4185_v21 }
  0xc6   :  { %625 = vst.msk [vmem:[#allocation3 + $0xd8] sm:$0xf] %vm598_vm4, %v4185_v21 }
  0xc7   :  { %626 = vst.msk [vmem:[#allocation3 + $0xe0] sm:$0xff] %vm511_vm3, %v4185_v21 }
  0xc8   :  { %627 = vst.msk [vmem:[#allocation3 + $0xe8] sm:$0xf] %vm598_vm4, %v4185_v21 }
  0xc9   :  { %628 = vst.msk [vmem:[#allocation3 + $0xf0] sm:$0xff] %vm511_vm3, %v4185_v21 }
  0xca   :  { %629 = vst.msk [vmem:[#allocation3 + $0xf8] sm:$0xf] %vm598_vm4, %v4185_v21 }
  0xcb   :  { %3885 = vmatmul.msk.bf16.gmra.mxu2 %vm511_vm3, %v502_v56  ;;  %v321_v56 = vmax.f32 %v289_v11, %v305_v8  ;;  %630 = vst.msk [vmem:[#allocation3 + $0x100] sm:$0xff] %vm511_vm3, %v4185_v21  ;;  %v803_v11 = vsel %vm528_vm2, %v3887_v10, 0  ;;  %v752_v8 = vld [vmem:[#allocation3 + $0x1] sm:$0xff] }
  0xcc   :  { %631 = vst.msk [vmem:[#allocation3 + $0x108] sm:$0xf] %vm598_vm4, %v4185_v21  ;;  %4112 = vmatpush.bf16.msra.mxu3 %v803_v11  ;;  %812 = vmatpush.bf16.msra.mxu1 %v803_v11 }
  0xcd   :  { %632 = vst.msk [vmem:[#allocation3 + $0x110] sm:$0xff] %vm511_vm3, %v4185_v21  ;;  %v4703_v13 = vld [vmem:[#allocation3 + $0xd1] sm:$0xff] }
  0xce   :  { %3880 = vmatmul.msk.bf16.gmra.mxu0 %vm511_vm3, %v487_v20  ;;  %v247_v20 = vmax.f32 %v215_v12, %v4456_v28  ;;  %v353_v28 = vmax.f32 %v321_v56, %v337_v51  ;;  %633 = vst.msk [vmem:[#allocation3 + $0x118] sm:$0xf] %vm598_vm4, %v4185_v21  ;;  %v760_v12 = vld [vmem:[#allocation3 + $0xc1] sm:$0xff]  ;;  %v4718_v51 = vld [vmem:[#allocation3 + $0x13] sm:$0xff] }
  0xcf   :  { %634 = vst.msk [vmem:[#allocation3 + $0x120] sm:$0xff] %vm511_vm3, %v4185_v21 }
  0xd0   :  { %635 = vst.msk [vmem:[#allocation3 + $0x128] sm:$0xf] %vm598_vm4, %v4185_v21 }
  0xd1   :  { %636 = vst.msk [vmem:[#allocation3 + $0x130] sm:$0xff] %vm511_vm3, %v4185_v21 }
  0xd2   :  { %637 = vst.msk [vmem:[#allocation3 + $0x138] sm:$0xf] %vm598_vm4, %v4185_v21 }
  0xd3   :  { %638 = vst.msk [vmem:[#allocation3 + $0x140] sm:$0xff] %vm511_vm3, %v4185_v21 }
  0xd4   :  { %639 = vst.msk [vmem:[#allocation3 + $0x148] sm:$0xf] %vm598_vm4, %v4185_v21 }
  0xd5   :  { %640 = vst.msk [vmem:[#allocation3 + $0x150] sm:$0xff] %vm511_vm3, %v4185_v21 }
  0xd6   :  { %641 = vst.msk [vmem:[#allocation3 + $0x158] sm:$0xf] %vm598_vm4, %v4185_v21 }
  0xd7   :  { %642 = vst.msk [vmem:[#allocation3 + $0x160] sm:$0xff] %vm511_vm3, %v4185_v21 }
  0xd8   :  { %643 = vst.msk [vmem:[#allocation3 + $0x168] sm:$0xf] %vm598_vm4, %v4185_v21 }
  0xd9   :  { %644 = vst.msk [vmem:[#allocation3 + $0x170] sm:$0xff] %vm511_vm3, %v4185_v21 }
  0xda   :  { %645 = vst.msk [vmem:[#allocation3 + $0x178] sm:$0xf] %vm598_vm4, %v4185_v21 }
  0xdb   :  { %6508 = vst [vmem:[#allocation19_spill] sm:$0xff] %v4703_v13 }
  0xde   :  { %3881 = vmatmul.msk.bf16.gmra.mxu0 %vm511_vm3, %v490_v30  ;;  %v352_v30 = vmax.f32 %v320_v18, %v240_v4 }
  0xe0   :  { %v384_v42 = vpack.c.bf16 %v352_v30, %v352_v30 }
 0x11e   :  { %v561_v16 = vpop.f32.mrf.mxu2 }
 0x11f   :  { %v562_v33 = vadd.f32 %v4503_v31, %v561_v16  ;;  %v280_v16 = vmax.f32 %v247_v20, %v200_v43 }
 0x121   :  { %v4506_v54 = vmax.f32 %v562_v33, 0.0  ;;  %v281_v33 = vmax.f32 %v248_v45, %v265_v23  ;;  %v4716_v45 = vld [vmem:[#allocation3 + $0x10] sm:$0xff] }
 0x122   :  { %v4720_v23 = vld [vmem:[#allocation3 + $0x12] sm:$0xff] }
 0x123   :  { %6496 = vst [vmem:[#allocation7_spill] sm:$0xff] %v4506_v54  ;;  %678 = vrot.lane.b32.xlu0 %v4506_v54, %s4184_s26  ;;  %v313_v49 = vmax.f32 %v281_v33, %v297_v40 }
 0x126   :  { %v563_v58 = vpop.f32.mrf.mxu2 }
 0x127   :  { %v564_v34 = vadd.f32 %v4503_v31, %v563_v58 }
 0x129   :  { %v4518_v37 = vmax.f32 %v564_v34, 0.0  ;;  %v296_v34 = vld [vmem:[#allocation2 + $0x81] sm:$0xff] }
 0x12a   :  { %v312_v27 = vmax.f32 %v280_v16, %v296_v34 }
 0x12b   :  { %6497 = vst [vmem:[#allocation8_spill] sm:$0xff] %v4518_v37  ;;  %680 = vrot.lane.b32.xlu1 %v4518_v37, %s4184_s26 }
 0x12c   :  { %v344_v26 = vmax.f32 %v312_v27, %v232_v19  ;;  %v772_v19 = vpack.c.bf16 %v4703_v13, %v760_v12 }
 0x12e   :  { %v376_v6 = vpack.c.bf16 %v344_v26, %v344_v26  ;;  %3892 = vmatmul.msk.bf16.vlgmr.msra.gmra.mxu3 %vm511_vm3, %v772_v19 }
 0x130   :  { %v448_v3 = vunpack.c.l.b16 %v376_v6 }
 0x13b   :  { %v541_v32 = vpop.f32.mrf.mxu0 }
 0x13c   :  { %v542_v53 = vadd.f32 %v4503_v31, %v541_v32  ;;  %v385_v32 = vpack.c.bf16 %v353_v28, %v353_v28 }
 0x13e   :  { %v4542_v55 = vmax.f32 %v542_v53, 0.0  ;;  %v566_v59 = vpop.f32.mrf.mxu2  ;;  %v329_v53 = vld [vmem:[#allocation2 + $0x92] sm:$0xff] }
 0x13f   :  { %v567_v22 = vadd.f32 %v4503_v31, %v566_v59  ;;  %v456_v59 = vunpack.c.l.b16 %v384_v42  ;;  %v345_v60 = vmax.f32 %v313_v49, %v329_v53 }
 0x140   :  { %6498 = vst [vmem:[#allocation9_spill] sm:$0xff] %v4542_v55  ;;  %662 = vrot.lane.b32.xlu2 %v4542_v55, %s4184_s26 }
 0x141   :  { %v4550_v52 = vmax.f32 %v567_v22, 0.0  ;;  %v457_v22 = vunpack.c.l.b16 %v385_v32  ;;  %v377_v46 = vpack.c.bf16 %v345_v60, %v345_v60 }
 0x143   :  { %6499 = vst [vmem:[#allocation10_spill] sm:$0xff] %v4550_v52  ;;  %v543_v5 = vpop.f32.mrf.mxu0  ;;  %682 = vrot.lane.b32.xlu1 %v4550_v52, %s4184_s26  ;;  %v465_v0 = vpack.c.b16 %v457_v22, %v456_v59  ;;  %v449_v44 = vunpack.c.l.b16 %v377_v46 }
 0x144   :  { %v544_v17 = vadd.f32 %v4503_v31, %v543_v5 }
 0x145   :  { %v461_v43 = vpack.c.b16 %v449_v44, %v448_v3 }
 0x146   :  { %v4558_v62 = vmax.f32 %v544_v17, 0.0  ;;  %v568_v7 = vpop.f32.mrf.mxu2 }
 0x147   :  { %v569_v9 = vadd.f32 %v4503_v31, %v568_v7 }
 0x148   :  { %6500 = vst [vmem:[#allocation11_spill] sm:$0xff] %v4558_v62  ;;  %664 = vrot.lane.b32.xlu0 %v4558_v62, %s4184_s26 }
 0x149   :  { %v4564_v15 = vmax.f32 %v569_v9, 0.0 }
 0x14b   :  { %6501 = vst [vmem:[#allocation12_spill] sm:$0xff] %v4564_v15  ;;  %v546_v50 = vpop.f32.mrf.mxu0  ;;  %684 = vrot.lane.b32.xlu2 %v4564_v15, %s4184_s26  ;;  %v727_v15 = vld [vmem:[#allocation3] sm:$0xff] }
 0x14c   :  { %v547_v14 = vadd.f32 %v4503_v31, %v546_v50  ;;  %v768_v50 = vpack.c.bf16 %v4701_v36, %v752_v8 }
 0x14e   :  { %v4580_v24 = vmax.f32 %v547_v14, 0.0  ;;  %v571_v25 = vpop.f32.mrf.mxu2  ;;  %3888 = vmatmul.msk.bf16.vlgmr.msra.gmra.mxu1 %vm511_vm3, %v768_v50 }
 0x14f   :  { %v572_v29 = vadd.f32 %v4503_v31, %v571_v25  ;;  %v4722_v25 = vld [vmem:[#allocation3 + $0x14] sm:$0xff] }
 0x150   :  { %6502 = vst [vmem:[#allocation13_spill] sm:$0xff] %v4580_v24  ;;  %666 = vrot.lane.b32.xlu0 %v4580_v24, %s4184_s26 }
 0x151   :  { %v4591_v58 = vmax.f32 %v572_v29, 0.0  ;;  %6510 = vst [vmem:[#allocation21_spill] sm:$0xff] %v4722_v25 }
 0x153   :  { %6503 = vst [vmem:[#allocation14_spill] sm:$0xff] %v4591_v58  ;;  %v548_v41 = vpop.f32.mrf.mxu0  ;;  %686 = vrot.lane.b32.xlu2 %v4591_v58, %s4184_s26 }
 0x154   :  { %v549_v47 = vadd.f32 %v4503_v31, %v548_v41 }
 0x156   :  { %v4606_v1 = vmax.f32 %v549_v47, 0.0  ;;  %v573_v2 = vpop.f32.mrf.mxu2 }
 0x157   :  { %v574_v48 = vadd.f32 %v4503_v31, %v573_v2  ;;  %v751_v2 = vld [vmem:[%s6375_s3] sm:$0xf] }
 0x158   :  { %6504 = vst [vmem:[#allocation15_spill] sm:$0xff] %v4606_v1  ;;  %668 = vrot.lane.b32.xlu1 %v4606_v1, %s4184_s26  ;;  %v879_v59 = vsel %vm528_vm2, %v751_v2, 0 }
 0x159   :  { %v4617_v4 = vmax.f32 %v574_v48, 0.0  ;;  %888 = vmatpush.bf16.msrb.mxu2 %v879_v59  ;;  %v3922_v59 = vld [vmem:[%s6375_s3 + $0x10] sm:$0xf] }
 0x15a   :  { %v1217_v19 = vsel %vm528_vm2, %v3922_v59, 0 }
 0x15b   :  { %6505 = vst [vmem:[#allocation16_spill] sm:$0xff] %v4617_v4  ;;  %v551_v61 = vpop.f32.mrf.mxu0  ;;  %688 = vrot.lane.b32.xlu0 %v4617_v4, %s4184_s26  ;;  %1226 = vmatpush.bf16.msrb.mxu1 %v1217_v19 }
 0x15c   :  { %v552_v5 = vadd.f32 %v4503_v31, %v551_v61 }
 0x15e   :  { %v4632_v17 = vmax.f32 %v552_v5, 0.0 }
 0x160   :  { %6506 = vst [vmem:[#allocation17_spill] sm:$0xff] %v4632_v17  ;;  %480 = vrot.lane.b32.xlu1 %v465_v0, %s4183_s24  ;;  %670 = vrot.lane.b32.xlu2 %v4632_v17, %s4184_s26  ;;  %v3904_v0 = vld [vmem:[%s6375_s3 + $0x8] sm:$0xf] }
 0x163   :  { %v553_v39 = vpop.f32.mrf.mxu0 }
 0x164   :  { %v554_v7 = vadd.f32 %v4503_v31, %v553_v39  ;;  %v981_v39 = vsel %vm528_vm2, %v3904_v0, 0 }
 0x165   :  { %990 = vmatpush.bf16.msrb.mxu3 %v981_v39 }
 0x166   :  { %v4654_v9 = vmax.f32 %v554_v7, 0.0 }
 0x168   :  { %6507 = vst [vmem:[#allocation18_spill] sm:$0xff] %v4654_v9  ;;  %472 = vrot.lane.b32.xlu1 %v461_v43, %s4183_s24  ;;  %672 = vrot.lane.b32.xlu0 %v4654_v9, %s4184_s26  ;;  %s4188_s24 = smov 128  }
 0x195   :  { %v679_v21 = vpop.permute.xlu0 %678 }
 0x196   :  { %719 = vst.msk [vmem:[#allocation3 + $0xe2] sm:$0xff] %vm511_vm3, %v679_v21 }
 0x19a   :  { %v663_v18 = vpop.permute.xlu2 %662 }
 0x19b   :  { %711 = vst.msk [vmem:[#allocation3 + $0x22] sm:$0xff] %vm511_vm3, %v663_v18 }
 0x19d   :  { %v681_v14 = vpop.permute.xlu1 %680  ;;  %v4711_v56 = vld [vmem:[#allocation3 + $0xe1] sm:$0xff] }
 0x19e   :  { %6509 = vst [vmem:[#allocation20_spill] sm:$0xff] %v4711_v56 }
 0x19f   :  { %720 = vst.msk [vmem:[#allocation3 + $0xf2] sm:$0xff] %vm511_vm3, %v681_v14 }
 0x1a2   :  { %v4724_v29 = vld [vmem:[#allocation3 + $0x21] sm:$0xff] }
 0x1a3   :  { %v4726_v30 = vld [vmem:[#allocation3 + $0x20] sm:$0xff] }
 0x1a4   :  { %v4728_v28 = vld [vmem:[#allocation3 + $0x23] sm:$0xff] }
 0x1a5   :  { %v4730_v16 = vld [vmem:[#allocation3 + $0x22] sm:$0xff]  ;;  %v685_v32 = vpop.permute.xlu2 %684 }
 0x1a6   :  { %v4732_v33 = vld [vmem:[#allocation3 + $0x24] sm:$0xff]  ;;  %v4744_v27 = vld [vmem:[#allocation3 + $0xf1] sm:$0xff]  ;;  %722 = vst.msk [vmem:[#allocation3 + $0x112] sm:$0xff] %vm511_vm3, %v685_v32 }
 0x1a7   :  { %6511 = vst [vmem:[#allocation22_spill] sm:$0xff] %v4732_v33  ;;  %v773_v49 = vpack.c.bf16 %v4744_v27, %v4711_v56  ;;  %v4822_v32 = vld [vmem:[#allocation3 + $0xf0] sm:$0xff] }
 0x1a8   :  { %6512 = vst [vmem:[#allocation23_spill] sm:$0xff] %v4744_v27  ;;  %v4828_v8 = vld [vmem:[#allocation3 + $0xf3] sm:$0xff] }
 0x1a9   :  { %3893 = vmatmul.msk.bf16.gmra.mxu3 %vm511_vm3, %v773_v49  ;;  %v3913_v49 = vld [vmem:[%s6375_s3 + $0xc] sm:$0xf]  ;;  %6532 = vst [vmem:[#allocation43_spill] sm:$0xff] %v4828_v8  ;;  %v4836_v10 = vld [vmem:[#allocation3 + $0xf2] sm:$0xff] }
 0x1aa   :  { %v1099_v0 = vsel %vm528_vm2, %v3913_v49, 0  ;;  %v4857_v4 = vld [vmem:[#allocation3 + $0xf0] sm:$0xff] }
 0x1ab   :  { %1108 = vmatpush.bf16.msrb.mxu0 %v1099_v0  ;;  %6538 = vst [vmem:[#allocation49_spill] sm:$0xff] %v4857_v4  ;;  %v4859_v49 = vld [vmem:[#allocation3 + $0xf1] sm:$0xff] }
 0x1ac   :  { %6539 = vst [vmem:[#allocation50_spill] sm:$0xff] %v4859_v49  ;;  %v4863_v59 = vld [vmem:[#allocation3 + $0xf2] sm:$0xff] }
 0x1ad   :  { %v687_v53 = vpop.permute.xlu2 %686  ;;  %v4754_v48 = vld [vmem:[#allocation3 + $0x111] sm:$0xff]  ;;  %6541 = vst [vmem:[#allocation52_spill] sm:$0xff] %v4863_v59 }
 0x1ae   :  { %723 = vst.msk [vmem:[#allocation3 + $0x122] sm:$0xff] %vm511_vm3, %v687_v53  ;;  %v4757_v22 = vld [vmem:[#allocation3 + $0x110] sm:$0xff] }
 0x1af   :  { %6513 = vst [vmem:[#allocation24_spill] sm:$0xff] %v4754_v48  ;;  %v4759_v26 = vld [vmem:[#allocation3 + $0x113] sm:$0xff] }
 0x1b0   :  { %6514 = vst [vmem:[#allocation25_spill] sm:$0xff] %v4757_v22  ;;  %v4761_v60 = vld [vmem:[#allocation3 + $0x112] sm:$0xff] }
 0x1b1   :  { %6515 = vst [vmem:[#allocation26_spill] sm:$0xff] %v4759_v26  ;;  %v4770_v46 = vld [vmem:[#allocation3 + $0x110] sm:$0xff] }
 0x1b2   :  { %6516 = vst [vmem:[#allocation27_spill] sm:$0xff] %v4761_v60  ;;  %v4772_v3 = vld [vmem:[#allocation3 + $0x111] sm:$0xff] }
 0x1b3   :  { %6519 = vst [vmem:[#allocation30_spill] sm:$0xff] %v4770_v46  ;;  %v4774_v44 = vld [vmem:[#allocation3 + $0x112] sm:$0xff] }
 0x1b4   :  { %6520 = vst [vmem:[#allocation31_spill] sm:$0xff] %v4772_v3  ;;  %v4786_v12 = vld [vmem:[#allocation3 + $0x114] sm:$0xff] }
 0x1b5   :  { %v683_v61 = vpop.permute.xlu1 %682  ;;  %v4766_v5 = vld [vmem:[#allocation3 + $0x121] sm:$0xff]  ;;  %6521 = vst [vmem:[#allocation32_spill] sm:$0xff] %v4774_v44  ;;  %v4798_v14 = vld [vmem:[#allocation3 + $0x113] sm:$0xff] }
 0x1b6   :  { %6517 = vst [vmem:[#allocation28_spill] sm:$0xff] %v4766_v5  ;;  %v4768_v6 = vld [vmem:[#allocation3 + $0x120] sm:$0xff]  ;;  %v4873_v0 = vld [vmem:[#allocation3 + $0xf4] sm:$0xff] }
 0x1b7   :  { %6518 = vst [vmem:[#allocation29_spill] sm:$0xff] %v4768_v6  ;;  %v4778_v43 = vld [vmem:[#allocation3 + $0x123] sm:$0xff] }
 0x1b8   :  { %721 = vst.msk [vmem:[#allocation3 + $0x102] sm:$0xff] %vm511_vm3, %v683_v61  ;;  %v4780_v7 = vld [vmem:[#allocation3 + $0x122] sm:$0xff] }
 0x1b9   :  { %6522 = vst [vmem:[#allocation33_spill] sm:$0xff] %v4778_v43  ;;  %v4792_v50 = vld [vmem:[#allocation3 + $0x120] sm:$0xff] }
 0x1ba   :  { %6523 = vst [vmem:[#allocation34_spill] sm:$0xff] %v4780_v7  ;;  %v4794_v21 = vld [vmem:[#allocation3 + $0x121] sm:$0xff]  ;;  %v665_v39 = vpop.permute.xlu0 %664  ;;  %v671_v47 = vpop.permute.xlu2 %670 }
 0x1bb   :  { %6524 = vst [vmem:[#allocation35_spill] sm:$0xff] %v4786_v12  ;;  %v4796_v18 = vld [vmem:[#allocation3 + $0x122] sm:$0xff] }
 0x1bc   :  { %6525 = vst [vmem:[#allocation36_spill] sm:$0xff] %v4792_v50  ;;  %v4804_v53 = vld [vmem:[#allocation3 + $0x123] sm:$0xff] }
 0x1bd   :  { %6526 = vst [vmem:[#allocation37_spill] sm:$0xff] %v4794_v21  ;;  %v4806_v2 = vld [vmem:[#allocation3 + $0x124] sm:$0xff]  ;;  %v369_v21 = vpack.c.bf16 %v4514_v35, %v4514_v35 }
 0x1be   :  { %6527 = vst [vmem:[#allocation38_spill] sm:$0xff] %v4796_v18 }
 0x1bf   :  { %6528 = vst [vmem:[#allocation39_spill] sm:$0xff] %v4798_v14  ;;  %v4824_v61 = vld [vmem:[#allocation3 + $0x101] sm:$0xff] }
 0x1c0   :  { %6529 = vst [vmem:[#allocation40_spill] sm:$0xff] %v4804_v53  ;;  %v774_v11 = vpack.c.bf16 %v4754_v48, %v4824_v61  ;;  %v4838_v20 = vld [vmem:[#allocation3 + $0x102] sm:$0xff]  ;;  %v361_v48 = vpack.c.bf16 %v4525_v38, %v4525_v38 }
 0x1c1   :  { %6530 = vst [vmem:[#allocation41_spill] sm:$0xff] %v4806_v2  ;;  %v4840_v41 = vld [vmem:[#allocation3 + $0x100] sm:$0xff]  ;;  %v4865_v2 = vld [vmem:[#allocation3 + $0xf3] sm:$0xff] }
 0x1c2   :  { %712 = vst.msk [vmem:[#allocation3 + $0x32] sm:$0xff] %vm511_vm3, %v665_v39  ;;  %v4830_v39 = vld [vmem:[#allocation3 + $0x100] sm:$0xff]  ;;  %3894 = vmatmul.msk.bf16.gmra.mxu3 %vm511_vm3, %v774_v11  ;;  %v667_v19 = vpop.permute.xlu0 %666  ;;  %v368_v11 = vpack.c.bf16 %v4384_v57, %v4384_v57 }
 0x1c3   :  { %715 = vst.msk [vmem:[#allocation3 + $0x62] sm:$0xff] %vm511_vm3, %v671_v47  ;;  %v4832_v47 = vld [vmem:[#allocation3 + $0x103] sm:$0xff] }
 0x1c4   :  { %6531 = vst [vmem:[#allocation42_spill] sm:$0xff] %v4824_v61  ;;  %v4846_v42 = vld [vmem:[#allocation3 + $0x101] sm:$0xff] }
 0x1c5   :  { %6533 = vst [vmem:[#allocation44_spill] sm:$0xff] %v4832_v47  ;;  %v4848_v40 = vld [vmem:[#allocation3 + $0x102] sm:$0xff] }
 0x1c6   :  { %6534 = vst [vmem:[#allocation45_spill] sm:$0xff] %v4840_v41  ;;  %v4850_v34 = vld [vmem:[#allocation3 + $0x103] sm:$0xff]  ;;  %v360_v41 = vpack.c.bf16 %v4400_v63, %v4400_v63 }
 0x1c7   :  { %6535 = vst [vmem:[#allocation46_spill] sm:$0xff] %v4846_v42  ;;  %v4861_v12 = vld [vmem:[#allocation3 + $0x104] sm:$0xff] }
 0x1c8   :  { %6536 = vst [vmem:[#allocation47_spill] sm:$0xff] %v4848_v40 }
 0x1c9   :  { %6537 = vst [vmem:[#allocation48_spill] sm:$0xff] %v4850_v34  ;;  %v4871_v53 = vld [vmem:[#allocation3 + $0x31] sm:$0xff] }
 0x1ca   :  { %6540 = vst [vmem:[#allocation51_spill] sm:$0xff] %v4861_v12  ;;  %v769_v3 = vpack.c.bf16 %v4871_v53, %v4724_v29  ;;  %v4889_v44 = vld [vmem:[#allocation3 + $0x30] sm:$0xff]  ;;  %v669_v18 = vpop.permute.xlu1 %668  ;;  %v4935_v35 = vld [vmem:[#allocation3 + $0x61] sm:$0xff]  ;;  %v409_v12 = vunpack.c.l.b16 %v361_v48 }
 0x1cb   :  { %6542 = vst [vmem:[#allocation53_spill] sm:$0xff] %v4865_v2  ;;  %v4891_v59 = vld [vmem:[#allocation3 + $0x33] sm:$0xff]  ;;  %v4978_v13 = vld [vmem:[#allocation3 + $0x61] sm:$0xff] }
 0x1cc   :  { %6543 = vst [vmem:[#allocation54_spill] sm:$0xff] %v4873_v0  ;;  %3889 = vmatmul.msk.bf16.gmra.mxu1 %vm511_vm3, %v769_v3  ;;  %v417_v3 = vunpack.c.l.b16 %v369_v21  ;;  %v4900_v14 = vld [vmem:[#allocation3 + $0x32] sm:$0xff]  ;;  %v4982_v52 = vld [vmem:[#allocation3 + $0x63] sm:$0xff] }
 0x1cd   :  { %713 = vst.msk [vmem:[#allocation3 + $0x42] sm:$0xff] %vm511_vm3, %v667_v19  ;;  %v416_v19 = vunpack.c.l.b16 %v368_v11  ;;  %v4912_v46 = vld [vmem:[#allocation3 + $0x31] sm:$0xff]  ;;  %v689_v50 = vpop.permute.xlu0 %688 }
 0x1ce   :  { %714 = vst.msk [vmem:[#allocation3 + $0x52] sm:$0xff] %vm511_vm3, %v669_v18  ;;  %v4914_v18 = vld [vmem:[#allocation3 + $0x34] sm:$0xff] }
 0x1cf   :  { %6544 = vst [vmem:[#allocation55_spill] sm:$0xff] %v4912_v46  ;;  %v4918_v49 = vld [vmem:[#allocation3 + $0x33] sm:$0xff]  ;;  %v425_v4 = vpack.c.b16 %v417_v3, %v416_v19  ;;  %v4939_v46 = vld [vmem:[#allocation3 + $0x63] sm:$0xff]  ;;  %v408_v3 = vunpack.c.l.b16 %v360_v41 }
 0x1d0   :  { %6545 = vst [vmem:[#allocation56_spill] sm:$0xff] %v4914_v18  ;;  %v4957_v18 = vld [vmem:[#allocation3 + $0x64] sm:$0xff] }
 0x1d1   :  { %6547 = vst [vmem:[#allocation58_spill] sm:$0xff] %v4918_v49  ;;  %v4984_v41 = vld [vmem:[#allocation3 + $0x64] sm:$0xff] }
 0x1d2   :  { %724 = vst.msk [vmem:[#allocation3 + $0x132] sm:$0xff] %vm511_vm3, %v689_v50  ;;  %v4941_v50 = vld [vmem:[#allocation3 + $0x62] sm:$0xff]  ;;  %v481_v27 = vpop.permute.xlu1 %480 }
 0x1d3   :  { %v505_v63 = vsel %vm38_vm0, %v425_v4, %v481_v27  ;;  %6552 = vst [vmem:[#allocation63_spill] sm:$0xff] %v4957_v18 }
 0x1d4   :  { %v4893_v2 = vld [vmem:[#allocation3 + $0x41] sm:$0xff]  ;;  %3886 = vmatmul.msk.bf16.gmra.mxu2 %vm511_vm3, %v505_v63  ;;  %6557 = vst [vmem:[#allocation68_spill] sm:$0xff] %v4978_v13  ;;  %v5089_v13 = vld [vmem:[#allocation3 + $0xd2] sm:$0xff] }
 0x1d5   :  { %v4895_v34 = vld [vmem:[#allocation3 + $0x40] sm:$0xff]  ;;  %v4943_v11 = vld [vmem:[#allocation3 + $0x51] sm:$0xff]  ;;  %6558 = vst [vmem:[#allocation69_spill] sm:$0xff] %v4982_v52 }
 0x1d6   :  { %v4897_v40 = vld [vmem:[#allocation3 + $0x43] sm:$0xff]  ;;  %6550 = vst [vmem:[#allocation61_spill] sm:$0xff] %v4943_v11  ;;  %v4945_v49 = vld [vmem:[#allocation3 + $0x50] sm:$0xff]  ;;  %v770_v38 = vpack.c.bf16 %v4943_v11, %v4893_v2 }
 0x1d7   :  { %v4902_v57 = vld [vmem:[#allocation3 + $0x42] sm:$0xff]  ;;  %v4947_v19 = vld [vmem:[#allocation3 + $0x53] sm:$0xff]  ;;  %6559 = vst [vmem:[#allocation70_spill] sm:$0xff] %v4984_v41 }
 0x1d8   :  { %v4916_v21 = vld [vmem:[#allocation3 + $0x41] sm:$0xff]  ;;  %v4970_v48 = vld [vmem:[#allocation3 + $0x50] sm:$0xff] }
 0x1d9   :  { %6546 = vst [vmem:[#allocation57_spill] sm:$0xff] %v4916_v21  ;;  %v4922_v42 = vld [vmem:[#allocation3 + $0x43] sm:$0xff]  ;;  %v4964_v4 = vld [vmem:[#allocation3 + $0x131] sm:$0xff] }
 0x1da   :  { %6548 = vst [vmem:[#allocation59_spill] sm:$0xff] %v4922_v42  ;;  %v4924_v0 = vld [vmem:[#allocation3 + $0x44] sm:$0xff]  ;;  %v4955_v42 = vld [vmem:[#allocation3 + $0x54] sm:$0xff]  ;;  %v775_v61 = vpack.c.bf16 %v4964_v4, %v4766_v5 }
 0x1db   :  { %6549 = vst [vmem:[#allocation60_spill] sm:$0xff] %v4924_v0  ;;  %v4937_v21 = vld [vmem:[#allocation3 + $0x60] sm:$0xff]  ;;  %v4952_v0 = vld [vmem:[#allocation3 + $0x52] sm:$0xff] }
 0x1dc   :  { %6551 = vst [vmem:[#allocation62_spill] sm:$0xff] %v4955_v42  ;;  %3890 = vmatmul.msk.bf16.gmra.mxu1 %vm511_vm3, %v770_v38  ;;  %v4972_v63 = vld [vmem:[#allocation3 + $0x60] sm:$0xff]  ;;  %v4976_v56 = vld [vmem:[#allocation3 + $0x51] sm:$0xff]  ;;  %v421_v38 = vpack.c.b16 %v409_v12, %v408_v3  ;;  %3895 = vmatmul.msk.bf16.gmra.mxu3 %vm511_vm3, %v775_v61  ;;  %v473_v12 = vpop.permute.xlu1 %472  ;;  %v673_v3 = vpop.permute.xlu0 %672  ;;  %v948_v37 = vpack.c.bf16 %v4952_v0, %v4902_v57 }
 0x1dd   :  { %6553 = vst [vmem:[#allocation64_spill] sm:$0xff] %v4964_v4  ;;  %v4987_v27 = vld [vmem:[#allocation3 + $0x53] sm:$0xff]  ;;  %v743_v4 = vpack.c.bf16 %v4716_v45, %v727_v15  ;;  %v938_v52 = vld [vmem:[#allocation3 + $0xc2] sm:$0xff] }
 0x1de   :  { %6554 = vst [vmem:[#allocation65_spill] sm:$0xff] %v4970_v48  ;;  %v4989_v11 = vld [vmem:[#allocation3 + $0x54] sm:$0xff]  ;;  %v493_v61 = vsel %vm38_vm0, %v421_v38, %v473_v12  ;;  %v1048_v38 = vld [vmem:[#allocation3 + $0x3] sm:$0xff] }
 0x1df   :  { %6555 = vst [vmem:[#allocation66_spill] sm:$0xff] %v4972_v63  ;;  %3882 = vmatmul.msk.bf16.gmra.mxu0 %vm511_vm3, %v493_v61  ;;  %v930_v63 = vld [vmem:[#allocation3 + $0x2] sm:$0xff]  ;;  %v1064_v12 = vpack.c.bf16 %v4718_v51, %v1048_v38  ;;  %v3931_v15 = vld [vmem:[%s6375_s3 + $0x14] sm:$0xf]  ;;  %v5031_v38 = vpack.c.bf16 %v4900_v14, %v4730_v16 }
 0x1e0   :  { %6556 = vst [vmem:[#allocation67_spill] sm:$0xff] %v4976_v56  ;;  %v946_v58 = vpack.c.bf16 %v4720_v23, %v930_v63  ;;  %v1166_v61 = vld [vmem:[#allocation3 + $0x4] sm:$0xff]  ;;  %v5080_v41 = vld [vmem:[#allocation3 + $0xd0] sm:$0xff] }
 0x1e1   :  { %6560 = vst [vmem:[#allocation71_spill] sm:$0xff] %v4987_v27  ;;  %v5094_v56 = vld [vmem:[#allocation3 + $0xd3] sm:$0xff] }
 0x1e2   :  { %6561 = vst [vmem:[#allocation72_spill] sm:$0xff] %v4989_v11  ;;  %v735_v11 = vld [vmem:[#allocation3 + $0xc0] sm:$0xff] }
 0x1e3   :  { %716 = vst.msk [vmem:[#allocation3 + $0x72] sm:$0xff] %vm511_vm3, %v673_v3  ;;  %v1336_v3 = vsel %vm528_vm2, %v3931_v15, 0  ;;  %v3949_v15 = vld [vmem:[%s6375_s3 + $0x1c] sm:$0xf] }
 0x1e4   :  { %3896 = vmatmul.msk.bf16.vlgmr.msrb.gmra.mxu2 %vm511_vm3, %v743_v4  ;;  %v1182_v4 = vpack.c.bf16 %v4722_v25, %v1166_v61  ;;  %6563 = vst [vmem:[#allocation74_spill] sm:$0xff] %v5031_v38  ;;  %v1572_v61 = vsel %vm528_vm2, %v3949_v15, 0  ;;  %v1066_v15 = vpack.c.bf16 %v4947_v19, %v4897_v40  ;;  %v749_v25 = vpack.c.bf16 %v4757_v22, %v4830_v39 }
 0x1e5   :  { %1345 = vmatpush.bf16.msra.mxu2 %v1336_v3  ;;  %v3958_v3 = vld [vmem:[%s6375_s3 + $0x20] sm:$0xf]  ;;  %1581 = vmatpush.bf16.msra.mxu0 %v1572_v61  ;;  %v1070_v22 = vpack.c.bf16 %v4759_v26, %v4832_v47  ;;  %v5161_v47 = vld [vmem:[#allocation3 + $0x133] sm:$0xff] }
 0x1e6   :  { %6576 = vst [vmem:[#allocation87_spill] sm:$0xff] %v5161_v47 }
 0x1ea   :  { %v5003_v48 = vld [vmem:[#allocation3 + $0x71] sm:$0xff] }
 0x1eb   :  { %v771_v5 = vpack.c.bf16 %v5003_v48, %v4935_v35  ;;  %v5085_v27 = vld [vmem:[#allocation3 + $0x74] sm:$0xff] }
 0x1ec   :  { %3905 = vmatmul.msk.bf16.vlgmr.msrb.gmra.mxu3 %vm511_vm3, %v946_v58  ;;  %v3940_v58 = vld [vmem:[%s6375_s3 + $0x18] sm:$0xf]  ;;  %6566 = vst [vmem:[#allocation77_spill] sm:$0xff] %v5085_v27 }
 0x1ed   :  { %3891 = vmatmul.msk.bf16.gmra.mxu1 %vm511_vm3, %v771_v5  ;;  %v5020_v5 = vpack.c.bf16 %v4889_v44, %v4726_v30  ;;  %v1454_v63 = vsel %vm528_vm2, %v3940_v58, 0  ;;  %v1169_v58 = vld [vmem:[#allocation3 + $0x34] sm:$0xff] }
 0x1ee   :  { %1463 = vmatpush.bf16.msra.mxu3 %v1454_v63  ;;  %v745_v63 = vpack.c.bf16 %v4945_v49, %v4895_v34 }
 0x1ef   :  { %3914 = vmatmul.msk.bf16.vlgmr.msrb.gmra.mxu0 %vm511_vm3, %v1064_v12  ;;  %6562 = vst [vmem:[#allocation73_spill] sm:$0xff] %v5020_v5  ;;  %v1065_v12 = vpack.c.bf16 %v4891_v59, %v4728_v28 }
 0x1f4   :  { %3897 = vmatmul.msk.bf16.gmra.mxu2 %vm511_vm3, %v5020_v5 }
 0x1fc   :  { %3906 = vmatmul.msk.bf16.gmra.mxu3 %vm511_vm3, %v5031_v38  ;;  %v1175_v38 = vld [vmem:[#allocation3 + $0xd4] sm:$0xff] }
 0x1fd   :  { %3923 = vmatmul.msk.bf16.vlgmr.msrb.gmra.mxu1 %vm511_vm3, %v1182_v4  ;;  %v1690_v4 = vsel %vm528_vm2, %v3958_v3, 0  ;;  %v5057_v3 = vld [vmem:[#allocation3 + $0x70] sm:$0xff] }
 0x1fe   :  { %1699 = vmatpush.bf16.msra.mxu1 %v1690_v4  ;;  %v746_v61 = vpack.c.bf16 %v5057_v3, %v4937_v21  ;;  %v5061_v4 = vld [vmem:[#allocation3 + $0x44] sm:$0xff] }
 0x1ff   :  { %3915 = vmatmul.msk.bf16.gmra.mxu0 %vm511_vm3, %v1065_v12  ;;  %v1183_v12 = vpack.c.bf16 %v1169_v58, %v4732_v33  ;;  %6564 = vst [vmem:[#allocation75_spill] sm:$0xff] %v5061_v4  ;;  %v1184_v58 = vpack.c.bf16 %v4955_v42, %v5061_v4  ;;  %v1185_v42 = vpack.c.bf16 %v5085_v27, %v4957_v18  ;;  %v5101_v27 = vpop.f32.mrf.mxu1  ;;  %v1174_v18 = vld [vmem:[#allocation3 + $0xc4] sm:$0xff] }
 0x200   :  { %v5129_v33 = vld [vmem:[#allocation3 + $0xe4] sm:$0xff] }
 0x201   :  { %6570 = vst [vmem:[#allocation81_spill] sm:$0xff] %v5129_v33 }
 0x204   :  { %3898 = vmatmul.msk.bf16.gmra.mxu2 %vm511_vm3, %v745_v63  ;;  %v5065_v63 = vld [vmem:[#allocation3 + $0x72] sm:$0xff] }
 0x20c   :  { %3907 = vmatmul.msk.bf16.gmra.mxu3 %vm511_vm3, %v948_v37  ;;  %v5071_v37 = vpack.c.bf16 %v5065_v63, %v4941_v50 }
 0x20d   :  { %3924 = vmatmul.msk.bf16.gmra.mxu1 %vm511_vm3, %v1183_v12  ;;  %v5073_v12 = vld [vmem:[#allocation3 + $0x73] sm:$0xff] }
 0x20e   :  { %6565 = vst [vmem:[#allocation76_spill] sm:$0xff] %v5071_v37 }
 0x20f   :  { %3916 = vmatmul.msk.bf16.gmra.mxu0 %vm511_vm3, %v1066_v15  ;;  %v1067_v15 = vpack.c.bf16 %v5073_v12, %v4939_v46 }
 0x214   :  { %3899 = vmatmul.msk.bf16.gmra.mxu2 %vm511_vm3, %v746_v61  ;;  %v5082_v61 = vpop.f32.mrf.mxu3 }
 0x21c   :  { %3908 = vmatmul.msk.bf16.gmra.mxu3 %vm511_vm3, %v5071_v37  ;;  %v950_v37 = vpack.c.bf16 %v5089_v13, %v938_v52  ;;  %v1186_v52 = vpack.c.bf16 %v1175_v38, %v1174_v18 }
 0x21d   :  { %3925 = vmatmul.msk.bf16.gmra.mxu1 %vm511_vm3, %v1184_v58  ;;  %v747_v58 = vpack.c.bf16 %v5080_v41, %v735_v11  ;;  %v5098_v11 = vpop.f32.mrf.mxu3 }
 0x21e   :  { %6567 = vst [vmem:[#allocation78_spill] sm:$0xff] %v5098_v11  ;;  %v5118_v11 = vld [vmem:[#allocation3 + $0xe3] sm:$0xff] }
 0x21f   :  { %3917 = vmatmul.msk.bf16.gmra.mxu0 %vm511_vm3, %v1067_v15  ;;  %v1056_v15 = vld [vmem:[#allocation3 + $0xc3] sm:$0xff]  ;;  %v1069_v18 = vpack.c.bf16 %v4828_v8, %v5118_v11  ;;  %v5144_v8 = vld [vmem:[#allocation3 + $0x130] sm:$0xff] }
 0x220   :  { %v1068_v4 = vpack.c.bf16 %v5094_v56, %v1056_v15  ;;  %v5115_v15 = vpop.f32.mrf.mxu1  ;;  %6572 = vst [vmem:[#allocation83_spill] sm:$0xff] %v5144_v8 }
 0x221   :  { %6568 = vst [vmem:[#allocation79_spill] sm:$0xff] %v5115_v15 }
 0x224   :  { %3900 = vmatmul.msk.bf16.gmra.mxu2 %vm511_vm3, %v747_v58  ;;  %v5103_v58 = vld [vmem:[#allocation3 + $0xe0] sm:$0xff] }
 0x22c   :  { %3909 = vmatmul.msk.bf16.gmra.mxu3 %vm511_vm3, %v950_v37  ;;  %v5107_v5 = vpop.f32.mrf.mxu3  ;;  %v5111_v37 = vld [vmem:[#allocation3 + $0xe2] sm:$0xff] }
 0x22d   :  { %3926 = vmatmul.msk.bf16.gmra.mxu1 %vm511_vm3, %v1185_v42  ;;  %v748_v42 = vpack.c.bf16 %v4822_v32, %v5103_v58 }
 0x22f   :  { %3918 = vmatmul.msk.bf16.gmra.mxu0 %vm511_vm3, %v1068_v4  ;;  %v951_v4 = vpack.c.bf16 %v4836_v10, %v5111_v37 }
 0x234   :  { %3901 = vmatmul.msk.bf16.gmra.mxu2 %vm511_vm3, %v748_v42  ;;  %v5123_v38 = vpop.f32.mrf.mxu3  ;;  %v1177_v42 = vld [vmem:[#allocation3 + $0xf4] sm:$0xff] }
 0x235   :  { %6569 = vst [vmem:[#allocation80_spill] sm:$0xff] %v5123_v38  ;;  %v1187_v15 = vpack.c.bf16 %v1177_v42, %v5129_v33  ;;  %v5146_v42 = vld [vmem:[#allocation3 + $0x104] sm:$0xff]  ;;  %v750_v33 = vpack.c.bf16 %v5144_v8, %v4768_v6 }
 0x236   :  { %6573 = vst [vmem:[#allocation84_spill] sm:$0xff] %v5146_v42 }
 0x23c   :  { %3910 = vmatmul.msk.bf16.gmra.mxu3 %vm511_vm3, %v951_v4  ;;  %v952_v4 = vpack.c.bf16 %v4761_v60, %v4838_v20  ;;  %v1179_v60 = vld [vmem:[#allocation3 + $0x114] sm:$0xff] }
 0x23d   :  { %3927 = vmatmul.msk.bf16.gmra.mxu1 %vm511_vm3, %v1186_v52 }
 0x23f   :  { %3919 = vmatmul.msk.bf16.gmra.mxu0 %vm511_vm3, %v1069_v18 }
 0x244   :  { %3902 = vmatmul.msk.bf16.gmra.mxu2 %vm511_vm3, %v749_v25 }
 0x245   :  { %v5136_v18 = vpop.f32.mrf.mxu3 }
 0x249   :  { %v5125_v52 = vpop.f32.mrf.mxu1 }
 0x24c   :  { %3911 = vmatmul.msk.bf16.gmra.mxu3 %vm511_vm3, %v952_v4  ;;  %v1188_v4 = vpack.c.bf16 %v1179_v60, %v5146_v42 }
 0x24d   :  { %3928 = vmatmul.msk.bf16.gmra.mxu1 %vm511_vm3, %v1187_v15  ;;  %v5148_v25 = vpop.f32.mrf.mxu3 }
 0x24e   :  { %6574 = vst [vmem:[#allocation85_spill] sm:$0xff] %v5148_v25 }
 0x24f   :  { %3920 = vmatmul.msk.bf16.gmra.mxu0 %vm511_vm3, %v1070_v22 }
 0x251   :  { %v5139_v38 = vpop.f32.mrf.mxu1 }
 0x252   :  { %6571 = vst [vmem:[#allocation82_spill] sm:$0xff] %v5139_v38  ;;  %v5155_v38 = vld [vmem:[#allocation3 + $0x132] sm:$0xff] }
 0x253   :  { %6575 = vst [vmem:[#allocation86_spill] sm:$0xff] %v5155_v38  ;;  %v953_v22 = vpack.c.bf16 %v5155_v38, %v4780_v7 }
 0x254   :  { %3903 = vmatmul.msk.bf16.gmra.mxu2 %vm511_vm3, %v750_v33  ;;  %v1071_v33 = vpack.c.bf16 %v5161_v47, %v4778_v43  ;;  %v5185_v43 = vld [vmem:[#allocation3 + $0x124] sm:$0xff] }
 0x257   :  { %v576_v26 = vpop.f32.mrf.mxu2 }
 0x258   :  { %v577_v25 = vadd.f32 %v4503_v31, %v576_v26 }
 0x259   :  { %v5150_v15 = vpop.f32.mrf.mxu1 }
 0x25a   :  { %v5165_v6 = vmax.f32 %v577_v25, 0.0  ;;  %v1181_v25 = vld [vmem:[#allocation3 + $0x134] sm:$0xff] }
 0x25c   :  { %3912 = vmatmul.msk.bf16.gmra.mxu3 %vm511_vm3, %v953_v22  ;;  %v556_v8 = vpop.f32.mrf.mxu0  ;;  %6577 = vst [vmem:[#allocation88_spill] sm:$0xff] %v5165_v6  ;;  %690 = vrot.lane.b32.xlu0 %v5165_v6, %s4184_s26 }
 0x25d   :  { %3929 = vmatmul.msk.bf16.gmra.mxu1 %vm511_vm3, %v1188_v4  ;;  %v557_v60 = vadd.f32 %v4503_v31, %v556_v8 }
 0x25f   :  { %v5172_v4 = vpop.f32.mrf.mxu3  ;;  %v5174_v38 = vmax.f32 %v557_v60, 0.0  ;;  %3921 = vmatmul.msk.bf16.gmra.mxu0 %vm511_vm3, %v1071_v33  ;;  %v578_v26 = vpop.f32.mrf.mxu2  ;;  %v1189_v60 = vpack.c.bf16 %v1181_v25, %v5185_v43 }
 0x260   :  { %v579_v8 = vadd.f32 %v4503_v31, %v578_v26  ;;  %v6582_v26 = vpack.c.bf16 %v4726_v30, %v4716_v45 }
 0x261   :  { %v5168_v42 = vpop.f32.mrf.mxu1  ;;  %6579 = vst [vmem:[#allocation90_spill] sm:$0xff] %v5174_v38  ;;  %674 = vrot.lane.b32.xlu2 %v5174_v38, %s4184_s26 }
 0x262   :  { %6578 = vst [vmem:[#allocation89_spill] sm:$0xff] %v5168_v42  ;;  %v5190_v6 = vmax.f32 %v579_v8, 0.0 }
 0x264   :  { %v558_v22 = vpop.f32.mrf.mxu0  ;;  %6580 = vst [vmem:[#allocation91_spill] sm:$0xff] %v5190_v6  ;;  %3751 = vrot.lane.b32.xlu0 %v4580_v24, %s4186_s21  ;;  %3932 = vmatmul.msk.bf16.vlgmr.msra.gmra.mxu2 %vm511_vm3, %v6582_v26  ;;  %v3967_v26 = vld [vmem:[%s6375_s3 + $0x24] sm:$0xf] }
 0x265   :  { %v559_v42 = vadd.f32 %v4503_v31, %v558_v22  ;;  %v6584_v22 = vpack.c.bf16 %v4730_v16, %v4720_v23  ;;  %v3976_v23 = vld [vmem:[%s6375_s3 + $0x28] sm:$0xf]  ;;  %v6617_v24 = vld [vmem:[#allocation23_spill] sm:$0xff] }
 0x267   :  { %v5188_v7 = vpop.f32.mrf.mxu3  ;;  %v5192_v33 = vmax.f32 %v559_v42, 0.0  ;;  %v890_v31 = vpop.f32.mrf.mxu2  ;;  %v6583_v42 = vpack.c.bf16 %v4724_v29, %v4701_v36 }
 0x268   :  { %v891_v25 = vadd.f32 %v890_v31, %v5101_v27  ;;  %v1808_v31 = vsel %vm528_vm2, %v3967_v26, 0  ;;  %v6587_v26 = vpack.c.bf16 %v4893_v2, %v4871_v53 }
 0x269   :  { %6581 = vst [vmem:[#allocation92_spill] sm:$0xff] %v5192_v33  ;;  %676 = vrot.lane.b32.xlu1 %v5192_v33, %s4184_s26  ;;  %692 = vrot.lane.b32.xlu2 %v5190_v6, %s4184_s26  ;;  %v6616_v6 = vld [vmem:[#allocation42_spill] sm:$0xff] }
 0x26a   :  { %v5183_v47 = vpop.f32.mrf.mxu1  ;;  %1817 = vmatpush.bf16.msrb.mxu2 %v1808_v31 }
 0x26c   :  { %3941 = vmatmul.msk.bf16.vlgmr.msra.gmra.mxu3 %vm511_vm3, %v6583_v42  ;;  %v1110_v8 = vpop.f32.mrf.mxu0  ;;  %3757 = vrot.lane.b32.xlu0 %v4654_v9, %s4186_s21  ;;  %v1926_v42 = vsel %vm528_vm2, %v3976_v23, 0 }
 0x26d   :  { %3930 = vmatmul.msk.bf16.gmra.mxu1 %vm511_vm3, %v1189_v60  ;;  %1935 = vmatpush.bf16.msrb.mxu3 %v1926_v42  ;;  %v3994_v42 = vld [vmem:[%s6375_s3 + $0x30] sm:$0xf] }
 0x26f   :  { %v992_v30 = vpop.f32.mrf.mxu3  ;;  %3950 = vmatmul.msk.bf16.vlgmr.msra.gmra.mxu0 %vm511_vm3, %v6584_v22  ;;  %v5222_v29 = vpop.f32.mrf.mxu2  ;;  %v6586_v22 = vpack.c.bf16 %v4728_v28, %v4718_v51  ;;  %v3985_v51 = vld [vmem:[%s6375_s3 + $0x2c] sm:$0xf] }
 0x270   :  { %v1032_v60 = vadd.f32 %v992_v30, %v891_v25  ;;  %v6585_v30 = vpack.c.bf16 %v4895_v34, %v4889_v44  ;;  %v2044_v44 = vsel %vm528_vm2, %v3985_v51, 0  ;;  %v6593_v51 = vld [vmem:[#allocation10_spill] sm:$0xff] }
 0x271   :  { %3747 = vrot.lane.b32.xlu1 %v4542_v55, %s4186_s21  ;;  %3749 = vrot.lane.b32.xlu2 %v4558_v62, %s4186_s21  ;;  %v6615_v55 = vpack.c.bf16 %v4830_v39, %v4822_v32 }
 0x272   :  { %v5210_v45 = vpop.f32.mrf.mxu1  ;;  %v1150_v36 = vadd.f32 %v1110_v8, %v1032_v60  ;;  %2053 = vmatpush.bf16.msrb.mxu0 %v2044_v44 }
 0x274   :  { %v5224_v27 = vpop.f32.mrf.mxu0  ;;  %3763 = vrot.lane.b32.xlu0 %v4506_v54, %s4186_s21  ;;  %3933 = vmatmul.msk.bf16.gmra.mxu2 %vm511_vm3, %v6585_v30 }
 0x277   :  { %v5236_v8 = vpop.f32.mrf.mxu3  ;;  %v895_v60 = vpop.f32.mrf.mxu2 }
 0x279   :  { %3753 = vrot.lane.b32.xlu1 %v4606_v1, %s4186_s21  ;;  %3755 = vrot.lane.b32.xlu2 %v4632_v17, %s4186_s21 }
 0x27a   :  { %v1228_v16 = vpop.f32.mrf.mxu1 }
 0x27b   :  { %v5234_v25 = vadd.f32 %v1228_v16, %v1150_v36  ;;  %v896_v36 = vadd.f32 %v895_v60, %v5125_v52  ;;  %v6588_v16 = vld [vmem:[#allocation12_spill] sm:$0xff]  ;;  %v6589_v52 = vpack.c.bf16 %v4902_v57, %v4900_v14  ;;  %v2162_v14 = vsel %vm528_vm2, %v3994_v42, 0  ;;  %v6598_v42 = vld [vmem:[#allocation14_spill] sm:$0xff] }
 0x27c   :  { %3942 = vmatmul.msk.bf16.gmra.mxu3 %vm511_vm3, %v6587_v26  ;;  %v1115_v34 = vpop.f32.mrf.mxu0  ;;  %3769 = vrot.lane.b32.xlu0 %v6588_v16, %s4186_s21  ;;  %v6591_v26 = vpack.c.bf16 %v4897_v40, %v4891_v59  ;;  %v6597_v59 = vpack.c.bf16 %v4941_v50, %v4952_v0 }
 0x27d   :  { %3959 = vmatmul.msk.bf16.vlgmr.msra.gmra.mxu1 %vm511_vm3, %v6586_v22 }
 0x27e   :  { %2171 = vmatpush.bf16.msrb.mxu1 %v2162_v14 }
 0x27f   :  { %v997_v23 = vpop.f32.mrf.mxu3  ;;  %3951 = vmatmul.msk.bf16.gmra.mxu0 %vm511_vm3, %v6589_v52  ;;  %v5273_v31 = vpop.f32.mrf.mxu2  ;;  %v6594_v52 = vld [vmem:[#allocation61_spill] sm:$0xff] }
 0x280   :  { %v1034_v53 = vadd.f32 %v997_v23, %v896_v36  ;;  %v6590_v36 = vpack.c.bf16 %v4937_v21, %v4945_v49 }
 0x281   :  { %3759 = vrot.lane.b32.xlu1 %v5174_v38, %s4186_s21  ;;  %3761 = vrot.lane.b32.xlu2 %v5192_v33, %s4186_s21 }
 0x282   :  { %v5260_v28 = vpop.f32.mrf.mxu1  ;;  %v1152_v2 = vadd.f32 %v1115_v34, %v1034_v53  ;;  %v6592_v34 = vld [vmem:[#allocation8_spill] sm:$0xff]  ;;  %v6595_v53 = vpack.c.bf16 %v4935_v35, %v6594_v52 }
 0x284   :  { %v5278_v30 = vpop.f32.mrf.mxu0  ;;  %3934 = vmatmul.msk.bf16.gmra.mxu2 %vm511_vm3, %v6590_v36 }
 0x287   :  { %v5283_v60 = vpop.f32.mrf.mxu3  ;;  %v900_v44 = vpop.f32.mrf.mxu2 }
 0x288   :  { %v901_v23 = vadd.f32 %v900_v44, %v5150_v15  ;;  %v6602_v44 = vpack.c.bf16 %v4939_v46, %v4947_v19 }
 0x289   :  { %3765 = vrot.lane.b32.xlu1 %v6592_v34, %s4186_s21  ;;  %3767 = vrot.lane.b32.xlu2 %v6593_v51, %s4186_s21 }
 0x28a   :  { %v1233_v57 = vpop.f32.mrf.mxu1 }
 0x28b   :  { %v5281_v22 = vadd.f32 %v1233_v57, %v1152_v2 }
 0x28c   :  { %3943 = vmatmul.msk.bf16.gmra.mxu3 %vm511_vm3, %v6595_v53  ;;  %v1120_v49 = vpop.f32.mrf.mxu0 }
 0x28d   :  { %3960 = vmatmul.msk.bf16.gmra.mxu1 %vm511_vm3, %v6591_v26 }
 0x28f   :  { %v1002_v40 = vpop.f32.mrf.mxu3  ;;  %3952 = vmatmul.msk.bf16.gmra.mxu0 %vm511_vm3, %v6597_v59  ;;  %v5310_v15 = vpop.f32.mrf.mxu2 }
 0x290   :  { %v1036_v2 = vadd.f32 %v1002_v40, %v901_v23  ;;  %6599 = vst [vmem:[#allocation93_spill] sm:$0xff] %v5310_v15 }
 0x291   :  { %3771 = vrot.lane.b32.xlu1 %v6598_v42, %s4186_s21 }
 0x292   :  { %v5302_v21 = vpop.f32.mrf.mxu1  ;;  %v1154_v14 = vadd.f32 %v1120_v49, %v1036_v2 }
 0x293   :  { %6596 = vst [vmem:[#allocation61_spill] sm:$0xff] %v5302_v21 }
 0x294   :  { %v5312_v57 = vpop.f32.mrf.mxu0 }
 0x295   :  { %6600 = vst [vmem:[#allocation94_spill] sm:$0xff] %v5312_v57 }
 0x297   :  { %v5316_v26 = vpop.f32.mrf.mxu3  ;;  %v905_v0 = vpop.f32.mrf.mxu2 }
 0x298   :  { %6601 = vst [vmem:[#allocation95_spill] sm:$0xff] %v5316_v26  ;;  %v906_v50 = vadd.f32 %v905_v0, %v5183_v47 }
 0x29a   :  { %v1238_v35 = vpop.f32.mrf.mxu1 }
 0x29b   :  { %v5314_v36 = vadd.f32 %v1238_v35, %v1154_v14 }
 0x29c   :  { %v1125_v23 = vpop.f32.mrf.mxu0 }
 0x29d   :  { %3961 = vmatmul.msk.bf16.gmra.mxu1 %vm511_vm3, %v6602_v44 }
 0x29f   :  { %v1007_v53 = vpop.f32.mrf.mxu3  ;;  %v5325_v59 = vpop.f32.mrf.mxu2 }
 0x2a0   :  { %v1038_v49 = vadd.f32 %v1007_v53, %v906_v50 }
 0x2a2   :  { %v5323_v52 = vpop.f32.mrf.mxu1  ;;  %v1156_v40 = vadd.f32 %v1125_v23, %v1038_v49 }
 0x2a3   :  { %6603 = vst [vmem:[#allocation96_spill] sm:$0xff] %v5323_v52 }
 0x2a4   :  { %v5327_v2 = vpop.f32.mrf.mxu0 }
 0x2a7   :  { %v5331_v42 = vpop.f32.mrf.mxu3  ;;  %v910_v46 = vpop.f32.mrf.mxu2 }
 0x2a8   :  { %v911_v44 = vadd.f32 %v910_v46, %v5082_v61 }
 0x2aa   :  { %v1243_v14 = vpop.f32.mrf.mxu1 }
 0x2ab   :  { %v5329_v35 = vadd.f32 %v1243_v14, %v1156_v40 }
 0x2ac   :  { %v1130_v19 = vpop.f32.mrf.mxu0 }
 0x2af   :  { %v1012_v0 = vpop.f32.mrf.mxu3  ;;  %v5336_v50 = vpop.f32.mrf.mxu2 }
 0x2b0   :  { %v1040_v51 = vadd.f32 %v1012_v0, %v911_v44 }
 0x2b2   :  { %v5334_v47 = vpop.f32.mrf.mxu1  ;;  %v1158_v34 = vadd.f32 %v1130_v19, %v1040_v51 }
 0x2b4   :  { %v5338_v23 = vpop.f32.mrf.mxu0 }
 0x2b7   :  { %v5342_v40 = vpop.f32.mrf.mxu3  ;;  %v915_v14 = vpop.f32.mrf.mxu2 }
 0x2b8   :  { %v916_v61 = vadd.f32 %v915_v14, %v5107_v5 }
 0x2ba   :  { %v1248_v53 = vpop.f32.mrf.mxu1 }
 0x2bb   :  { %v5340_v49 = vadd.f32 %v1248_v53, %v1158_v34  ;;  %v675_v16 = vpop.permute.xlu2 %674 }
 0x2bc   :  { %717 = vst.msk [vmem:[#allocation3 + $0x82] sm:$0xff] %vm511_vm3, %v675_v16  ;;  %v1135_v33 = vpop.f32.mrf.mxu0 }
 0x2bf   :  { %v1017_v44 = vpop.f32.mrf.mxu3  ;;  %v5348_v0 = vpop.f32.mrf.mxu2 }
 0x2c0   :  { %v1042_v51 = vadd.f32 %v1017_v44, %v916_v61 }
 0x2c2   :  { %v5346_v46 = vpop.f32.mrf.mxu1  ;;  %v1160_v19 = vadd.f32 %v1135_v33, %v1042_v51 }
 0x2c3   :  { %v693_v38 = vpop.permute.xlu2 %692  ;;  %v5350_v54 = vld [vmem:[#allocation3 + $0x80] sm:$0xff] }
 0x2c4   :  { %6604 = vst [vmem:[#allocation97_spill] sm:$0xff] %v5350_v54  ;;  %v5352_v34 = vld [vmem:[#allocation3 + $0x81] sm:$0xff]  ;;  %v5357_v16 = vpop.f32.mrf.mxu0  ;;  %v1304_v5 = vpack.c.bf16 %v5350_v54, %v5057_v3 }
 0x2c5   :  { %6605 = vst [vmem:[#allocation98_spill] sm:$0xff] %v5352_v34  ;;  %v5354_v53 = vld [vmem:[#allocation3 + $0x82] sm:$0xff]  ;;  %v1422_v14 = vpack.c.bf16 %v5352_v34, %v5003_v48 }
 0x2c6   :  { %726 = vst.msk [vmem:[#allocation3 + $0x152] sm:$0xff] %vm511_vm3, %v693_v38  ;;  %v1540_v33 = vpack.c.bf16 %v5354_v53, %v5065_v63  ;;  %v5365_v61 = vld [vmem:[#allocation3 + $0x83] sm:$0xff]  ;;  %3935 = vmatmul.msk.bf16.gmra.mxu2 %vm511_vm3, %v1304_v5 }
 0x2c7   :  { %6606 = vst [vmem:[#allocation99_spill] sm:$0xff] %v5365_v61  ;;  %v1658_v44 = vpack.c.bf16 %v5365_v61, %v5073_v12  ;;  %3944 = vmatmul.msk.bf16.gmra.mxu3 %vm511_vm3, %v1422_v14  ;;  %v5373_v17 = vpop.f32.mrf.mxu3  ;;  %v920_v48 = vpop.f32.mrf.mxu2 }
 0x2c8   :  { %3953 = vmatmul.msk.bf16.gmra.mxu0 %vm511_vm3, %v1540_v33  ;;  %v921_v63 = vadd.f32 %v920_v48, %v5136_v18  ;;  %v1305_v33 = vpack.c.bf16 %v5103_v58, %v5080_v41  ;;  %v1659_v18 = vpack.c.bf16 %v5118_v11, %v5094_v56  ;;  %v6607_v48 = vld [vmem:[#allocation20_spill] sm:$0xff] }
 0x2c9   :  { %3962 = vmatmul.msk.bf16.gmra.mxu1 %vm511_vm3, %v1658_v44  ;;  %v1541_v44 = vpack.c.bf16 %v5111_v37, %v5089_v13 }
 0x2ca   :  { %v1253_v51 = vpop.f32.mrf.mxu1 }
 0x2cb   :  { %v5371_v38 = vadd.f32 %v1253_v51, %v1160_v19 }
 0x2cc   :  { %v1140_v3 = vpop.f32.mrf.mxu0 }
 0x2ce   :  { %v691_v62 = vpop.permute.xlu0 %690 }
 0x2cf   :  { %v1022_v12 = vpop.f32.mrf.mxu3  ;;  %725 = vst.msk [vmem:[#allocation3 + $0x142] sm:$0xff] %vm511_vm3, %v691_v62  ;;  %v5381_v19 = vpop.f32.mrf.mxu2 }
 0x2d0   :  { %v1044_v9 = vadd.f32 %v1022_v12, %v921_v63 }
 0x2d2   :  { %v5378_v1 = vpop.f32.mrf.mxu1  ;;  %v1162_v5 = vadd.f32 %v1140_v3, %v1044_v9  ;;  %v6608_v9 = vld [vmem:[#allocation19_spill] sm:$0xff] }
 0x2d3   :  { %v6609_v3 = vpack.c.bf16 %v6607_v48, %v6608_v9 }
 0x2d4   :  { %v5383_v14 = vpop.f32.mrf.mxu0 }
 0x2d6   :  { %3936 = vmatmul.msk.bf16.gmra.mxu2 %vm511_vm3, %v1305_v33  ;;  %v5402_v58 = vld [vmem:[#allocation3 + $0x142] sm:$0xff]  ;;  %v5412_v33 = vld [vmem:[#allocation3 + $0x152] sm:$0xff] }
 0x2d7   :  { %3945 = vmatmul.msk.bf16.gmra.mxu3 %vm511_vm3, %v6609_v3  ;;  %v5398_v63 = vpop.f32.mrf.mxu3  ;;  %v925_v13 = vpop.f32.mrf.mxu2  ;;  %6610 = vst [vmem:[#allocation20_spill] sm:$0xff] %v5402_v58  ;;  %v5404_v56 = vld [vmem:[#allocation3 + $0x143] sm:$0xff] }
 0x2d8   :  { %3954 = vmatmul.msk.bf16.gmra.mxu0 %vm511_vm3, %v1541_v44  ;;  %6611 = vst [vmem:[#allocation19_spill] sm:$0xff] %v5404_v56  ;;  %v926_v37 = vadd.f32 %v925_v13, %v5172_v4 }
 0x2d9   :  { %3963 = vmatmul.msk.bf16.gmra.mxu1 %vm511_vm3, %v1659_v18  ;;  %6613 = vst [vmem:[#allocation101_spill] sm:$0xff] %v5412_v33  ;;  %v6618_v18 = vpack.c.bf16 %v6616_v6, %v6617_v24  ;;  %v6627_v24 = vld [vmem:[#allocation28_spill] sm:$0xff] }
 0x2da   :  { %v1258_v51 = vpop.f32.mrf.mxu1  ;;  %v6628_v33 = vld [vmem:[#allocation24_spill] sm:$0xff] }
 0x2db   :  { %v5396_v62 = vadd.f32 %v1258_v51, %v1162_v5  ;;  %v677_v41 = vpop.permute.xlu1 %676  ;;  %v5410_v5 = vld [vmem:[#allocation3 + $0x153] sm:$0xff] }
 0x2dc   :  { %718 = vst.msk [vmem:[#allocation3 + $0x92] sm:$0xff] %vm511_vm3, %v677_v41  ;;  %v1145_v11 = vpop.f32.mrf.mxu0 }
 0x2dd   :  { %6612 = vst [vmem:[#allocation100_spill] sm:$0xff] %v5410_v5  ;;  %v6634_v5 = vld [vmem:[#allocation26_spill] sm:$0xff] }
 0x2df   :  { %v1027_v44 = vpop.f32.mrf.mxu3  ;;  %v5418_v3 = vpop.f32.mrf.mxu2 }
 0x2e0   :  { %v1046_v48 = vadd.f32 %v1027_v44, %v926_v37  ;;  %v6619_v37 = vpack.c.bf16 %v4838_v20, %v4836_v10  ;;  %v6620_v44 = vld [vmem:[#allocation44_spill] sm:$0xff] }
 0x2e2   :  { %v5408_v12 = vpop.f32.mrf.mxu1  ;;  %v1164_v9 = vadd.f32 %v1145_v11, %v1046_v48  ;;  %v6621_v48 = vld [vmem:[#allocation43_spill] sm:$0xff] }
 0x2e3   :  { %v5422_v13 = vld [vmem:[#allocation3 + $0x93] sm:$0xff]  ;;  %v6622_v56 = vpack.c.bf16 %v6620_v44, %v6621_v48 }
 0x2e4   :  { %v5420_v41 = vpop.f32.mrf.mxu0  ;;  %6614 = vst [vmem:[#allocation102_spill] sm:$0xff] %v5422_v13  ;;  %v6625_v48 = vld [vmem:[#allocation25_spill] sm:$0xff] }
 0x2e6   :  { %3937 = vmatmul.msk.bf16.gmra.mxu2 %vm511_vm3, %v6615_v55  ;;  %v5444_v55 = vld [vmem:[#allocation3 + $0x83] sm:$0xff] }
 0x2e7   :  { %3946 = vmatmul.msk.bf16.gmra.mxu3 %vm511_vm3, %v6618_v18  ;;  %v5434_v11 = vpop.f32.mrf.mxu3  ;;  %6623 = vst [vmem:[#allocation42_spill] sm:$0xff] %v5444_v55  ;;  %v1347_v6 = vpop.f32.mrf.mxu2  ;;  %v6629_v55 = vpack.c.bf16 %v6627_v24, %v6628_v33  ;;  %v4012_v33 = vld [vmem:[%s6375_s3 + $0x38] sm:$0xf] }
 0x2e8   :  { %3955 = vmatmul.msk.bf16.gmra.mxu0 %vm511_vm3, %v6619_v37  ;;  %v1387_v32 = vadd.f32 %v1347_v6, %v5234_v25 }
 0x2e9   :  { %3964 = vmatmul.msk.bf16.gmra.mxu1 %vm511_vm3, %v6622_v56  ;;  %v6624_v56 = vld [vmem:[#allocation29_spill] sm:$0xff] }
 0x2ea   :  { %v1263_v4 = vpop.f32.mrf.mxu1  ;;  %v6626_v58 = vpack.c.bf16 %v6624_v56, %v6625_v48 }
 0x2eb   :  { %v5432_v51 = vadd.f32 %v1263_v4, %v1164_v9 }
 0x2ec   :  { %v1583_v39 = vpop.f32.mrf.mxu0 }
 0x2ef   :  { %v1465_v9 = vpop.f32.mrf.mxu3  ;;  %v5451_v4 = vpop.f32.mrf.mxu2 }
 0x2f0   :  { %v1505_v20 = vadd.f32 %v1465_v9, %v1387_v32  ;;  %v6630_v32 = vld [vmem:[#allocation34_spill] sm:$0xff] }
 0x2f2   :  { %v5449_v18 = vpop.f32.mrf.mxu1  ;;  %v1623_v10 = vadd.f32 %v1583_v39, %v1505_v20  ;;  %v6631_v39 = vld [vmem:[#allocation27_spill] sm:$0xff]  ;;  %v6633_v20 = vld [vmem:[#allocation33_spill] sm:$0xff] }
 0x2f3   :  { %v6632_v9 = vpack.c.bf16 %v6630_v32, %v6631_v39  ;;  %v6635_v13 = vpack.c.bf16 %v6633_v20, %v6634_v5 }
 0x2f4   :  { %v5453_v37 = vpop.f32.mrf.mxu0 }
 0x2f6   :  { %3938 = vmatmul.msk.bf16.gmra.mxu2 %vm511_vm3, %v6626_v58  ;;  %v4003_v58 = vld [vmem:[%s6375_s3 + $0x34] sm:$0xf] }
 0x2f7   :  { %3947 = vmatmul.msk.bf16.gmra.mxu3 %vm511_vm3, %v6629_v55  ;;  %v5465_v6 = vpop.f32.mrf.mxu3  ;;  %v4021_v55 = vld [vmem:[%s6375_s3 + $0x3c] sm:$0xf]  ;;  %v2280_v24 = vsel %vm528_vm2, %v4003_v58, 0  ;;  %v1352_v56 = vpop.f32.mrf.mxu2  ;;  %v5494_v58 = vld [vmem:[#allocation3 + $0x140] sm:$0xff] }
 0x2f8   :  { %3956 = vmatmul.msk.bf16.gmra.mxu0 %vm511_vm3, %v6632_v9  ;;  %v2517_v5 = vsel %vm528_vm2, %v4021_v55, 0  ;;  %2289 = vmatpush.bf16.msra.mxu2 %v2280_v24  ;;  %v1389_v48 = vadd.f32 %v1352_v56, %v5281_v22  ;;  %v5500_v24 = vld [vmem:[#allocation3 + $0x142] sm:$0xff]  ;;  %v6641_v56 = vld [vmem:[#allocation86_spill] sm:$0xff] }
 0x2f9   :  { %3965 = vmatmul.msk.bf16.gmra.mxu1 %vm511_vm3, %v6635_v13  ;;  %v4030_v13 = vld [vmem:[%s6375_s3 + $0x40] sm:$0xf]  ;;  %2526 = vmatpush.bf16.msra.mxu0 %v2517_v5  ;;  %v6640_v22 = vld [vmem:[#allocation64_spill] sm:$0xff] }
 0x2fa   :  { %v1701_v44 = vpop.f32.mrf.mxu1  ;;  %v6639_v5 = vld [vmem:[#allocation83_spill] sm:$0xff] }
 0x2fb   :  { %v5463_v25 = vadd.f32 %v1701_v44, %v1623_v10  ;;  %v2398_v10 = vsel %vm528_vm2, %v4012_v33, 0  ;;  %v2635_v44 = vsel %vm528_vm2, %v4030_v13, 0  ;;  %v5496_v33 = vld [vmem:[#allocation3 + $0x141] sm:$0xff]  ;;  %v1308_v13 = vpack.c.bf16 %v5494_v58, %v6639_v5 }
 0x2fc   :  { %2407 = vmatpush.bf16.msra.mxu3 %v2398_v10  ;;  %2644 = vmatpush.bf16.msra.mxu1 %v2635_v44  ;;  %v1588_v32 = vpop.f32.mrf.mxu0  ;;  %v5502_v10 = vld [vmem:[#allocation3 + $0x143] sm:$0xff]  ;;  %v1426_v44 = vpack.c.bf16 %v5496_v33, %v6640_v22 }
 0x2fd   :  { %6638 = vst [vmem:[#allocation43_spill] sm:$0xff] %v5502_v10 }
 0x2ff   :  { %v1470_v9 = vpop.f32.mrf.mxu3  ;;  %v5498_v61 = vpop.f32.mrf.mxu2 }
 0x300   :  { %v1507_v20 = vadd.f32 %v1470_v9, %v1389_v48  ;;  %6637 = vst [vmem:[#allocation44_spill] sm:$0xff] %v5498_v61  ;;  %v1544_v48 = vpack.c.bf16 %v5500_v24, %v6641_v56  ;;  %v6642_v9 = vld [vmem:[#allocation87_spill] sm:$0xff] }
 0x301   :  { %v1662_v52 = vpack.c.bf16 %v5502_v10, %v6642_v9  ;;  %v6647_v61 = vld [vmem:[#allocation55_spill] sm:$0xff] }
 0x302   :  { %v5492_v39 = vpop.f32.mrf.mxu1  ;;  %v1625_v55 = vadd.f32 %v1588_v32, %v1507_v20 }
 0x303   :  { %6636 = vst [vmem:[#allocation23_spill] sm:$0xff] %v5492_v39  ;;  %v6680_v39 = vld [vmem:[#allocation81_spill] sm:$0xff] }
 0x304   :  { %v5512_v32 = vpop.f32.mrf.mxu0 }
 0x305   :  { %6643 = vst [vmem:[#allocation29_spill] sm:$0xff] %v5512_v32 }
 0x306   :  { %3939 = vmatmul.msk.bf16.gmra.mxu2 %vm511_vm3, %v1308_v13  ;;  %v1993_v13 = vld [vmem:[#allocation3 + $0x21] sm:$0xff] }
 0x307   :  { %3948 = vmatmul.msk.bf16.gmra.mxu3 %vm511_vm3, %v1426_v44  ;;  %v5518_v26 = vpop.f32.mrf.mxu3  ;;  %v1357_v5 = vpop.f32.mrf.mxu2  ;;  %v2009_v44 = vpack.c.bf16 %v6647_v61, %v1993_v13  ;;  %v5547_v13 = vld [vmem:[#allocation3 + $0x42] sm:$0xff] }
 0x308   :  { %6645 = vst [vmem:[#allocation28_spill] sm:$0xff] %v5518_v26  ;;  %3957 = vmatmul.msk.bf16.gmra.mxu0 %vm511_vm3, %v1544_v48  ;;  %v1391_v22 = vadd.f32 %v1357_v5, %v5314_v36  ;;  %v6651_v48 = vld [vmem:[#allocation73_spill] sm:$0xff]  ;;  %v6653_v36 = vld [vmem:[#allocation74_spill] sm:$0xff]  ;;  %v6655_v5 = vld [vmem:[#allocation56_spill] sm:$0xff] }
 0x309   :  { %3966 = vmatmul.msk.bf16.gmra.mxu1 %vm511_vm3, %v1662_v52  ;;  %6659 = vst [vmem:[#allocation26_spill] sm:$0xff] %v5547_v13 }
 0x30a   :  { %v1706_v57 = vpop.f32.mrf.mxu1 }
 0x30b   :  { %v5516_v20 = vadd.f32 %v1706_v57, %v1625_v55  ;;  %v6648_v55 = vld [vmem:[#allocation22_spill] sm:$0xff] }
 0x30c   :  { %v1593_v32 = vpop.f32.mrf.mxu0 }
 0x30d   :  { %6644 = vst [vmem:[#allocation25_spill] sm:$0xff] %v5516_v20  ;;  %v6649_v20 = vld [vmem:[#allocation21_spill] sm:$0xff] }
 0x30e   :  { %v6650_v26 = vpack.c.bf16 %v6648_v55, %v6649_v20  ;;  %v6657_v20 = vld [vmem:[#allocation65_spill] sm:$0xff] }
 0x30f   :  { %v1475_v9 = vpop.f32.mrf.mxu3 }
 0x310   :  { %v1509_v10 = vadd.f32 %v1475_v9, %v1391_v22  ;;  %v6656_v22 = vld [vmem:[#allocation75_spill] sm:$0xff] }
 0x311   :  { %v1774_v9 = vpack.c.bf16 %v6656_v22, %v6655_v5  ;;  %v6664_v22 = vld [vmem:[#allocation66_spill] sm:$0xff] }
 0x312   :  { %v5523_v56 = vpop.f32.mrf.mxu1  ;;  %v1627_v15 = vadd.f32 %v1593_v32, %v1509_v10  ;;  %v5537_v10 = vld [vmem:[#allocation3 + $0x52] sm:$0xff]  ;;  %v5539_v32 = vld [vmem:[#allocation3 + $0x40] sm:$0xff] }
 0x313   :  { %6646 = vst [vmem:[#allocation24_spill] sm:$0xff] %v5523_v56 }
 0x314   :  { %6654 = vst [vmem:[#allocation27_spill] sm:$0xff] %v5537_v10 }
 0x316   :  { %3968 = vmatmul.msk.bf16.vlgmr.msrb.gmra.mxu2 %vm511_vm3, %v6650_v26  ;;  %v5545_v26 = vpack.c.bf16 %v6657_v20, %v5539_v32  ;;  %v1765_v20 = vld [vmem:[#allocation3 + $0xd4] sm:$0xff] }
 0x317   :  { %3977 = vmatmul.msk.bf16.vlgmr.msrb.gmra.mxu3 %vm511_vm3, %v6651_v48  ;;  %v5558_v48 = vld [vmem:[#allocation3 + $0x70] sm:$0xff] }
 0x318   :  { %3986 = vmatmul.msk.bf16.vlgmr.msrb.gmra.mxu0 %vm511_vm3, %v2009_v44  ;;  %6658 = vst [vmem:[#allocation33_spill] sm:$0xff] %v5545_v26  ;;  %v2128_v44 = vpack.c.bf16 %v5537_v10, %v5547_v13  ;;  %v5564_v5 = vpack.c.bf16 %v5558_v48, %v6664_v22  ;;  %v6667_v13 = vld [vmem:[#allocation63_spill] sm:$0xff] }
 0x319   :  { %3995 = vmatmul.msk.bf16.vlgmr.msrb.gmra.mxu1 %vm511_vm3, %v6653_v36  ;;  %6662 = vst [vmem:[#allocation83_spill] sm:$0xff] %v5558_v48  ;;  %v5560_v36 = vld [vmem:[#allocation3 + $0x71] sm:$0xff]  ;;  %v5581_v48 = vpop.f32.mrf.mxu2  ;;  %v1883_v22 = vld [vmem:[#allocation3 + $0xe0] sm:$0xff] }
 0x31a   :  { %v1711_v57 = vpop.f32.mrf.mxu1  ;;  %6663 = vst [vmem:[#allocation64_spill] sm:$0xff] %v5560_v36 }
 0x31b   :  { %v5532_v52 = vadd.f32 %v1711_v57, %v1627_v15  ;;  %v6660_v15 = vld [vmem:[#allocation57_spill] sm:$0xff]  ;;  %v6661_v57 = vld [vmem:[#allocation67_spill] sm:$0xff]  ;;  %6665 = vst [vmem:[#allocation86_spill] sm:$0xff] %v5564_v5 }
 0x31c   :  { %v2010_v55 = vpack.c.bf16 %v6661_v57, %v6660_v15  ;;  %6673 = vst [vmem:[#allocation22_spill] sm:$0xff] %v5581_v48  ;;  %v5585_v57 = vld [vmem:[#allocation3 + $0x84] sm:$0xff]  ;;  %v908_v48 = vadd.f32 %v5325_v59, %v5210_v45 }
 0x31d   :  { %6652 = vst [vmem:[#allocation34_spill] sm:$0xff] %v5532_v52  ;;  %v6666_v52 = vld [vmem:[#allocation68_spill] sm:$0xff] }
 0x31e   :  { %v2011_v10 = vpack.c.bf16 %v5560_v36, %v6666_v52  ;;  %v5583_v36 = vpop.f32.mrf.mxu3  ;;  %6675 = vst [vmem:[#allocation73_spill] sm:$0xff] %v5585_v57  ;;  %v6679_v52 = vld [vmem:[#allocation77_spill] sm:$0xff] }
 0x31f   :  { %6674 = vst [vmem:[#allocation21_spill] sm:$0xff] %v5583_v36 }
 0x326   :  { %3969 = vmatmul.msk.bf16.gmra.mxu2 %vm511_vm3, %v1774_v9  ;;  %v6668_v9 = vld [vmem:[#allocation62_spill] sm:$0xff] }
 0x327   :  { %3978 = vmatmul.msk.bf16.gmra.mxu3 %vm511_vm3, %v5545_v26  ;;  %v6669_v56 = vpack.c.bf16 %v6667_v13, %v6668_v9  ;;  %v5579_v26 = vpop.f32.mrf.mxu1  ;;  %v5587_v13 = vld [vmem:[#allocation3 + $0x90] sm:$0xff] }
 0x328   :  { %3987 = vmatmul.msk.bf16.gmra.mxu0 %vm511_vm3, %v2010_v55  ;;  %v6670_v55 = vld [vmem:[#allocation76_spill] sm:$0xff]  ;;  %6672 = vst [vmem:[#allocation55_spill] sm:$0xff] %v5579_v26  ;;  %v5591_v9 = vld [vmem:[#allocation3 + $0x92] sm:$0xff]  ;;  %v1894_v26 = vpack.c.bf16 %v5587_v13, %v5350_v54 }
 0x329   :  { %3996 = vmatmul.msk.bf16.gmra.mxu1 %vm511_vm3, %v2128_v44  ;;  %v5577_v44 = vpop.f32.mrf.mxu0  ;;  %6676 = vst [vmem:[#allocation74_spill] sm:$0xff] %v5587_v13  ;;  %v2130_v36 = vpack.c.bf16 %v5591_v9, %v5354_v53 }
 0x32a   :  { %6671 = vst [vmem:[#allocation87_spill] sm:$0xff] %v5577_v44 }
 0x32b   :  { %6678 = vst [vmem:[#allocation57_spill] sm:$0xff] %v5591_v9 }
 0x336   :  { %3970 = vmatmul.msk.bf16.gmra.mxu2 %vm511_vm3, %v6669_v56  ;;  %v5589_v56 = vld [vmem:[#allocation3 + $0x91] sm:$0xff] }
 0x337   :  { %3979 = vmatmul.msk.bf16.gmra.mxu3 %vm511_vm3, %v5564_v5  ;;  %6677 = vst [vmem:[#allocation75_spill] sm:$0xff] %v5589_v56  ;;  %v2012_v44 = vpack.c.bf16 %v5589_v56, %v5352_v34 }
 0x338   :  { %3988 = vmatmul.msk.bf16.gmra.mxu0 %vm511_vm3, %v2011_v10 }
 0x339   :  { %3997 = vmatmul.msk.bf16.gmra.mxu1 %vm511_vm3, %v6670_v55  ;;  %v1776_v55 = vpack.c.bf16 %v5585_v57, %v6679_v52  ;;  %v1039_v52 = vadd.f32 %v5331_v42, %v908_v48 }
 0x33b   :  { %v1157_v34 = vadd.f32 %v5327_v2, %v1039_v52  ;;  %v4123_v52 = vld [vmem:[#allocation3 + $0xf1] sm:$0xff] }
 0x33d   :  { %v1275_v59 = vadd.f32 %v5334_v47, %v1157_v34  ;;  %v6681_v34 = vld [vmem:[#allocation78_spill] sm:$0xff] }
 0x345   :  { %v1598_v10 = vpop.f32.mrf.mxu0 }
 0x346   :  { %v1716_v5 = vpop.f32.mrf.mxu1  ;;  %3971 = vmatmul.msk.bf16.gmra.mxu2 %vm511_vm3, %v1776_v55 }
 0x347   :  { %3980 = vmatmul.msk.bf16.gmra.mxu3 %vm511_vm3, %v1894_v26 }
 0x348   :  { %3989 = vmatmul.msk.bf16.gmra.mxu0 %vm511_vm3, %v2012_v44 }
 0x349   :  { %3998 = vmatmul.msk.bf16.gmra.mxu1 %vm511_vm3, %v2130_v36  ;;  %v1362_v13 = vpop.f32.mrf.mxu2 }
 0x34a   :  { %v1480_v57 = vpop.f32.mrf.mxu3  ;;  %v1393_v56 = vadd.f32 %v1362_v13, %v5329_v35  ;;  %v1777_v35 = vpack.c.bf16 %v6680_v39, %v1765_v20  ;;  %v4122_v13 = vld [vmem:[#allocation3 + $0xf0] sm:$0xff] }
 0x34b   :  { %v1895_v2 = vpack.c.bf16 %v4122_v13, %v1883_v22 }
 0x34c   :  { %v1511_v53 = vadd.f32 %v1480_v57, %v1393_v56  ;;  %v2001_v57 = vld [vmem:[#allocation3 + $0xe1] sm:$0xff] }
 0x34d   :  { %v1600_v9 = vpop.f32.mrf.mxu0  ;;  %v2119_v56 = vld [vmem:[#allocation3 + $0xe2] sm:$0xff] }
 0x34e   :  { %v1718_v54 = vpop.f32.mrf.mxu1  ;;  %v1629_v45 = vadd.f32 %v1598_v10, %v1511_v53  ;;  %v2013_v10 = vpack.c.bf16 %v4123_v52, %v2001_v57  ;;  %v4124_v53 = vld [vmem:[#allocation3 + $0xf2] sm:$0xff] }
 0x34f   :  { %v2131_v47 = vpack.c.bf16 %v4124_v53, %v2119_v56 }
 0x350   :  { %v5611_v55 = vadd.f32 %v1716_v5, %v1629_v45  ;;  %v913_v5 = vadd.f32 %v5336_v50, %v6681_v34 }
 0x351   :  { %v1364_v26 = vpop.f32.mrf.mxu2 }
 0x352   :  { %v1482_v44 = vpop.f32.mrf.mxu3  ;;  %v1394_v36 = vadd.f32 %v1364_v26, %v1275_v59  ;;  %v1041_v39 = vadd.f32 %v5342_v40, %v913_v5  ;;  %v4129_v5 = vld [vmem:[#allocation3 + $0x101] sm:$0xff] }
 0x354   :  { %v1512_v42 = vadd.f32 %v1482_v44, %v1394_v36  ;;  %v1159_v44 = vadd.f32 %v5338_v23, %v1041_v39  ;;  %v4126_v23 = vld [vmem:[#allocation3 + $0x110] sm:$0xff] }
 0x355   :  { %v1603_v48 = vpop.f32.mrf.mxu0 }
 0x356   :  { %v1721_v21 = vpop.f32.mrf.mxu1  ;;  %v1630_v45 = vadd.f32 %v1600_v9, %v1512_v42  ;;  %3972 = vmatmul.msk.bf16.gmra.mxu2 %vm511_vm3, %v1777_v35  ;;  %v1277_v35 = vadd.f32 %v5346_v46, %v1159_v44 }
 0x357   :  { %3981 = vmatmul.msk.bf16.gmra.mxu3 %vm511_vm3, %v1895_v2 }
 0x358   :  { %3990 = vmatmul.msk.bf16.gmra.mxu0 %vm511_vm3, %v2013_v10  ;;  %v5621_v20 = vadd.f32 %v1718_v54, %v1630_v45  ;;  %v5628_v10 = vld [vmem:[#allocation3 + $0xf4] sm:$0xff]  ;;  %v4131_v45 = vld [vmem:[#allocation3 + $0x102] sm:$0xff] }
 0x359   :  { %3999 = vmatmul.msk.bf16.gmra.mxu1 %vm511_vm3, %v2131_v47  ;;  %v1367_v22 = vpop.f32.mrf.mxu2  ;;  %v4127_v47 = vld [vmem:[#allocation3 + $0x100] sm:$0xff] }
 0x35a   :  { %v1485_v59 = vpop.f32.mrf.mxu3  ;;  %v1395_v26 = vadd.f32 %v1367_v22, %v5340_v49  ;;  %v6682_v49 = vld [vmem:[#allocation84_spill] sm:$0xff]  ;;  %v5632_v34 = vpack.c.bf16 %v4126_v23, %v4127_v47 }
 0x35b   :  { %v1778_v53 = vpack.c.bf16 %v6682_v49, %v5628_v10  ;;  %v6683_v22 = vld [vmem:[#allocation80_spill] sm:$0xff] }
 0x35c   :  { %v1513_v50 = vadd.f32 %v1485_v59, %v1395_v26  ;;  %v918_v59 = vadd.f32 %v5348_v0, %v6683_v22  ;;  %v4135_v22 = vld [vmem:[#allocation3 + $0x122] sm:$0xff] }
 0x35d   :  { %v1605_v9 = vpop.f32.mrf.mxu0 }
 0x35e   :  { %v1723_v36 = vpop.f32.mrf.mxu1  ;;  %v1631_v42 = vadd.f32 %v1603_v48, %v1513_v50  ;;  %v4128_v48 = vld [vmem:[#allocation3 + $0x111] sm:$0xff]  ;;  %v1043_v44 = vadd.f32 %v5373_v17, %v918_v59 }
 0x35f   :  { %v2014_v46 = vpack.c.bf16 %v4128_v48, %v4129_v5  ;;  %v5649_v48 = vld [vmem:[#allocation3 + $0x130] sm:$0xff] }
 0x360   :  { %v5626_v13 = vadd.f32 %v1721_v21, %v1631_v42  ;;  %v4130_v21 = vld [vmem:[#allocation3 + $0x112] sm:$0xff]  ;;  %v1161_v0 = vadd.f32 %v5357_v16, %v1043_v44 }
 0x361   :  { %v1369_v2 = vpop.f32.mrf.mxu2  ;;  %v2132_v39 = vpack.c.bf16 %v4130_v21, %v4131_v45  ;;  %v2124_v5 = vld [vmem:[#allocation3 + $0x132] sm:$0xff]  ;;  %v4133_v45 = vld [vmem:[#allocation3 + $0x120] sm:$0xff] }
 0x362   :  { %v1487_v57 = vpop.f32.mrf.mxu3  ;;  %v1396_v56 = vadd.f32 %v1369_v2, %v1277_v35  ;;  %v1279_v49 = vadd.f32 %v5378_v1, %v1161_v0  ;;  %v5653_v16 = vld [vmem:[#allocation3 + $0x114] sm:$0xff]  ;;  %v5658_v1 = vpack.c.bf16 %v5649_v48, %v4133_v45  ;;  %v2133_v59 = vpack.c.bf16 %v2124_v5, %v4135_v22 }
 0x363   :  { %v5690_v22 = vld [vmem:[#allocation3 + $0x134] sm:$0xff] }
 0x364   :  { %v1514_v40 = vadd.f32 %v1487_v57, %v1396_v56 }
 0x365   :  { %v1608_v54 = vpop.f32.mrf.mxu0 }
 0x366   :  { %v1726_v52 = vpop.f32.mrf.mxu1  ;;  %v1632_v26 = vadd.f32 %v1605_v9, %v1514_v40  ;;  %3973 = vmatmul.msk.bf16.gmra.mxu2 %vm511_vm3, %v1778_v53 }
 0x367   :  { %3982 = vmatmul.msk.bf16.gmra.mxu3 %vm511_vm3, %v5632_v34 }
 0x368   :  { %3991 = vmatmul.msk.bf16.gmra.mxu0 %vm511_vm3, %v2014_v46  ;;  %v5642_v50 = vadd.f32 %v1723_v36, %v1632_v26  ;;  %v5651_v36 = vld [vmem:[#allocation3 + $0x131] sm:$0xff] }
 0x369   :  { %4000 = vmatmul.msk.bf16.gmra.mxu1 %vm511_vm3, %v2132_v39  ;;  %v1372_v42 = vpop.f32.mrf.mxu2  ;;  %v6684_v26 = vld [vmem:[#allocation85_spill] sm:$0xff] }
 0x36a   :  { %v1490_v35 = vpop.f32.mrf.mxu3  ;;  %v1397_v2 = vadd.f32 %v1372_v42, %v5371_v38  ;;  %v923_v44 = vadd.f32 %v5381_v19, %v6684_v26 }
 0x36c   :  { %v1515_v9 = vadd.f32 %v1490_v35, %v1397_v2  ;;  %v4048_v35 = vld [vmem:[%s6375_s3 + $0x48] sm:$0xf]  ;;  %v1045_v19 = vadd.f32 %v5398_v63, %v923_v44  ;;  %v4057_v63 = vld [vmem:[%s6375_s3 + $0x4c] sm:$0xf] }
 0x36d   :  { %v1610_v57 = vpop.f32.mrf.mxu0  ;;  %v2871_v0 = vsel %vm528_vm2, %v4048_v35, 0 }
 0x36e   :  { %v1728_v56 = vpop.f32.mrf.mxu1  ;;  %v1633_v40 = vadd.f32 %v1608_v54, %v1515_v9  ;;  %v1779_v54 = vpack.c.bf16 %v5185_v43, %v5653_v16  ;;  %v4039_v43 = vld [vmem:[%s6375_s3 + $0x44] sm:$0xf]  ;;  %2880 = vmatpush.bf16.msrb.mxu3 %v2871_v0 }
 0x36f   :  { %v2753_v2 = vsel %vm528_vm2, %v4039_v43, 0  ;;  %v2126_v43 = vld [vmem:[#allocation3 + $0x152] sm:$0xff] }
 0x370   :  { %v5647_v53 = vadd.f32 %v1726_v52, %v1633_v40  ;;  %v4134_v52 = vld [vmem:[#allocation3 + $0x121] sm:$0xff]  ;;  %2762 = vmatpush.bf16.msrb.mxu2 %v2753_v2  ;;  %v928_v2 = vadd.f32 %v5418_v3, %v5188_v7 }
 0x371   :  { %v1374_v23 = vpop.f32.mrf.mxu2  ;;  %v2015_v39 = vpack.c.bf16 %v5651_v36, %v4134_v52 }
 0x372   :  { %v1492_v47 = vpop.f32.mrf.mxu3  ;;  %v1398_v17 = vadd.f32 %v1374_v23, %v1279_v49  ;;  %v1163_v23 = vadd.f32 %v5383_v14, %v1045_v19  ;;  %v2134_v19 = vpack.c.bf16 %v2126_v43, %v5500_v24  ;;  %v1047_v24 = vadd.f32 %v5434_v11, %v928_v2  ;;  %v4136_v2 = vld [vmem:[#allocation3 + $0x33] sm:$0xff] }
 0x374   :  { %v1516_v46 = vadd.f32 %v1492_v47, %v1398_v17 }
 0x375   :  { %v1613_v38 = vpop.f32.mrf.mxu0 }
 0x376   :  { %v1731_v21 = vpop.f32.mrf.mxu1  ;;  %v1634_v42 = vadd.f32 %v1610_v57, %v1516_v46  ;;  %3974 = vmatmul.msk.bf16.gmra.mxu2 %vm511_vm3, %v1779_v54  ;;  %v2989_v54 = vsel %vm528_vm2, %v4057_v63, 0  ;;  %v1165_v63 = vadd.f32 %v5420_v41, %v1047_v24 }
 0x377   :  { %3983 = vmatmul.msk.bf16.gmra.mxu3 %vm511_vm3, %v5658_v1  ;;  %2998 = vmatpush.bf16.msrb.mxu0 %v2989_v54 }
 0x378   :  { %3992 = vmatmul.msk.bf16.gmra.mxu0 %vm511_vm3, %v2015_v39  ;;  %v5677_v9 = vadd.f32 %v1728_v56, %v1634_v42  ;;  %v1281_v56 = vadd.f32 %v5408_v12, %v1163_v23  ;;  %v6685_v23 = vld [vmem:[#allocation79_spill] sm:$0xff] }
 0x379   :  { %4001 = vmatmul.msk.bf16.gmra.mxu1 %vm511_vm3, %v2133_v59  ;;  %v1377_v57 = vpop.f32.mrf.mxu2  ;;  %v5692_v59 = vld [vmem:[#allocation3 + $0x150] sm:$0xff] }
 0x37a   :  { %v1495_v40 = vpop.f32.mrf.mxu3  ;;  %v1399_v49 = vadd.f32 %v1377_v57, %v5396_v62  ;;  %v5688_v62 = vld [vmem:[#allocation3 + $0x144] sm:$0xff]  ;;  %v1898_v12 = vpack.c.bf16 %v5692_v59, %v5494_v58  ;;  %v4066_v57 = vld [vmem:[%s6375_s3 + $0x50] sm:$0xf] }
 0x37b   :  { %v5696_v42 = vpack.c.bf16 %v5688_v62, %v5690_v22 }
 0x37c   :  { %v1517_v47 = vadd.f32 %v1495_v40, %v1399_v49  ;;  %v3108_v40 = vsel %vm528_vm2, %v4066_v57, 0  ;;  %v4137_v57 = vld [vmem:[#allocation3 + $0x34] sm:$0xff] }
 0x37d   :  { %v1615_v17 = vpop.f32.mrf.mxu0  ;;  %3117 = vmatpush.bf16.msrb.mxu1 %v3108_v40  ;;  %v2466_v40 = vld [vmem:[#allocation3 + $0x30] sm:$0xff] }
 0x37e   :  { %v1733_v5 = vpop.f32.mrf.mxu1  ;;  %v1635_v46 = vadd.f32 %v1613_v38, %v1517_v47  ;;  %v893_v47 = vadd.f32 %v5222_v29, %v6685_v23  ;;  %v2229_v29 = vld [vmem:[#allocation3 + $0x23] sm:$0xff]  ;;  %v6687_v23 = vld [vmem:[#allocation82_spill] sm:$0xff] }
 0x380   :  { %v5686_v45 = vadd.f32 %v1731_v21, %v1635_v46  ;;  %v5700_v21 = vld [vmem:[#allocation3 + $0x151] sm:$0xff]  ;;  %v1033_v46 = vadd.f32 %v5236_v8, %v893_v47 }
 0x381   :  { %v1379_v52 = vpop.f32.mrf.mxu2  ;;  %v2016_v35 = vpack.c.bf16 %v5700_v21, %v5496_v33 }
 0x382   :  { %v1497_v39 = vpop.f32.mrf.mxu3  ;;  %v1400_v14 = vadd.f32 %v1379_v52, %v1281_v56  ;;  %v1151_v11 = vadd.f32 %v5224_v27, %v1033_v46  ;;  %v2482_v27 = vpack.c.bf16 %v5539_v32, %v2466_v40  ;;  %v6694_v40 = vld [vmem:[#allocation68_spill] sm:$0xff] }
 0x384   :  { %v1518_v38 = vadd.f32 %v1497_v39, %v1400_v14 }
 0x385   :  { %v1618_v26 = vpop.f32.mrf.mxu0 }
 0x386   :  { %v1736_v44 = vpop.f32.mrf.mxu1  ;;  %v1636_v0 = vadd.f32 %v1615_v17, %v1518_v38  ;;  %3975 = vmatmul.msk.bf16.gmra.mxu2 %vm511_vm3, %v5696_v42 }
 0x387   :  { %3984 = vmatmul.msk.bf16.gmra.mxu3 %vm511_vm3, %v1898_v12 }
 0x388   :  { %3993 = vmatmul.msk.bf16.gmra.mxu0 %vm511_vm3, %v2016_v35  ;;  %v5717_v7 = vadd.f32 %v1733_v5, %v1636_v0  ;;  %v1283_v5 = vadd.f32 %v5449_v18, %v1165_v63  ;;  %v2347_v35 = vld [vmem:[#allocation3 + $0x24] sm:$0xff]  ;;  %v2245_v0 = vpack.c.bf16 %v4136_v2, %v2229_v29 }
 0x389   :  { %4002 = vmatmul.msk.bf16.gmra.mxu1 %vm511_vm3, %v2134_v19  ;;  %v1382_v3 = vpop.f32.mrf.mxu2  ;;  %v4138_v29 = vld [vmem:[#allocation3 + $0x43] sm:$0xff] }
 0x38a   :  { %v1500_v49 = vpop.f32.mrf.mxu3  ;;  %v1401_v17 = vadd.f32 %v1382_v3, %v5432_v51  ;;  %v1269_v51 = vadd.f32 %v5260_v28, %v1151_v11  ;;  %v6686_v28 = vpack.c.bf16 %v6660_v15, %v6647_v61 }
 0x38c   :  { %v1519_v54 = vadd.f32 %v1500_v49, %v1401_v17  ;;  %v1388_v18 = vadd.f32 %v5451_v4, %v1269_v51  ;;  %v898_v4 = vadd.f32 %v5273_v31, %v6687_v23  ;;  %v6689_v31 = vld [vmem:[#allocation61_spill] sm:$0xff]  ;;  %v4140_v51 = vld [vmem:[#allocation3 + $0x44] sm:$0xff] }
 0x38d   :  { %v1620_v56 = vpop.f32.mrf.mxu0  ;;  %v6698_v23 = vld [vmem:[#allocation89_spill] sm:$0xff] }
 0x38e   :  { %v1738_v52 = vpop.f32.mrf.mxu1  ;;  %v1637_v39 = vadd.f32 %v1618_v26, %v1519_v54  ;;  %v2363_v26 = vpack.c.bf16 %v4137_v57, %v2347_v35  ;;  %v1506_v24 = vadd.f32 %v5465_v6, %v1388_v18  ;;  %v1035_v17 = vadd.f32 %v5283_v60, %v898_v4  ;;  %v6688_v6 = vld [vmem:[#allocation23_spill] sm:$0xff]  ;;  %v6692_v57 = vld [vmem:[#allocation65_spill] sm:$0xff] }
 0x38f   :  { %v6699_v4 = vld [vmem:[#allocation93_spill] sm:$0xff] }
 0x390   :  { %v5726_v14 = vadd.f32 %v1736_v44, %v1637_v39  ;;  %v1624_v46 = vadd.f32 %v5453_v37, %v1506_v24  ;;  %v4139_v37 = vld [vmem:[#allocation3 + $0x53] sm:$0xff] }
 0x391   :  { %v1384_v38 = vpop.f32.mrf.mxu2  ;;  %v5751_v35 = vpack.c.bf16 %v4139_v37, %v4138_v29 }
 0x392   :  { %v1502_v12 = vpop.f32.mrf.mxu3  ;;  %v1402_v43 = vadd.f32 %v1384_v38, %v1283_v5 }
 0x394   :  { %v1520_v8 = vadd.f32 %v1502_v12, %v1402_v43 }
 0x395   :  { %v2055_v19 = vpop.f32.mrf.mxu0 }
 0x396   :  { %v2173_v41 = vpop.f32.mrf.mxu1  ;;  %v1638_v44 = vadd.f32 %v1620_v56, %v1520_v8  ;;  %4004 = vmatmul.msk.bf16.vlgmr.msra.gmra.mxu2 %vm511_vm3, %v2245_v0  ;;  %v1153_v56 = vadd.f32 %v5278_v30, %v1035_v17  ;;  %v4141_v8 = vld [vmem:[#allocation3 + $0x54] sm:$0xff]  ;;  %v6690_v30 = vld [vmem:[#allocation44_spill] sm:$0xff] }
 0x397   :  { %4013 = vmatmul.msk.bf16.vlgmr.msra.gmra.mxu3 %vm511_vm3, %v2363_v26  ;;  %v6691_v0 = vld [vmem:[#allocation66_spill] sm:$0xff]  ;;  %v6700_v17 = vld [vmem:[#allocation25_spill] sm:$0xff] }
 0x398   :  { %4022 = vmatmul.msk.bf16.vlgmr.msra.gmra.mxu0 %vm511_vm3, %v2482_v27  ;;  %v5739_v3 = vadd.f32 %v1738_v52, %v1638_v44  ;;  %v1742_v52 = vadd.f32 %v6688_v6, %v1624_v46  ;;  %v1271_v12 = vadd.f32 %v6689_v31, %v1153_v56  ;;  %v6693_v26 = vpack.c.bf16 %v6691_v0, %v6692_v57  ;;  %v6695_v27 = vld [vmem:[#allocation67_spill] sm:$0xff]  ;;  %v6697_v44 = vld [vmem:[#allocation28_spill] sm:$0xff] }
 0x399   :  { %4031 = vmatmul.msk.bf16.vlgmr.msra.gmra.mxu1 %vm511_vm3, %v6686_v28  ;;  %v1819_v49 = vpop.f32.mrf.mxu2  ;;  %v6696_v18 = vpack.c.bf16 %v6694_v40, %v6695_v27  ;;  %v4142_v40 = vld [vmem:[#allocation3 + $0x63] sm:$0xff] }
 0x39a   :  { %v1937_v32 = vpop.f32.mrf.mxu3  ;;  %v1859_v47 = vadd.f32 %v1819_v49, %v5463_v25  ;;  %v1390_v2 = vadd.f32 %v6690_v30, %v1271_v12  ;;  %v6704_v12 = vld [vmem:[#allocation24_spill] sm:$0xff] }
 0x39b   :  { %v4143_v27 = vld [vmem:[#allocation3 + $0x64] sm:$0xff] }
 0x39c   :  { %v1977_v63 = vadd.f32 %v1937_v32, %v1859_v47  ;;  %v1508_v28 = vadd.f32 %v6697_v44, %v1390_v2  ;;  %v903_v47 = vadd.f32 %v6699_v4, %v6698_v23  ;;  %v6705_v2 = vld [vmem:[#allocation96_spill] sm:$0xff]  ;;  %v6707_v44 = vld [vmem:[#allocation97_spill] sm:$0xff]  ;;  %v6710_v4 = vld [vmem:[#allocation22_spill] sm:$0xff] }
 0x39d   :  { %v2057_v54 = vpop.f32.mrf.mxu0 }
 0x39e   :  { %v2175_v61 = vpop.f32.mrf.mxu1  ;;  %v2095_v15 = vadd.f32 %v2055_v19, %v1977_v63  ;;  %v5753_v19 = vpack.c.bf16 %v4141_v8, %v4140_v51  ;;  %v6701_v63 = vld [vmem:[#allocation95_spill] sm:$0xff]  ;;  %v5780_v51 = vld [vmem:[#allocation3 + $0x73] sm:$0xff] }
 0x39f   :  { %v5782_v8 = vld [vmem:[#allocation3 + $0x74] sm:$0xff] }
 0x3a0   :  { %v5748_v39 = vadd.f32 %v2173_v41, %v2095_v15  ;;  %v6702_v15 = vld [vmem:[#allocation29_spill] sm:$0xff] }
 0x3a1   :  { %v1821_v11 = vpop.f32.mrf.mxu2  ;;  %v1626_v56 = vadd.f32 %v6702_v15, %v1508_v28 }
 0x3a2   :  { %v1939_v5 = vpop.f32.mrf.mxu3  ;;  %v1860_v38 = vadd.f32 %v1821_v11, %v1742_v52 }
 0x3a4   :  { %v1978_v25 = vadd.f32 %v1939_v5, %v1860_v38  ;;  %v6703_v38 = vld [vmem:[#allocation94_spill] sm:$0xff] }
 0x3a5   :  { %v2060_v43 = vpop.f32.mrf.mxu0 }
 0x3a6   :  { %v2178_v60 = vpop.f32.mrf.mxu1  ;;  %v2096_v41 = vadd.f32 %v2057_v54, %v1978_v25  ;;  %4005 = vmatmul.msk.bf16.gmra.mxu2 %vm511_vm3, %v5751_v35  ;;  %v1037_v54 = vadd.f32 %v6701_v63, %v903_v47 }
 0x3a7   :  { %4014 = vmatmul.msk.bf16.gmra.mxu3 %vm511_vm3, %v5753_v19 }
 0x3a8   :  { %4023 = vmatmul.msk.bf16.gmra.mxu0 %vm511_vm3, %v6693_v26  ;;  %v5769_v24 = vadd.f32 %v2175_v61, %v2096_v41  ;;  %v1155_v31 = vadd.f32 %v6703_v38, %v1037_v54  ;;  %v1744_v61 = vadd.f32 %v6704_v12, %v1626_v56  ;;  %v6713_v38 = vld [vmem:[#allocation87_spill] sm:$0xff] }
 0x3a9   :  { %4032 = vmatmul.msk.bf16.gmra.mxu1 %vm511_vm3, %v6696_v18  ;;  %v1824_v49 = vpop.f32.mrf.mxu2  ;;  %v6706_v18 = vld [vmem:[#allocation83_spill] sm:$0xff] }
 0x3aa   :  { %v1942_v32 = vpop.f32.mrf.mxu3  ;;  %v1861_v46 = vadd.f32 %v1824_v49, %v6700_v17  ;;  %v1273_v41 = vadd.f32 %v6705_v2, %v1155_v31  ;;  %v2484_v28 = vpack.c.bf16 %v6707_v44, %v6706_v18  ;;  %v6708_v49 = vld [vmem:[#allocation64_spill] sm:$0xff] }
 0x3ab   :  { %v5814_v18 = vld [vmem:[#allocation3 + $0xa1] sm:$0xff] }
 0x3ac   :  { %v1979_v6 = vadd.f32 %v1942_v32, %v1861_v46  ;;  %v6709_v32 = vld [vmem:[#allocation98_spill] sm:$0xff]  ;;  %v1392_v47 = vadd.f32 %v6710_v4, %v1273_v41  ;;  %v6711_v46 = vld [vmem:[#allocation21_spill] sm:$0xff] }
 0x3ad   :  { %v2062_v52 = vpop.f32.mrf.mxu0  ;;  %v2602_v23 = vpack.c.bf16 %v6709_v32, %v6708_v49  ;;  %v6715_v32 = vld [vmem:[#allocation99_spill] sm:$0xff] }
 0x3ae   :  { %v2180_v11 = vpop.f32.mrf.mxu1  ;;  %v2097_v5 = vadd.f32 %v2060_v43, %v1979_v6  ;;  %v5786_v43 = vpack.c.bf16 %v5780_v51, %v4142_v40  ;;  %v1510_v63 = vadd.f32 %v6711_v46, %v1392_v47  ;;  %v6712_v6 = vld [vmem:[#allocation34_spill] sm:$0xff]  ;;  %v6719_v46 = vld [vmem:[#allocation75_spill] sm:$0xff] }
 0x3af   :  { %v5810_v40 = vld [vmem:[#allocation3 + $0x94] sm:$0xff] }
 0x3b0   :  { %v5778_v25 = vadd.f32 %v2178_v60, %v2097_v5  ;;  %v5789_v60 = vpack.c.bf16 %v5782_v8, %v4143_v27  ;;  %v5812_v27 = vld [vmem:[#allocation3 + $0xa0] sm:$0xff] }
 0x3b1   :  { %v1826_v29 = vpop.f32.mrf.mxu2 }
 0x3b2   :  { %v1944_v37 = vpop.f32.mrf.mxu3  ;;  %v1862_v30 = vadd.f32 %v1826_v29, %v1744_v61 }
 0x3b4   :  { %v1980_v0 = vadd.f32 %v1944_v37, %v1862_v30  ;;  %v6714_v37 = vld [vmem:[#allocation55_spill] sm:$0xff] }
 0x3b5   :  { %v2065_v57 = vpop.f32.mrf.mxu0 }
 0x3b6   :  { %v2183_v26 = vpop.f32.mrf.mxu1  ;;  %v2098_v17 = vadd.f32 %v2062_v52, %v1980_v0  ;;  %4006 = vmatmul.msk.bf16.gmra.mxu2 %vm511_vm3, %v5786_v43  ;;  %v1628_v52 = vadd.f32 %v6713_v38, %v1510_v63  ;;  %v2603_v63 = vpack.c.bf16 %v5814_v18, %v6719_v46 }
 0x3b7   :  { %4015 = vmatmul.msk.bf16.gmra.mxu3 %vm511_vm3, %v5789_v60 }
 0x3b8   :  { %4024 = vmatmul.msk.bf16.gmra.mxu0 %vm511_vm3, %v2484_v28  ;;  %v5803_v54 = vadd.f32 %v2180_v11, %v2098_v17  ;;  %v1746_v30 = vadd.f32 %v6714_v37, %v1628_v52 }
 0x3b9   :  { %4033 = vmatmul.msk.bf16.gmra.mxu1 %vm511_vm3, %v2602_v23  ;;  %v1829_v15 = vpop.f32.mrf.mxu2  ;;  %v6716_v23 = vld [vmem:[#allocation102_spill] sm:$0xff] }
 0x3ba   :  { %v1947_v56 = vpop.f32.mrf.mxu3  ;;  %v1863_v5 = vadd.f32 %v1829_v15, %v6712_v6  ;;  %v2248_v4 = vpack.c.bf16 %v6716_v23, %v6715_v32 }
 0x3bc   :  { %v1981_v31 = vadd.f32 %v1947_v56, %v1863_v5 }
 0x3bd   :  { %v2067_v12 = vpop.f32.mrf.mxu0 }
 0x3be   :  { %v2185_v61 = vpop.f32.mrf.mxu1  ;;  %v2099_v29 = vadd.f32 %v2065_v57, %v1981_v31  ;;  %v6717_v57 = vld [vmem:[#allocation73_spill] sm:$0xff] }
 0x3bf   :  { %v2366_v47 = vpack.c.bf16 %v5810_v40, %v6717_v57 }
 0x3c0   :  { %v5808_v2 = vadd.f32 %v2183_v26, %v2099_v29  ;;  %v6718_v26 = vld [vmem:[#allocation74_spill] sm:$0xff] }
 0x3c1   :  { %v1831_v41 = vpop.f32.mrf.mxu2  ;;  %v2485_v17 = vpack.c.bf16 %v5812_v27, %v6718_v26 }
 0x3c2   :  { %v1949_v0 = vpop.f32.mrf.mxu3  ;;  %v1864_v11 = vadd.f32 %v1831_v41, %v1746_v30 }
 0x3c4   :  { %v1982_v44 = vadd.f32 %v1949_v0, %v1864_v11  ;;  %v2237_v11 = vld [vmem:[#allocation3 + $0xe3] sm:$0xff] }
 0x3c5   :  { %v2070_v28 = vpop.f32.mrf.mxu0 }
 0x3c6   :  { %v2188_v49 = vpop.f32.mrf.mxu1  ;;  %v2100_v15 = vadd.f32 %v2067_v12, %v1982_v44  ;;  %4007 = vmatmul.msk.bf16.gmra.mxu2 %vm511_vm3, %v2248_v4  ;;  %v2355_v44 = vld [vmem:[#allocation3 + $0xe4] sm:$0xff] }
 0x3c7   :  { %4016 = vmatmul.msk.bf16.gmra.mxu3 %vm511_vm3, %v2366_v47  ;;  %v4144_v47 = vld [vmem:[#allocation3 + $0xf3] sm:$0xff]  ;;  %v2367_v46 = vpack.c.bf16 %v5628_v10, %v2355_v44 }
 0x3c8   :  { %4025 = vmatmul.msk.bf16.gmra.mxu0 %vm511_vm3, %v2485_v17  ;;  %v5828_v56 = vadd.f32 %v2185_v61, %v2100_v15  ;;  %v2249_v17 = vpack.c.bf16 %v4144_v47, %v2237_v11  ;;  %v6724_v15 = vld [vmem:[#allocation50_spill] sm:$0xff] }
 0x3c9   :  { %4034 = vmatmul.msk.bf16.gmra.mxu1 %vm511_vm3, %v2603_v63  ;;  %v1834_v6 = vpop.f32.mrf.mxu2 }
 0x3ca   :  { %v1952_v5 = vpop.f32.mrf.mxu3  ;;  %v1865_v38 = vadd.f32 %v1834_v6, %v5611_v55 }
 0x3cc   :  { %v1983_v52 = vadd.f32 %v1952_v5, %v1865_v38 }
 0x3cd   :  { %v2072_v31 = vpop.f32.mrf.mxu0 }
 0x3ce   :  { %v2190_v29 = vpop.f32.mrf.mxu1  ;;  %v2101_v37 = vadd.f32 %v2070_v28, %v1983_v52  ;;  %v6720_v28 = vld [vmem:[#allocation45_spill] sm:$0xff] }
 0x3d0   :  { %v5831_v30 = vadd.f32 %v2188_v49, %v2101_v37  ;;  %v6721_v49 = vld [vmem:[#allocation49_spill] sm:$0xff] }
 0x3d1   :  { %v1836_v12 = vpop.f32.mrf.mxu2  ;;  %v6722_v63 = vpack.c.bf16 %v6720_v28, %v6721_v49  ;;  %v4145_v28 = vld [vmem:[#allocation3 + $0x113] sm:$0xff]  ;;  %v5853_v49 = vld [vmem:[#allocation3 + $0x104] sm:$0xff] }
 0x3d2   :  { %v1954_v41 = vpop.f32.mrf.mxu3  ;;  %v1866_v0 = vadd.f32 %v1836_v12, %v5621_v20  ;;  %v6723_v20 = vld [vmem:[#allocation46_spill] sm:$0xff] }
 0x3d3   :  { %v6725_v6 = vpack.c.bf16 %v6723_v20, %v6724_v15  ;;  %v6729_v20 = vld [vmem:[#allocation37_spill] sm:$0xff]  ;;  %v6730_v15 = vld [vmem:[#allocation31_spill] sm:$0xff] }
 0x3d4   :  { %v1984_v32 = vadd.f32 %v1954_v41, %v1866_v0 }
 0x3d5   :  { %v2075_v4 = vpop.f32.mrf.mxu0 }
 0x3d6   :  { %v2193_v61 = vpop.f32.mrf.mxu1  ;;  %v2102_v55 = vadd.f32 %v2072_v31, %v1984_v32  ;;  %4008 = vmatmul.msk.bf16.gmra.mxu2 %vm511_vm3, %v2249_v17 }
 0x3d7   :  { %4017 = vmatmul.msk.bf16.gmra.mxu3 %vm511_vm3, %v2367_v46 }
 0x3d8   :  { %4026 = vmatmul.msk.bf16.gmra.mxu0 %vm511_vm3, %v6722_v63  ;;  %v5845_v5 = vadd.f32 %v2190_v29, %v2102_v55  ;;  %v4146_v29 = vld [vmem:[#allocation3 + $0x103] sm:$0xff] }
 0x3d9   :  { %4035 = vmatmul.msk.bf16.gmra.mxu1 %vm511_vm3, %v6725_v6  ;;  %v1839_v38 = vpop.f32.mrf.mxu2  ;;  %v5851_v55 = vpack.c.bf16 %v4145_v28, %v4146_v29  ;;  %v6731_v6 = vpack.c.bf16 %v6729_v20, %v6730_v15  ;;  %v5873_v28 = vld [vmem:[#allocation3 + $0x133] sm:$0xff] }
 0x3da   :  { %v1957_v52 = vpop.f32.mrf.mxu3  ;;  %v1867_v10 = vadd.f32 %v1839_v38, %v5626_v13  ;;  %v2368_v13 = vpack.c.bf16 %v5653_v16, %v5853_v49 }
 0x3dc   :  { %v1985_v31 = vadd.f32 %v1957_v52, %v1867_v10 }
 0x3dd   :  { %v2077_v37 = vpop.f32.mrf.mxu0 }
 0x3de   :  { %v2195_v12 = vpop.f32.mrf.mxu1  ;;  %v2103_v41 = vadd.f32 %v2075_v4, %v1985_v31  ;;  %v6726_v4 = vld [vmem:[#allocation36_spill] sm:$0xff] }
 0x3e0   :  { %v5848_v0 = vadd.f32 %v2193_v61, %v2103_v41 }
 0x3e1   :  { %v1841_v11 = vpop.f32.mrf.mxu2 }
 0x3e2   :  { %v1959_v44 = vpop.f32.mrf.mxu3  ;;  %v1868_v32 = vadd.f32 %v1841_v11, %v5642_v50  ;;  %v6727_v50 = vld [vmem:[#allocation30_spill] sm:$0xff] }
 0x3e3   :  { %v6728_v61 = vpack.c.bf16 %v6726_v4, %v6727_v50 }
 0x3e4   :  { %v1986_v47 = vadd.f32 %v1959_v44, %v1868_v32 }
 0x3e5   :  { %v2080_v17 = vpop.f32.mrf.mxu0 }
 0x3e6   :  { %v2198_v46 = vpop.f32.mrf.mxu1  ;;  %v2104_v63 = vadd.f32 %v2077_v37, %v1986_v47  ;;  %4009 = vmatmul.msk.bf16.gmra.mxu2 %vm511_vm3, %v5851_v55 }
 0x3e7   :  { %4018 = vmatmul.msk.bf16.gmra.mxu3 %vm511_vm3, %v2368_v13 }
 0x3e8   :  { %4027 = vmatmul.msk.bf16.gmra.mxu0 %vm511_vm3, %v6728_v61  ;;  %v5868_v38 = vadd.f32 %v2195_v12, %v2104_v63  ;;  %v4148_v63 = vld [vmem:[#allocation3 + $0x123] sm:$0xff]  ;;  %v2606_v61 = vpack.c.bf16 %v5496_v33, %v5651_v36 }
 0x3e9   :  { %4036 = vmatmul.msk.bf16.gmra.mxu1 %vm511_vm3, %v6731_v6  ;;  %v1844_v52 = vpop.f32.mrf.mxu2  ;;  %v5877_v50 = vpack.c.bf16 %v5873_v28, %v4148_v63  ;;  %v5914_v63 = vld [vmem:[#allocation3 + $0x154] sm:$0xff] }
 0x3ea   :  { %v1962_v16 = vpop.f32.mrf.mxu3  ;;  %v1869_v10 = vadd.f32 %v1844_v52, %v5647_v53  ;;  %v5879_v53 = vld [vmem:[#allocation3 + $0x124] sm:$0xff] }
 0x3ec   :  { %v1987_v31 = vadd.f32 %v1962_v16, %v1869_v10 }
 0x3ed   :  { %v2082_v37 = vpop.f32.mrf.mxu0 }
 0x3ee   :  { %v2200_v41 = vpop.f32.mrf.mxu1  ;;  %v2105_v11 = vadd.f32 %v2080_v17, %v1987_v31  ;;  %v2369_v17 = vpack.c.bf16 %v5690_v22, %v5879_v53 }
 0x3f0   :  { %v5871_v44 = vadd.f32 %v2198_v46, %v2105_v11  ;;  %v2488_v46 = vpack.c.bf16 %v5494_v58, %v5649_v48  ;;  %v4084_v58 = vld [vmem:[%s6375_s3 + $0x58] sm:$0xf] }
 0x3f1   :  { %v1846_v32 = vpop.f32.mrf.mxu2  ;;  %v3344_v48 = vsel %vm528_vm2, %v4084_v58, 0 }
 0x3f2   :  { %v1964_v47 = vpop.f32.mrf.mxu3  ;;  %v1870_v29 = vadd.f32 %v1846_v32, %v5677_v9  ;;  %v4075_v9 = vld [vmem:[%s6375_s3 + $0x54] sm:$0xf]  ;;  %3353 = vmatpush.bf16.msra.mxu3 %v3344_v48  ;;  %v4102_v48 = vld [vmem:[%s6375_s3 + $0x60] sm:$0xf] }
 0x3f3   :  { %v3226_v33 = vsel %vm528_vm2, %v4075_v9, 0 }
 0x3f4   :  { %v1988_v13 = vadd.f32 %v1964_v47, %v1870_v29  ;;  %3235 = vmatpush.bf16.msra.mxu2 %v3226_v33 }
 0x3f5   :  { %v2085_v4 = vpop.f32.mrf.mxu0 }
 0x3f6   :  { %v2203_v12 = vpop.f32.mrf.mxu1  ;;  %v2106_v20 = vadd.f32 %v2082_v37, %v1988_v13  ;;  %4010 = vmatmul.msk.bf16.gmra.mxu2 %vm511_vm3, %v5877_v50  ;;  %v4093_v37 = vld [vmem:[%s6375_s3 + $0x5c] sm:$0xf]  ;;  %v5910_v13 = vld [vmem:[#allocation3 + $0x160] sm:$0xff] }
 0x3f7   :  { %4019 = vmatmul.msk.bf16.gmra.mxu3 %vm511_vm3, %v2369_v17  ;;  %v3462_v11 = vsel %vm528_vm2, %v4093_v37, 0  ;;  %v2489_v58 = vpack.c.bf16 %v5910_v13, %v5692_v59 }
 0x3f8   :  { %4028 = vmatmul.msk.bf16.gmra.mxu0 %vm511_vm3, %v2488_v46  ;;  %v5900_v36 = vadd.f32 %v2200_v41, %v2106_v20  ;;  %v6733_v20 = vld [vmem:[#allocation100_spill] sm:$0xff] }
 0x3f9   :  { %4037 = vmatmul.msk.bf16.gmra.mxu1 %vm511_vm3, %v2606_v61  ;;  %v1849_v22 = vpop.f32.mrf.mxu2  ;;  %3471 = vmatpush.bf16.msra.mxu0 %v3462_v11  ;;  %v6732_v61 = vld [vmem:[#allocation43_spill] sm:$0xff] }
 0x3fa   :  { %v1967_v15 = vpop.f32.mrf.mxu3  ;;  %v1871_v6 = vadd.f32 %v1849_v22, %v5686_v45  ;;  %v5912_v45 = vld [vmem:[#allocation3 + $0x161] sm:$0xff]  ;;  %v2252_v9 = vpack.c.bf16 %v6733_v20, %v6732_v61 }
 0x3fc   :  { %v1989_v52 = vadd.f32 %v1967_v15, %v1871_v6 }
 0x3fd   :  { %v2087_v16 = vpop.f32.mrf.mxu0 }
 0x3fe   :  { %v2205_v10 = vpop.f32.mrf.mxu1  ;;  %v2107_v31 = vadd.f32 %v2085_v4, %v1989_v52 }
 0x400   :  { %v5907_v32 = vadd.f32 %v2203_v12, %v2107_v31  ;;  %v2370_v12 = vpack.c.bf16 %v5914_v63, %v5688_v62  ;;  %v3580_v62 = vsel %vm528_vm2, %v4102_v48, 0 }
 0x401   :  { %v1851_v41 = vpop.f32.mrf.mxu2  ;;  %3589 = vmatpush.bf16.msra.mxu1 %v3580_v62 }
 0x402   :  { %v1969_v47 = vpop.f32.mrf.mxu3  ;;  %v1872_v29 = vadd.f32 %v1851_v41, %v5717_v7  ;;  %v2607_v7 = vpack.c.bf16 %v5912_v45, %v5700_v21 }
 0x404   :  { %v1990_v4 = vadd.f32 %v1969_v47, %v1872_v29 }
 0x405   :  { %v2090_v17 = vpop.f32.mrf.mxu0 }
 0x406   :  { %v2208_v46 = vpop.f32.mrf.mxu1  ;;  %v2108_v33 = vadd.f32 %v2087_v16, %v1990_v4  ;;  %4011 = vmatmul.msk.bf16.gmra.mxu2 %vm511_vm3, %v2252_v9  ;;  %v2702_v4 = vld [vmem:[#allocation3 + $0x32] sm:$0xff] }
 0x407   :  { %4020 = vmatmul.msk.bf16.gmra.mxu3 %vm511_vm3, %v2370_v12 }
 0x408   :  { %4029 = vmatmul.msk.bf16.gmra.mxu0 %vm511_vm3, %v2489_v58  ;;  %v5932_v22 = vadd.f32 %v2205_v10, %v2108_v33  ;;  %v6734_v10 = vld [vmem:[#allocation26_spill] sm:$0xff] }
 0x409   :  { %4038 = vmatmul.msk.bf16.gmra.mxu1 %vm511_vm3, %v2607_v7  ;;  %v1854_v15 = vpop.f32.mrf.mxu2  ;;  %v2718_v58 = vpack.c.bf16 %v6734_v10, %v2702_v4  ;;  %v6736_v33 = vld [vmem:[#allocation58_spill] sm:$0xff]  ;;  %v5955_v10 = vld [vmem:[#allocation3 + $0x62] sm:$0xff] }
 0x40a   :  { %v1972_v21 = vpop.f32.mrf.mxu3  ;;  %v1873_v6 = vadd.f32 %v1854_v15, %v5726_v14  ;;  %v6735_v14 = vld [vmem:[#allocation59_spill] sm:$0xff] }
 0x40b   :  { %v6737_v48 = vpack.c.bf16 %v6735_v14, %v6736_v33 }
 0x40c   :  { %v1991_v52 = vadd.f32 %v1972_v21, %v1873_v6 }
 0x40d   :  { %v2092_v16 = vpop.f32.mrf.mxu0 }
 0x40e   :  { %v2210_v31 = vpop.f32.mrf.mxu1  ;;  %v2109_v37 = vadd.f32 %v2090_v17, %v1991_v52  ;;  %v6738_v17 = vld [vmem:[#allocation60_spill] sm:$0xff] }
 0x410   :  { %v5935_v11 = vadd.f32 %v2208_v46, %v2109_v37  ;;  %v6739_v46 = vld [vmem:[#allocation56_spill] sm:$0xff] }
 0x411   :  { %v1856_v41 = vpop.f32.mrf.mxu2  ;;  %v6740_v62 = vpack.c.bf16 %v6738_v17, %v6739_v46  ;;  %v6744_v46 = vld [vmem:[#allocation71_spill] sm:$0xff] }
 0x412   :  { %v1974_v47 = vpop.f32.mrf.mxu3  ;;  %v1874_v29 = vadd.f32 %v1856_v41, %v5739_v3  ;;  %v6741_v3 = vld [vmem:[#allocation33_spill] sm:$0xff] }
 0x414   :  { %v1992_v61 = vadd.f32 %v1974_v47, %v1874_v29 }
 0x415   :  { %v2528_v9 = vpop.f32.mrf.mxu0 }
 0x416   :  { %v2646_v12 = vpop.f32.mrf.mxu1  ;;  %v2110_v7 = vadd.f32 %v2092_v16, %v1992_v61  ;;  %4040 = vmatmul.msk.bf16.vlgmr.msrb.gmra.mxu2 %vm511_vm3, %v2718_v58 }
 0x417   :  { %4049 = vmatmul.msk.bf16.vlgmr.msrb.gmra.mxu3 %vm511_vm3, %v6737_v48 }
 0x418   :  { %4058 = vmatmul.msk.bf16.vlgmr.msrb.gmra.mxu0 %vm511_vm3, %v6740_v62  ;;  %v5950_v15 = vadd.f32 %v2210_v31, %v2110_v7  ;;  %v6742_v7 = vld [vmem:[#allocation27_spill] sm:$0xff]  ;;  %v6747_v62 = vld [vmem:[#allocation72_spill] sm:$0xff] }
 0x419   :  { %4067 = vmatmul.msk.bf16.vlgmr.msrb.gmra.mxu1 %vm511_vm3, %v6741_v3  ;;  %v2291_v21 = vpop.f32.mrf.mxu2  ;;  %v2719_v48 = vpack.c.bf16 %v5955_v10, %v6742_v7 }
 0x41a   :  { %v2409_v6 = vpop.f32.mrf.mxu3  ;;  %v2331_v52 = vadd.f32 %v2291_v21, %v5748_v39  ;;  %v6743_v39 = vld [vmem:[#allocation69_spill] sm:$0xff] }
 0x41c   :  { %v2449_v16 = vadd.f32 %v2409_v6, %v2331_v52 }
 0x41d   :  { %v2530_v37 = vpop.f32.mrf.mxu0 }
 0x41e   :  { %v2648_v41 = vpop.f32.mrf.mxu1  ;;  %v2568_v47 = vadd.f32 %v2528_v9, %v2449_v16  ;;  %v6745_v9 = vpack.c.bf16 %v6743_v39, %v6744_v46  ;;  %v5979_v46 = vld [vmem:[#allocation3 + $0x72] sm:$0xff] }
 0x420   :  { %v5953_v29 = vadd.f32 %v2646_v12, %v2568_v47  ;;  %v6746_v12 = vld [vmem:[#allocation70_spill] sm:$0xff] }
 0x421   :  { %v2293_v4 = vpop.f32.mrf.mxu2  ;;  %v6748_v3 = vpack.c.bf16 %v6746_v12, %v6747_v62  ;;  %v4150_v12 = vld [vmem:[#allocation3 + $0x83] sm:$0xff] }
 0x422   :  { %v2411_v61 = vpop.f32.mrf.mxu3  ;;  %v2332_v58 = vadd.f32 %v2293_v4, %v5769_v24  ;;  %v6749_v24 = vld [vmem:[#allocation86_spill] sm:$0xff]  ;;  %v2838_v62 = vpack.c.bf16 %v4150_v12, %v5780_v51 }
 0x424   :  { %v2450_v14 = vadd.f32 %v2411_v61, %v2332_v58 }
 0x425   :  { %v2533_v33 = vpop.f32.mrf.mxu0 }
 0x426   :  { %v2651_v31 = vpop.f32.mrf.mxu1  ;;  %v2569_v17 = vadd.f32 %v2530_v37, %v2450_v14  ;;  %4041 = vmatmul.msk.bf16.gmra.mxu2 %vm511_vm3, %v2719_v48  ;;  %v5976_v48 = vld [vmem:[#allocation3 + $0x82] sm:$0xff] }
 0x427   :  { %4050 = vmatmul.msk.bf16.gmra.mxu3 %vm511_vm3, %v6745_v9 }
 0x428   :  { %4059 = vmatmul.msk.bf16.gmra.mxu0 %vm511_vm3, %v6748_v3  ;;  %v5971_v21 = vadd.f32 %v2648_v41, %v2569_v17 }
 0x429   :  { %4068 = vmatmul.msk.bf16.gmra.mxu1 %vm511_vm3, %v6749_v24  ;;  %v2296_v6 = vpop.f32.mrf.mxu2 }
 0x42a   :  { %v2414_v52 = vpop.f32.mrf.mxu3  ;;  %v2333_v16 = vadd.f32 %v2296_v6, %v5778_v25  ;;  %v2720_v25 = vpack.c.bf16 %v5976_v48, %v5979_v46 }
 0x42c   :  { %v2451_v37 = vadd.f32 %v2414_v52, %v2333_v16 }
 0x42d   :  { %v2535_v47 = vpop.f32.mrf.mxu0 }
 0x42e   :  { %v2653_v4 = vpop.f32.mrf.mxu1  ;;  %v2570_v61 = vadd.f32 %v2533_v33, %v2451_v37  ;;  %v3061_v33 = vld [vmem:[#allocation3 + $0x80] sm:$0xff] }
 0x42f   :  { %v3075_v3 = vpack.c.bf16 %v6718_v26, %v3061_v33  ;;  %v3064_v26 = vld [vmem:[#allocation3 + $0xb0] sm:$0xff] }
 0x430   :  { %v5974_v58 = vadd.f32 %v2651_v31, %v2570_v61  ;;  %v2956_v31 = vpack.c.bf16 %v6717_v57, %v5782_v8  ;;  %v6750_v33 = vld [vmem:[#allocation57_spill] sm:$0xff] }
 0x431   :  { %v2298_v14 = vpop.f32.mrf.mxu2 }
 0x432   :  { %v2416_v7 = vpop.f32.mrf.mxu3  ;;  %v2334_v39 = vadd.f32 %v2298_v14, %v5803_v54 }
 0x434   :  { %v2452_v41 = vadd.f32 %v2416_v7, %v2334_v39  ;;  %v5996_v7 = vld [vmem:[#allocation3 + $0xa2] sm:$0xff] }
 0x435   :  { %v2538_v17 = vpop.f32.mrf.mxu0  ;;  %v5998_v39 = vld [vmem:[#allocation3 + $0xa3] sm:$0xff] }
 0x436   :  { %v2656_v9 = vpop.f32.mrf.mxu1  ;;  %v2571_v24 = vadd.f32 %v2535_v47, %v2452_v41  ;;  %4042 = vmatmul.msk.bf16.gmra.mxu2 %vm511_vm3, %v2720_v25  ;;  %v6001_v41 = vld [vmem:[#allocation3 + $0xa4] sm:$0xff]  ;;  %v3076_v25 = vpack.c.bf16 %v3064_v26, %v5812_v27 }
 0x437   :  { %4051 = vmatmul.msk.bf16.gmra.mxu3 %vm511_vm3, %v2838_v62 }
 0x438   :  { %4060 = vmatmul.msk.bf16.gmra.mxu0 %vm511_vm3, %v2956_v31  ;;  %v5991_v54 = vadd.f32 %v2653_v4, %v2571_v24 }
 0x439   :  { %4069 = vmatmul.msk.bf16.gmra.mxu1 %vm511_vm3, %v3075_v3  ;;  %v2301_v6 = vpop.f32.mrf.mxu2  ;;  %v2957_v3 = vpack.c.bf16 %v6001_v41, %v5810_v40 }
 0x43a   :  { %v2419_v52 = vpop.f32.mrf.mxu3  ;;  %v2335_v51 = vadd.f32 %v2301_v6, %v5808_v2 }
 0x43c   :  { %v2453_v16 = vadd.f32 %v2419_v52, %v2335_v51 }
 0x43d   :  { %v2540_v37 = vpop.f32.mrf.mxu0 }
 0x43e   :  { %v2658_v8 = vpop.f32.mrf.mxu1  ;;  %v2572_v57 = vadd.f32 %v2538_v17, %v2453_v16  ;;  %v2721_v17 = vpack.c.bf16 %v5996_v7, %v6750_v33 }
 0x440   :  { %v5994_v47 = vadd.f32 %v2656_v9, %v2572_v57  ;;  %v4151_v9 = vld [vmem:[#allocation3 + $0x93] sm:$0xff] }
 0x441   :  { %v2303_v61 = vpop.f32.mrf.mxu2  ;;  %v2839_v31 = vpack.c.bf16 %v5998_v39, %v4151_v9  ;;  %v6752_v9 = vld [vmem:[#allocation52_spill] sm:$0xff] }
 0x442   :  { %v2421_v14 = vpop.f32.mrf.mxu3  ;;  %v2336_v4 = vadd.f32 %v2303_v61, %v5828_v56 }
 0x444   :  { %v2454_v2 = vadd.f32 %v2421_v14, %v2336_v4 }
 0x445   :  { %v2543_v12 = vpop.f32.mrf.mxu0 }
 0x446   :  { %v2661_v62 = vpop.f32.mrf.mxu1  ;;  %v2573_v24 = vadd.f32 %v2540_v37, %v2454_v2  ;;  %4043 = vmatmul.msk.bf16.gmra.mxu2 %vm511_vm3, %v2721_v17 }
 0x447   :  { %4052 = vmatmul.msk.bf16.gmra.mxu3 %vm511_vm3, %v2839_v31 }
 0x448   :  { %4061 = vmatmul.msk.bf16.gmra.mxu0 %vm511_vm3, %v2957_v3  ;;  %v6013_v27 = vadd.f32 %v2658_v8, %v2573_v24  ;;  %v6751_v8 = vld [vmem:[#allocation47_spill] sm:$0xff]  ;;  %v6755_v3 = vld [vmem:[#allocation53_spill] sm:$0xff] }
 0x449   :  { %4070 = vmatmul.msk.bf16.gmra.mxu1 %vm511_vm3, %v3076_v25  ;;  %v2306_v56 = vpop.f32.mrf.mxu2  ;;  %v6753_v31 = vpack.c.bf16 %v6751_v8, %v6752_v9 }
 0x44a   :  { %v2424_v6 = vpop.f32.mrf.mxu3  ;;  %v2337_v52 = vadd.f32 %v2306_v56, %v5831_v30  ;;  %v6754_v30 = vld [vmem:[#allocation48_spill] sm:$0xff] }
 0x44b   :  { %v6756_v24 = vpack.c.bf16 %v6754_v30, %v6755_v3 }
 0x44c   :  { %v2455_v51 = vadd.f32 %v2424_v6, %v2337_v52 }
 0x44d   :  { %v2545_v16 = vpop.f32.mrf.mxu0 }
 0x44e   :  { %v2663_v57 = vpop.f32.mrf.mxu1  ;;  %v2574_v26 = vadd.f32 %v2543_v12, %v2455_v51  ;;  %v6757_v12 = vld [vmem:[#allocation51_spill] sm:$0xff] }
 0x450   :  { %v6016_v61 = vadd.f32 %v2661_v62, %v2574_v26  ;;  %v6758_v62 = vld [vmem:[#allocation54_spill] sm:$0xff] }
 0x451   :  { %v2308_v37 = vpop.f32.mrf.mxu2  ;;  %v6759_v56 = vpack.c.bf16 %v6757_v12, %v6758_v62  ;;  %v6764_v12 = vld [vmem:[#allocation39_spill] sm:$0xff] }
 0x452   :  { %v2426_v14 = vpop.f32.mrf.mxu3  ;;  %v2338_v4 = vadd.f32 %v2308_v37, %v5845_v5 }
 0x454   :  { %v2456_v2 = vadd.f32 %v2426_v14, %v2338_v4 }
 0x455   :  { %v2548_v33 = vpop.f32.mrf.mxu0 }
 0x456   :  { %v2666_v17 = vpop.f32.mrf.mxu1  ;;  %v2575_v25 = vadd.f32 %v2545_v16, %v2456_v2  ;;  %4044 = vmatmul.msk.bf16.gmra.mxu2 %vm511_vm3, %v6753_v31 }
 0x457   :  { %4053 = vmatmul.msk.bf16.gmra.mxu3 %vm511_vm3, %v6756_v24 }
 0x458   :  { %4062 = vmatmul.msk.bf16.gmra.mxu0 %vm511_vm3, %v6759_v56  ;;  %v6033_v5 = vadd.f32 %v2663_v57, %v2575_v25  ;;  %v6760_v57 = vld [vmem:[#allocation38_spill] sm:$0xff]  ;;  %v6761_v25 = vld [vmem:[#allocation32_spill] sm:$0xff] }
 0x459   :  { %4071 = vmatmul.msk.bf16.gmra.mxu1 %vm511_vm3, %v5632_v34  ;;  %v2311_v6 = vpop.f32.mrf.mxu2  ;;  %v6762_v24 = vpack.c.bf16 %v6760_v57, %v6761_v25  ;;  %v3069_v25 = vld [vmem:[#allocation3 + $0x140] sm:$0xff] }
 0x45a   :  { %v2429_v52 = vpop.f32.mrf.mxu3  ;;  %v2339_v51 = vadd.f32 %v2311_v6, %v5848_v0  ;;  %v6763_v0 = vld [vmem:[#allocation40_spill] sm:$0xff] }
 0x45b   :  { %v6765_v62 = vpack.c.bf16 %v6763_v0, %v6764_v12  ;;  %v4152_v0 = vld [vmem:[#allocation3 + $0x142] sm:$0xff] }
 0x45c   :  { %v2457_v16 = vadd.f32 %v2429_v52, %v2339_v51 }
 0x45d   :  { %v2550_v26 = vpop.f32.mrf.mxu0 }
 0x45e   :  { %v2668_v37 = vpop.f32.mrf.mxu1  ;;  %v2576_v14 = vadd.f32 %v2548_v33, %v2457_v16  ;;  %v6766_v33 = vld [vmem:[#allocation41_spill] sm:$0xff] }
 0x460   :  { %v6036_v4 = vadd.f32 %v2666_v17, %v2576_v14  ;;  %v6767_v17 = vld [vmem:[#allocation35_spill] sm:$0xff] }
 0x461   :  { %v2313_v2 = vpop.f32.mrf.mxu2  ;;  %v6768_v56 = vpack.c.bf16 %v6766_v33, %v6767_v17 }
 0x462   :  { %v2431_v8 = vpop.f32.mrf.mxu3  ;;  %v2340_v9 = vadd.f32 %v2313_v2, %v5868_v38 }
 0x464   :  { %v2458_v31 = vadd.f32 %v2431_v8, %v2340_v9 }
 0x465   :  { %v2553_v30 = vpop.f32.mrf.mxu0 }
 0x466   :  { %v2671_v3 = vpop.f32.mrf.mxu1  ;;  %v2577_v34 = vadd.f32 %v2550_v26, %v2458_v31  ;;  %4045 = vmatmul.msk.bf16.gmra.mxu2 %vm511_vm3, %v6762_v24  ;;  %v6059_v24 = vld [vmem:[#allocation3 + $0x132] sm:$0xff] }
 0x467   :  { %4054 = vmatmul.msk.bf16.gmra.mxu3 %vm511_vm3, %v6765_v62  ;;  %v2724_v12 = vpack.c.bf16 %v4152_v0, %v6059_v24  ;;  %v4154_v0 = vld [vmem:[#allocation3 + $0x152] sm:$0xff] }
 0x468   :  { %4063 = vmatmul.msk.bf16.gmra.mxu0 %vm511_vm3, %v6768_v56  ;;  %v6053_v38 = vadd.f32 %v2668_v37, %v2577_v34 }
 0x469   :  { %4072 = vmatmul.msk.bf16.gmra.mxu1 %vm511_vm3, %v5658_v1  ;;  %v2316_v6 = vpop.f32.mrf.mxu2 }
 0x46a   :  { %v2434_v52 = vpop.f32.mrf.mxu3  ;;  %v2341_v51 = vadd.f32 %v2316_v6, %v5871_v44  ;;  %v4153_v44 = vld [vmem:[#allocation3 + $0x143] sm:$0xff] }
 0x46b   :  { %v2842_v62 = vpack.c.bf16 %v4153_v44, %v5873_v28 }
 0x46c   :  { %v2459_v16 = vadd.f32 %v2434_v52, %v2341_v51  ;;  %v3072_v51 = vld [vmem:[#allocation3 + $0x170] sm:$0xff] }
 0x46d   :  { %v2555_v26 = vpop.f32.mrf.mxu0 }
 0x46e   :  { %v2673_v14 = vpop.f32.mrf.mxu1  ;;  %v2578_v2 = vadd.f32 %v2553_v30, %v2459_v16  ;;  %v3079_v30 = vpack.c.bf16 %v5692_v59, %v3069_v25 }
 0x470   :  { %v6056_v8 = vadd.f32 %v2671_v3, %v2578_v2 }
 0x471   :  { %v2318_v9 = vpop.f32.mrf.mxu2 }
 0x472   :  { %v2436_v31 = vpop.f32.mrf.mxu3  ;;  %v2342_v57 = vadd.f32 %v2318_v9, %v5900_v36  ;;  %v6074_v9 = vld [vmem:[#allocation3 + $0x162] sm:$0xff] }
 0x474   :  { %v2460_v1 = vadd.f32 %v2436_v31, %v2342_v57  ;;  %v6079_v31 = vld [vmem:[#allocation3 + $0x164] sm:$0xff]  ;;  %v3080_v57 = vpack.c.bf16 %v3072_v51, %v5910_v13 }
 0x475   :  { %v2558_v37 = vpop.f32.mrf.mxu0  ;;  %v2961_v44 = vpack.c.bf16 %v6079_v31, %v5914_v63 }
 0x476   :  { %v2676_v34 = vpop.f32.mrf.mxu1  ;;  %v2579_v3 = vadd.f32 %v2555_v26, %v2460_v1  ;;  %4046 = vmatmul.msk.bf16.gmra.mxu2 %vm511_vm3, %v2724_v12 }
 0x477   :  { %4055 = vmatmul.msk.bf16.gmra.mxu3 %vm511_vm3, %v2842_v62 }
 0x478   :  { %4064 = vmatmul.msk.bf16.gmra.mxu0 %vm511_vm3, %v5696_v42  ;;  %v6069_v36 = vadd.f32 %v2673_v14, %v2579_v3  ;;  %v6076_v42 = vld [vmem:[#allocation3 + $0x163] sm:$0xff] }
 0x479   :  { %4073 = vmatmul.msk.bf16.gmra.mxu1 %vm511_vm3, %v3079_v30  ;;  %v2321_v33 = vpop.f32.mrf.mxu2 }
 0x47a   :  { %v2439_v17 = vpop.f32.mrf.mxu3  ;;  %v2343_v56 = vadd.f32 %v2321_v33, %v5907_v32 }
 0x47c   :  { %v2461_v6 = vadd.f32 %v2439_v17, %v2343_v56 }
 0x47d   :  { %v2560_v28 = vpop.f32.mrf.mxu0 }
 0x47e   :  { %v2678_v52 = vpop.f32.mrf.mxu1  ;;  %v2580_v59 = vadd.f32 %v2558_v37, %v2461_v6  ;;  %v2725_v37 = vpack.c.bf16 %v6074_v9, %v4154_v0 }
 0x480   :  { %v6072_v16 = vadd.f32 %v2676_v34, %v2580_v59  ;;  %v4155_v34 = vld [vmem:[#allocation3 + $0x153] sm:$0xff] }
 0x481   :  { %v2323_v26 = vpop.f32.mrf.mxu2  ;;  %v2843_v12 = vpack.c.bf16 %v6076_v42, %v4155_v34 }
 0x482   :  { %v2441_v2 = vpop.f32.mrf.mxu3  ;;  %v2344_v14 = vadd.f32 %v2323_v26, %v5932_v22  ;;  %v3176_v26 = vld [vmem:[#allocation3 + $0x51] sm:$0xff] }
 0x484   :  { %v2462_v32 = vadd.f32 %v2441_v2, %v2344_v14  ;;  %v3294_v2 = vld [vmem:[#allocation3 + $0x52] sm:$0xff] }
 0x485   :  { %v2563_v25 = vpop.f32.mrf.mxu0 }
 0x486   :  { %v2681_v1 = vpop.f32.mrf.mxu1  ;;  %v2581_v62 = vadd.f32 %v2560_v28, %v2462_v32  ;;  %4047 = vmatmul.msk.bf16.gmra.mxu2 %vm511_vm3, %v2725_v37  ;;  %v3175_v32 = vld [vmem:[#allocation3 + $0x41] sm:$0xff] }
 0x487   :  { %4056 = vmatmul.msk.bf16.gmra.mxu3 %vm511_vm3, %v2843_v12  ;;  %v3191_v34 = vpack.c.bf16 %v3176_v26, %v3175_v32 }
 0x488   :  { %4065 = vmatmul.msk.bf16.gmra.mxu0 %vm511_vm3, %v2961_v44  ;;  %v6090_v13 = vadd.f32 %v2678_v52, %v2581_v62 }
 0x489   :  { %4074 = vmatmul.msk.bf16.gmra.mxu1 %vm511_vm3, %v3080_v57  ;;  %v2326_v22 = vpop.f32.mrf.mxu2  ;;  %v3293_v57 = vld [vmem:[#allocation3 + $0x42] sm:$0xff] }
 0x48a   :  { %v2444_v30 = vpop.f32.mrf.mxu3  ;;  %v2345_v3 = vadd.f32 %v2326_v22, %v5935_v11  ;;  %v3309_v12 = vpack.c.bf16 %v3294_v2, %v3293_v57 }
 0x48c   :  { %v2463_v33 = vadd.f32 %v2444_v30, %v2345_v3 }
 0x48d   :  { %v2565_v17 = vpop.f32.mrf.mxu0 }
 0x48e   :  { %v2683_v56 = vpop.f32.mrf.mxu1  ;;  %v2582_v6 = vadd.f32 %v2563_v25, %v2463_v33 }
 0x490   :  { %v6093_v59 = vadd.f32 %v2681_v1, %v2582_v6 }
 0x491   :  { %v2328_v28 = vpop.f32.mrf.mxu2 }
 0x492   :  { %v2446_v51 = vpop.f32.mrf.mxu3  ;;  %v2346_v14 = vadd.f32 %v2328_v28, %v5950_v15  ;;  %v3177_v28 = vld [vmem:[#allocation3 + $0x61] sm:$0xff] }
 0x494   :  { %v2464_v52 = vadd.f32 %v2446_v51, %v2346_v14  ;;  %v3178_v51 = vld [vmem:[#allocation3 + $0x71] sm:$0xff]  ;;  %v3310_v14 = vpack.c.bf16 %v5979_v46, %v5955_v10 }
 0x495   :  { %v3000_v0 = vpop.f32.mrf.mxu0  ;;  %v3192_v2 = vpack.c.bf16 %v3178_v51, %v3177_v28  ;;  %v6769_v28 = vld [vmem:[#allocation42_spill] sm:$0xff] }
 0x496   :  { %v3119_v37 = vpop.f32.mrf.mxu1  ;;  %v2583_v11 = vadd.f32 %v2565_v17, %v2464_v52  ;;  %4076 = vmatmul.msk.bf16.vlgmr.msra.gmra.mxu2 %vm511_vm3, %v3191_v34  ;;  %v6770_v51 = vpack.c.bf16 %v6716_v23, %v6769_v28  ;;  %v3184_v28 = vld [vmem:[#allocation3 + $0x111] sm:$0xff] }
 0x497   :  { %4085 = vmatmul.msk.bf16.vlgmr.msra.gmra.mxu3 %vm511_vm3, %v3309_v12 }
 0x498   :  { %4094 = vmatmul.msk.bf16.vlgmr.msra.gmra.mxu0 %vm511_vm3, %v5751_v35  ;;  %v6102_v25 = vadd.f32 %v2683_v56, %v2583_v11 }
 0x499   :  { %4103 = vmatmul.msk.bf16.vlgmr.msra.gmra.mxu1 %vm511_vm3, %v5753_v19  ;;  %v2764_v15 = vpop.f32.mrf.mxu2 }
 0x49a   :  { %v2882_v1 = vpop.f32.mrf.mxu3  ;;  %v2804_v44 = vadd.f32 %v2764_v15, %v5953_v29  ;;  %v3180_v15 = vld [vmem:[#allocation3 + $0x91] sm:$0xff] }
 0x49c   :  { %v2922_v62 = vadd.f32 %v2882_v1, %v2804_v44  ;;  %v3298_v1 = vld [vmem:[#allocation3 + $0x92] sm:$0xff]  ;;  %v3179_v44 = vld [vmem:[#allocation3 + $0x81] sm:$0xff] }
 0x49d   :  { %v3002_v22 = vpop.f32.mrf.mxu0 }
 0x49e   :  { %v3121_v30 = vpop.f32.mrf.mxu1  ;;  %v3040_v3 = vadd.f32 %v3000_v0, %v2922_v62 }
 0x4a0   :  { %v6105_v33 = vadd.f32 %v3119_v37, %v3040_v3  ;;  %v3311_v3 = vpack.c.bf16 %v3298_v1, %v5976_v48 }
 0x4a1   :  { %v2766_v17 = vpop.f32.mrf.mxu2 }
 0x4a2   :  { %v2884_v6 = vpop.f32.mrf.mxu3  ;;  %v2805_v35 = vadd.f32 %v2766_v17, %v5971_v21 }
 0x4a4   :  { %v2923_v26 = vadd.f32 %v2884_v6, %v2805_v35 }
 0x4a5   :  { %v3005_v19 = vpop.f32.mrf.mxu0 }
 0x4a6   :  { %v3124_v56 = vpop.f32.mrf.mxu1  ;;  %v3041_v29 = vadd.f32 %v3002_v22, %v2923_v26  ;;  %4077 = vmatmul.msk.bf16.gmra.mxu2 %vm511_vm3, %v3192_v2 }
 0x4a7   :  { %4086 = vmatmul.msk.bf16.gmra.mxu3 %vm511_vm3, %v3310_v14  ;;  %v3182_v14 = vld [vmem:[#allocation3 + $0xb1] sm:$0xff] }
 0x4a8   :  { %4095 = vmatmul.msk.bf16.gmra.mxu0 %vm511_vm3, %v5786_v43  ;;  %v6116_v32 = vadd.f32 %v3121_v30, %v3041_v29  ;;  %v3193_v30 = vpack.c.bf16 %v3180_v15, %v3179_v44  ;;  %v3300_v29 = vld [vmem:[#allocation3 + $0xb2] sm:$0xff] }
 0x4a9   :  { %4104 = vmatmul.msk.bf16.gmra.mxu1 %vm511_vm3, %v5789_v60  ;;  %v2769_v21 = vpop.f32.mrf.mxu2 }
 0x4aa   :  { %v2887_v57 = vpop.f32.mrf.mxu3  ;;  %v2806_v52 = vadd.f32 %v2769_v21, %v5974_v58  ;;  %v3533_v58 = vld [vmem:[#allocation3 + $0x84] sm:$0xff]  ;;  %v3418_v21 = vld [vmem:[#allocation3 + $0xb3] sm:$0xff] }
 0x4ab   :  { %v3547_v17 = vpack.c.bf16 %v5810_v40, %v3533_v58  ;;  %v3183_v58 = vld [vmem:[#allocation3 + $0x101] sm:$0xff] }
 0x4ac   :  { %v2924_v0 = vadd.f32 %v2887_v57, %v2806_v52  ;;  %v3536_v57 = vld [vmem:[#allocation3 + $0xb4] sm:$0xff] }
 0x4ad   :  { %v3007_v37 = vpop.f32.mrf.mxu0 }
 0x4ae   :  { %v3126_v10 = vpop.f32.mrf.mxu1  ;;  %v3042_v46 = vadd.f32 %v3005_v19, %v2924_v0 }
 0x4b0   :  { %v6119_v34 = vadd.f32 %v3124_v56, %v3042_v46  ;;  %v3312_v46 = vpack.c.bf16 %v3300_v29, %v5996_v7 }
 0x4b1   :  { %v2771_v12 = vpop.f32.mrf.mxu2 }
 0x4b2   :  { %v2889_v11 = vpop.f32.mrf.mxu3  ;;  %v2807_v43 = vadd.f32 %v2771_v12, %v5991_v54  ;;  %v3548_v12 = vpack.c.bf16 %v3536_v57, %v6001_v41 }
 0x4b4   :  { %v2925_v60 = vadd.f32 %v2889_v11, %v2807_v43 }
 0x4b5   :  { %v3010_v62 = vpop.f32.mrf.mxu0 }
 0x4b6   :  { %v3129_v22 = vpop.f32.mrf.mxu1  ;;  %v3043_v6 = vadd.f32 %v3007_v37, %v2925_v60  ;;  %4078 = vmatmul.msk.bf16.gmra.mxu2 %vm511_vm3, %v3193_v30 }
 0x4b7   :  { %4087 = vmatmul.msk.bf16.gmra.mxu3 %vm511_vm3, %v3311_v3 }
 0x4b8   :  { %4096 = vmatmul.msk.bf16.gmra.mxu0 %vm511_vm3, %v6770_v51  ;;  %v6131_v54 = vadd.f32 %v3126_v10, %v3043_v6  ;;  %v3194_v10 = vpack.c.bf16 %v3182_v14, %v5814_v18  ;;  %v3302_v51 = vld [vmem:[#allocation3 + $0x112] sm:$0xff] }
 0x4b9   :  { %4105 = vmatmul.msk.bf16.gmra.mxu1 %vm511_vm3, %v3547_v17  ;;  %v2774_v35 = vpop.f32.mrf.mxu2  ;;  %v3301_v17 = vld [vmem:[#allocation3 + $0x102] sm:$0xff] }
 0x4ba   :  { %v2892_v26 = vpop.f32.mrf.mxu3  ;;  %v2808_v48 = vadd.f32 %v2774_v35, %v5994_v47  ;;  %v3430_v47 = vpack.c.bf16 %v3418_v21, %v5998_v39 }
 0x4bc   :  { %v2926_v19 = vadd.f32 %v2892_v26, %v2808_v48 }
 0x4bd   :  { %v3012_v40 = vpop.f32.mrf.mxu0 }
 0x4be   :  { %v3131_v56 = vpop.f32.mrf.mxu1  ;;  %v3044_v2 = vadd.f32 %v3010_v62, %v2926_v19  ;;  %v3195_v19 = vpack.c.bf16 %v3184_v28, %v3183_v58  ;;  %v3187_v28 = vld [vmem:[#allocation3 + $0x141] sm:$0xff] }
 0x4c0   :  { %v6134_v52 = vadd.f32 %v3129_v22, %v3044_v2 }
 0x4c1   :  { %v2776_v23 = vpop.f32.mrf.mxu2 }
 0x4c2   :  { %v2894_v0 = vpop.f32.mrf.mxu3  ;;  %v2809_v37 = vadd.f32 %v2776_v23, %v6013_v27 }
 0x4c4   :  { %v2927_v11 = vadd.f32 %v2894_v0, %v2809_v37 }
 0x4c5   :  { %v3015_v15 = vpop.f32.mrf.mxu0 }
 0x4c6   :  { %v3134_v1 = vpop.f32.mrf.mxu1  ;;  %v3045_v43 = vadd.f32 %v3012_v40, %v2927_v11  ;;  %4079 = vmatmul.msk.bf16.gmra.mxu2 %vm511_vm3, %v3194_v10  ;;  %v3313_v40 = vpack.c.bf16 %v3302_v51, %v3301_v17  ;;  %v3303_v11 = vld [vmem:[#allocation3 + $0x122] sm:$0xff] }
 0x4c7   :  { %4088 = vmatmul.msk.bf16.gmra.mxu3 %vm511_vm3, %v3312_v46 }
 0x4c8   :  { %4097 = vmatmul.msk.bf16.gmra.mxu0 %vm511_vm3, %v3430_v47  ;;  %v6145_v27 = vadd.f32 %v3131_v56, %v3045_v43  ;;  %v3185_v47 = vld [vmem:[#allocation3 + $0x121] sm:$0xff] }
 0x4c9   :  { %4106 = vmatmul.msk.bf16.gmra.mxu1 %vm511_vm3, %v3548_v12  ;;  %v2779_v18 = vpop.f32.mrf.mxu2  ;;  %v3186_v12 = vld [vmem:[#allocation3 + $0x131] sm:$0xff] }
 0x4ca   :  { %v2897_v7 = vpop.f32.mrf.mxu3  ;;  %v2810_v39 = vadd.f32 %v2779_v18, %v6016_v61  ;;  %v3538_v61 = vld [vmem:[#allocation3 + $0x114] sm:$0xff] }
 0x4cb   :  { %v3549_v56 = vpack.c.bf16 %v3538_v61, %v5853_v49 }
 0x4cc   :  { %v2928_v44 = vadd.f32 %v2897_v7, %v2810_v39  ;;  %v3196_v7 = vpack.c.bf16 %v3186_v12, %v3185_v47  ;;  %v3190_v47 = vld [vmem:[#allocation3 + $0x171] sm:$0xff] }
 0x4cd   :  { %v3017_v41 = vpop.f32.mrf.mxu0  ;;  %v3308_v12 = vld [vmem:[#allocation3 + $0x172] sm:$0xff] }
 0x4ce   :  { %v3136_v60 = vpop.f32.mrf.mxu1  ;;  %v3046_v62 = vadd.f32 %v3015_v15, %v2928_v44  ;;  %v3540_v15 = vld [vmem:[#allocation3 + $0x134] sm:$0xff] }
 0x4cf   :  { %v3550_v39 = vpack.c.bf16 %v3540_v15, %v5879_v53 }
 0x4d0   :  { %v6148_v22 = vadd.f32 %v3134_v1, %v3046_v62 }
 0x4d1   :  { %v2781_v30 = vpop.f32.mrf.mxu2 }
 0x4d2   :  { %v2899_v3 = vpop.f32.mrf.mxu3  ;;  %v2811_v6 = vadd.f32 %v2781_v30, %v6033_v5 }
 0x4d4   :  { %v2929_v35 = vadd.f32 %v2899_v3, %v2811_v6 }
 0x4d5   :  { %v3020_v26 = vpop.f32.mrf.mxu0 }
 0x4d6   :  { %v3139_v48 = vpop.f32.mrf.mxu1  ;;  %v3047_v2 = vadd.f32 %v3017_v41, %v2929_v35  ;;  %4080 = vmatmul.msk.bf16.gmra.mxu2 %vm511_vm3, %v3195_v19  ;;  %v3188_v35 = vld [vmem:[#allocation3 + $0x151] sm:$0xff] }
 0x4d7   :  { %4089 = vmatmul.msk.bf16.gmra.mxu3 %vm511_vm3, %v3313_v40  ;;  %v3197_v40 = vpack.c.bf16 %v3188_v35, %v3187_v28 }
 0x4d8   :  { %4098 = vmatmul.msk.bf16.gmra.mxu0 %vm511_vm3, %v5851_v55  ;;  %v6157_v5 = vadd.f32 %v3136_v60, %v3047_v2  ;;  %v6772_v2 = vld [vmem:[#allocation20_spill] sm:$0xff] }
 0x4d9   :  { %4107 = vmatmul.msk.bf16.gmra.mxu1 %vm511_vm3, %v3549_v56  ;;  %v2784_v14 = vpop.f32.mrf.mxu2  ;;  %v6771_v56 = vld [vmem:[#allocation101_spill] sm:$0xff] }
 0x4da   :  { %v2902_v29 = vpop.f32.mrf.mxu3  ;;  %v2812_v21 = vadd.f32 %v2784_v14, %v6036_v4  ;;  %v3314_v4 = vpack.c.bf16 %v6059_v24, %v3303_v11  ;;  %v6773_v14 = vpack.c.bf16 %v6771_v56, %v6772_v2  ;;  %v3426_v11 = vld [vmem:[#allocation3 + $0x173] sm:$0xff]  ;;  %v6213_v2 = vld [vmem:[%s6376_s4] ss:$0 sm:$0xff] }
 0x4dc   :  { %v2930_v57 = vadd.f32 %v2902_v29, %v2812_v21  ;;  %v6774_v29 = vld [vmem:[#allocation19_spill] sm:$0xff] }
 0x4dd   :  { %v3022_v23 = vpop.f32.mrf.mxu0  ;;  %v6775_v21 = vpack.c.bf16 %v6733_v20, %v6774_v29 }
 0x4de   :  { %v3141_v0 = vpop.f32.mrf.mxu1  ;;  %v3048_v49 = vadd.f32 %v3020_v26, %v2930_v57 }
 0x4e0   :  { %v6160_v37 = vadd.f32 %v3139_v48, %v3048_v49 }
 0x4e1   :  { %v2786_v10 = vpop.f32.mrf.mxu2 }
 0x4e2   :  { %v2904_v46 = vpop.f32.mrf.mxu3  ;;  %v2813_v55 = vadd.f32 %v2786_v10, %v6053_v38 }
 0x4e4   :  { %v2931_v1 = vadd.f32 %v2904_v46, %v2813_v55  ;;  %v3544_v55 = vld [vmem:[#allocation3 + $0x174] sm:$0xff] }
 0x4e5   :  { %v3025_v43 = vpop.f32.mrf.mxu0 }
 0x4e6   :  { %v3144_v18 = vpop.f32.mrf.mxu1  ;;  %v3049_v44 = vadd.f32 %v3022_v23, %v2931_v1  ;;  %4081 = vmatmul.msk.bf16.gmra.mxu2 %vm511_vm3, %v3196_v7  ;;  %v3316_v7 = vpack.c.bf16 %v3308_v12, %v6074_v9 }
 0x4e7   :  { %4090 = vmatmul.msk.bf16.gmra.mxu3 %vm511_vm3, %v3314_v4  ;;  %v3552_v4 = vpack.c.bf16 %v3544_v55, %v6079_v31 }
 0x4e8   :  { %4099 = vmatmul.msk.bf16.gmra.mxu0 %vm511_vm3, %v5877_v50  ;;  %v6170_v38 = vadd.f32 %v3141_v0, %v3049_v44  ;;  %v3541_v50 = vld [vmem:[#allocation3 + $0x144] sm:$0xff] }
 0x4e9   :  { %4108 = vmatmul.msk.bf16.gmra.mxu1 %vm511_vm3, %v3550_v39  ;;  %v2789_v41 = vpop.f32.mrf.mxu2  ;;  %v3551_v61 = vpack.c.bf16 %v5914_v63, %v3541_v50 }
 0x4ea   :  { %v2907_v60 = vpop.f32.mrf.mxu3  ;;  %v2814_v62 = vadd.f32 %v2789_v41, %v6056_v8 }
 0x4ec   :  { %v2932_v30 = vadd.f32 %v2907_v60, %v2814_v62 }
 0x4ed   :  { %v3027_v24 = vpop.f32.mrf.mxu0 }
 0x4ee   :  { %v3146_v3 = vpop.f32.mrf.mxu1  ;;  %v3050_v53 = vadd.f32 %v3025_v43, %v2932_v30 }
 0x4f0   :  { %v6173_v58 = vadd.f32 %v3144_v18, %v3050_v53  ;;  %v3198_v18 = vpack.c.bf16 %v3190_v47, %v5912_v45 }
 0x4f1   :  { %v2791_v17 = vpop.f32.mrf.mxu2 }
 0x4f2   :  { %v2909_v6 = vpop.f32.mrf.mxu3  ;;  %v2815_v51 = vadd.f32 %v2791_v17, %v6069_v36 }
 0x4f4   :  { %v2933_v26 = vadd.f32 %v2909_v6, %v2815_v51 }
 0x4f5   :  { %v3030_v48 = vpop.f32.mrf.mxu0 }
 0x4f6   :  { %v3149_v19 = vpop.f32.mrf.mxu1  ;;  %v3051_v8 = vadd.f32 %v3027_v24, %v2933_v26  ;;  %4082 = vmatmul.msk.bf16.gmra.mxu2 %vm511_vm3, %v3197_v40 }
 0x4f7   :  { %4091 = vmatmul.msk.bf16.gmra.mxu3 %vm511_vm3, %v6773_v14 }
 0x4f8   :  { %4100 = vmatmul.msk.bf16.gmra.mxu0 %vm511_vm3, %v6775_v21  ;;  %v6187_v36 = vadd.f32 %v3146_v3, %v3051_v8 }
 0x4f9   :  { %4109 = vmatmul.msk.bf16.gmra.mxu1 %vm511_vm3, %v3551_v61  ;;  %v2794_v57 = vpop.f32.mrf.mxu2 }
 0x4fa   :  { %v2912_v23 = vpop.f32.mrf.mxu3  ;;  %v2816_v63 = vadd.f32 %v2794_v57, %v6072_v16  ;;  %v3434_v16 = vpack.c.bf16 %v3426_v11, %v6076_v42 }
 0x4fc   :  { %v2934_v0 = vadd.f32 %v2912_v23, %v2816_v63 }
 0x4fd   :  { %v3032_v49 = vpop.f32.mrf.mxu0 }
 0x4fe   :  { %v3151_v10 = vpop.f32.mrf.mxu1  ;;  %v3052_v46 = vadd.f32 %v3030_v48, %v2934_v0 }
 0x500   :  { %v6190_v15 = vadd.f32 %v3149_v19, %v3052_v46 }
 0x501   :  { %v2796_v20 = vpop.f32.mrf.mxu2 }
 0x502   :  { %v2914_v1 = vpop.f32.mrf.mxu3  ;;  %v2817_v43 = vadd.f32 %v2796_v20, %v6090_v13 }
 0x504   :  { %v2935_v39 = vadd.f32 %v2914_v1, %v2817_v43 }
 0x505   :  { %v3035_v44 = vpop.f32.mrf.mxu0 }
 0x506   :  { %v3154_v41 = vpop.f32.mrf.mxu1  ;;  %v3053_v60 = vadd.f32 %v3032_v49, %v2935_v39  ;;  %4083 = vmatmul.msk.bf16.gmra.mxu2 %vm511_vm3, %v3198_v18 }
 0x507   :  { %4092 = vmatmul.msk.bf16.gmra.mxu3 %vm511_vm3, %v3316_v7 }
 0x508   :  { %4101 = vmatmul.msk.bf16.gmra.mxu0 %vm511_vm3, %v3434_v16  ;;  %v6201_v13 = vadd.f32 %v3151_v10, %v3053_v60 }
 0x509   :  { %4110 = vmatmul.msk.bf16.gmra.mxu1 %vm511_vm3, %v3552_v4  ;;  %v2799_v45 = vpop.f32.mrf.mxu2 }
 0x50a   :  { %v2917_v9 = vpop.f32.mrf.mxu3  ;;  %v2818_v42 = vadd.f32 %v2799_v45, %v6093_v59 }
 0x50c   :  { %v2936_v62 = vadd.f32 %v2917_v9, %v2818_v42 }
 0x50d   :  { %v3037_v31 = vpop.f32.mrf.mxu0 }
 0x50e   :  { %v3156_v30 = vpop.f32.mrf.mxu1  ;;  %v3054_v24 = vadd.f32 %v3035_v44, %v2936_v62 }
 0x510   :  { %v6204_v3 = vadd.f32 %v3154_v41, %v3054_v24 }
 0x511   :  { %v2801_v53 = vpop.f32.mrf.mxu2 }
 0x512   :  { %v2919_v17 = vpop.f32.mrf.mxu3  ;;  %v2819_v6 = vadd.f32 %v2801_v53, %v6102_v25 }
 0x514   :  { %v2937_v28 = vadd.f32 %v2919_v17, %v2819_v6 }
 0x515   :  { %v3473_v51 = vpop.f32.mrf.mxu0 }
 0x516   :  { %v3591_v50 = vpop.f32.mrf.mxu1  ;;  %v3055_v35 = vadd.f32 %v3037_v31, %v2937_v28 }
 0x518   :  { %v6207_v26 = vadd.f32 %v3156_v30, %v3055_v35 }
 0x519   :  { %v3237_v48 = vpop.f32.mrf.mxu2 }
 0x51a   :  { %v3355_v19 = vpop.f32.mrf.mxu3  ;;  %v3277_v59 = vadd.f32 %v3237_v48, %v6105_v33 }
 0x51c   :  { %v3395_v40 = vadd.f32 %v3355_v19, %v3277_v59 }
 0x51d   :  { %v3475_v61 = vpop.f32.mrf.mxu0 }
 0x51e   :  { %v3593_v8 = vpop.f32.mrf.mxu1  ;;  %v3513_v56 = vadd.f32 %v3473_v51, %v3395_v40 }
 0x520   :  { %v3631_v25 = vadd.f32 %v3591_v50, %v3513_v56 }
 0x521   :  { %v3239_v14 = vpop.f32.mrf.mxu2 }
 0x522   :  { %v3357_v29 = vpop.f32.mrf.mxu3  ;;  %v3278_v21 = vadd.f32 %v3239_v14, %v6116_v32  ;;  %v3651_v57 = vadd.f32 %v6213_v2, %v3631_v25 }
 0x524   :  { %v3396_v23 = vadd.f32 %v3357_v29, %v3278_v21  ;;  %v3667_v33 = vmax.f32 %v3651_v57, 0.0 }
 0x525   :  { %v3478_v63 = vpop.f32.mrf.mxu0 }
 0x526   :  { %v3596_v0 = vpop.f32.mrf.mxu1  ;;  %v3514_v49 = vadd.f32 %v3475_v61, %v3396_v23  ;;  %3699 = vrot.lane.b32.xlu0 %v3667_v33, %s4186_s21 }
 0x528   :  { %v3632_v10 = vadd.f32 %v3593_v8, %v3514_v49 }
 0x529   :  { %v3242_v46 = vpop.f32.mrf.mxu2 }
 0x52a   :  { %v3360_v47 = vpop.f32.mrf.mxu3  ;;  %v3279_v12 = vadd.f32 %v3242_v46, %v6119_v34  ;;  %v3652_v11 = vadd.f32 %v6213_v2, %v3632_v10 }
 0x52c   :  { %v3397_v55 = vadd.f32 %v3360_v47, %v3279_v12  ;;  %v3668_v32 = vmax.f32 %v3652_v11, 0.0 }
 0x52d   :  { %v3480_v20 = vpop.f32.mrf.mxu0 }
 0x52e   :  { %v3598_v1 = vpop.f32.mrf.mxu1  ;;  %v3515_v43 = vadd.f32 %v3478_v63, %v3397_v55  ;;  %3701 = vrot.lane.b32.xlu1 %v3668_v32, %s4186_s21 }
 0x530   :  { %v3633_v18 = vadd.f32 %v3596_v0, %v3515_v43 }
 0x531   :  { %v3244_v7 = vpop.f32.mrf.mxu2 }
 0x532   :  { %v3362_v16 = vpop.f32.mrf.mxu3  ;;  %v3280_v4 = vadd.f32 %v3244_v7, %v6131_v54  ;;  %v3653_v39 = vadd.f32 %v6213_v2, %v3633_v18 }
 0x534   :  { %v3398_v44 = vadd.f32 %v3362_v16, %v3280_v4  ;;  %v3669_v34 = vmax.f32 %v3653_v39, 0.0 }
 0x535   :  { %v3483_v41 = vpop.f32.mrf.mxu0 }
 0x536   :  { %v3601_v60 = vpop.f32.mrf.mxu1  ;;  %v3516_v45 = vadd.f32 %v3480_v20, %v3398_v44  ;;  %3703 = vrot.lane.b32.xlu2 %v3669_v34, %s4186_s21 }
 0x538   :  { %v3634_v9 = vadd.f32 %v3598_v1, %v3516_v45 }
 0x539   :  { %v3247_v42 = vpop.f32.mrf.mxu2 }
 0x53a   :  { %v3365_v62 = vpop.f32.mrf.mxu3  ;;  %v3281_v31 = vadd.f32 %v3247_v42, %v6134_v52  ;;  %v3654_v30 = vadd.f32 %v6213_v2, %v3634_v9 }
 0x53c   :  { %v3399_v24 = vadd.f32 %v3365_v62, %v3281_v31  ;;  %v3670_v54 = vmax.f32 %v3654_v30, 0.0 }
 0x53d   :  { %v3485_v53 = vpop.f32.mrf.mxu0 }
 0x53e   :  { %v3603_v17 = vpop.f32.mrf.mxu1  ;;  %v3517_v6 = vadd.f32 %v3483_v41, %v3399_v24  ;;  %3705 = vrot.lane.b32.xlu0 %v3670_v54, %s4186_s21 }
 0x540   :  { %v3635_v28 = vadd.f32 %v3601_v60, %v3517_v6 }
 0x541   :  { %v3249_v51 = vpop.f32.mrf.mxu2 }
 0x542   :  { %v3367_v50 = vpop.f32.mrf.mxu3  ;;  %v3282_v35 = vadd.f32 %v3249_v51, %v6145_v27  ;;  %v3655_v48 = vadd.f32 %v6213_v2, %v3635_v28 }
 0x544   :  { %v3400_v19 = vadd.f32 %v3367_v50, %v3282_v35  ;;  %v3671_v52 = vmax.f32 %v3655_v48, 0.0  ;;  %v6247_v35 = vpop.permute.xlu1 %3747 }
 0x545   :  { %v3488_v59 = vpop.f32.mrf.mxu0 }
 0x546   :  { %v3606_v40 = vpop.f32.mrf.mxu1  ;;  %v3518_v61 = vadd.f32 %v3485_v53, %v3400_v19  ;;  %3707 = vrot.lane.b32.xlu1 %v3671_v52, %s4186_s21  ;;  %v3752_v52 = vpop.permute.xlu0 %3751 }
 0x548   :  { %v3636_v8 = vadd.f32 %v3603_v17, %v3518_v61  ;;  %v6242_v17 = vpop.permute.xlu2 %3749 }
 0x549   :  { %v3252_v56 = vpop.f32.mrf.mxu2 }
 0x54a   :  { %v3370_v25 = vpop.f32.mrf.mxu3  ;;  %v3283_v14 = vadd.f32 %v3252_v56, %v6148_v22  ;;  %v3656_v29 = vadd.f32 %v6213_v2, %v3636_v8 }
 0x54c   :  { %v3401_v21 = vadd.f32 %v3370_v25, %v3283_v14  ;;  %v3672_v27 = vmax.f32 %v3656_v29, 0.0 }
 0x54d   :  { %v3490_v57 = vpop.f32.mrf.mxu0 }
 0x54e   :  { %v3608_v23 = vpop.f32.mrf.mxu1  ;;  %v3519_v63 = vadd.f32 %v3488_v59, %v3401_v21  ;;  %3709 = vrot.lane.b32.xlu2 %v3672_v27, %s4186_s21  ;;  %v6254_v27 = vpop.permute.xlu1 %3753 }
 0x550   :  { %v3637_v0 = vadd.f32 %v3606_v40, %v3519_v63 }
 0x551   :  { %v3254_v33 = vpop.f32.mrf.mxu2 }
 0x552   :  { %v3372_v49 = vpop.f32.mrf.mxu3  ;;  %v3284_v10 = vadd.f32 %v3254_v33, %v6157_v5  ;;  %v3657_v46 = vadd.f32 %v6213_v2, %v3637_v0  ;;  %v6258_v33 = vpop.permute.xlu0 %3757 }
 0x554   :  { %v3402_v47 = vadd.f32 %v3372_v49, %v3284_v10  ;;  %v3673_v22 = vmax.f32 %v3657_v46, 0.0 }
 0x555   :  { %v3493_v12 = vpop.f32.mrf.mxu0 }
 0x556   :  { %v3611_v11 = vpop.f32.mrf.mxu1  ;;  %v3520_v55 = vadd.f32 %v3490_v57, %v3402_v47  ;;  %3711 = vrot.lane.b32.xlu0 %v3673_v22, %s4186_s21 }
 0x558   :  { %v3638_v20 = vadd.f32 %v3608_v23, %v3520_v55 }
 0x559   :  { %v3257_v1 = vpop.f32.mrf.mxu2 }
 0x55a   :  { %v3375_v32 = vpop.f32.mrf.mxu3  ;;  %v3285_v43 = vadd.f32 %v3257_v1, %v6160_v37  ;;  %v3658_v18 = vadd.f32 %v6213_v2, %v3638_v20  ;;  %v6265_v1 = vpop.permute.xlu1 %3759 }
 0x55c   :  { %v3403_v7 = vadd.f32 %v3375_v32, %v3285_v43  ;;  %v3674_v5 = vmax.f32 %v3658_v18, 0.0 }
 0x55d   :  { %v3495_v16 = vpop.f32.mrf.mxu0 }
 0x55e   :  { %v3613_v4 = vpop.f32.mrf.mxu1  ;;  %v3521_v39 = vadd.f32 %v3493_v12, %v3403_v7  ;;  %3713 = vrot.lane.b32.xlu1 %v3674_v5, %s4186_s21  ;;  %v6267_v7 = vpop.permute.xlu0 %3763 }
 0x560   :  { %v3639_v44 = vadd.f32 %v3611_v11, %v3521_v39 }
 0x561   :  { %v3259_v41 = vpop.f32.mrf.mxu2 }
 0x562   :  { %v3377_v60 = vpop.f32.mrf.mxu3  ;;  %v3286_v34 = vadd.f32 %v3259_v41, %v6170_v38  ;;  %v3659_v45 = vadd.f32 %v6213_v2, %v3639_v44 }
 0x564   :  { %v3404_v9 = vadd.f32 %v3377_v60, %v3286_v34  ;;  %v3675_v62 = vmax.f32 %v3659_v45, 0.0 }
 0x565   :  { %v3498_v42 = vpop.f32.mrf.mxu0 }
 0x566   :  { %v3522_v37 = vadd.f32 %v3495_v16, %v3404_v9  ;;  %v3616_v31 = vpop.f32.mrf.mxu1  ;;  %3715 = vrot.lane.b32.xlu2 %v3675_v62, %s4186_s21 }
 0x568   :  { %v3640_v30 = vadd.f32 %v3613_v4, %v3522_v37  ;;  %v6277_v37 = vpop.permute.xlu0 %3769 }
 0x569   :  { %v3262_v24 = vpop.f32.mrf.mxu2 }
 0x56a   :  { %v3380_v53 = vpop.f32.mrf.mxu3  ;;  %v3287_v54 = vadd.f32 %v3262_v24, %v6173_v58  ;;  %v3660_v6 = vadd.f32 %v6213_v2, %v3640_v30  ;;  %v6251_v58 = vpop.permute.xlu2 %3755  ;;  %v6776_v24 = vld [vmem:[#allocation13_spill] sm:$0xff] }
 0x56c   :  { %v3405_v28 = vadd.f32 %v3380_v53, %v3287_v54  ;;  %v3676_v38 = vmax.f32 %v3660_v6, 0.0 }
 0x56d   :  { %v3500_v50 = vpop.f32.mrf.mxu0 }
 0x56e   :  { %v3523_v51 = vadd.f32 %v3498_v42, %v3405_v28  ;;  %3717 = vrot.lane.b32.xlu0 %v3676_v38, %s4186_s21  ;;  %v3618_v19 = vpop.f32.mrf.mxu1  ;;  %v6274_v42 = vpop.permute.xlu1 %3765 }
 0x570   :  { %v3641_v48 = vadd.f32 %v3616_v31, %v3523_v51 }
 0x571   :  { %v3264_v59 = vpop.f32.mrf.mxu2 }
 0x572   :  { %v3382_v40 = vpop.f32.mrf.mxu3  ;;  %v3288_v61 = vadd.f32 %v3264_v59, %v6187_v36  ;;  %v3661_v8 = vadd.f32 %v6213_v2, %v3641_v48  ;;  %v6260_v46 = vpop.permute.xlu2 %3761 }
 0x574   :  { %v3406_v56 = vadd.f32 %v3382_v40, %v3288_v61  ;;  %v3677_v25 = vmax.f32 %v3661_v8, 0.0  ;;  %v6777_v40 = vld [vmem:[#allocation91_spill] sm:$0xff] }
 0x575   :  { %v3503_v21 = vpop.f32.mrf.mxu0 }
 0x576   :  { %v3524_v14 = vadd.f32 %v3500_v50, %v3406_v56  ;;  %3719 = vrot.lane.b32.xlu1 %v3677_v25, %s4186_s21  ;;  %v3621_v36 = vpop.f32.mrf.mxu1  ;;  %v6288_v8 = vpop.permute.xlu1 %3771  ;;  %v6778_v56 = vld [vmem:[#allocation9_spill] sm:$0xff] }
 0x578   :  { %v3642_v29 = vadd.f32 %v3618_v19, %v3524_v14 }
 0x579   :  { %v3267_v57 = vpop.f32.mrf.mxu2 }
 0x57a   :  { %v3385_v23 = vpop.f32.mrf.mxu3  ;;  %v3289_v63 = vadd.f32 %v3267_v57, %v6190_v15  ;;  %v3662_v0 = vadd.f32 %v6213_v2, %v3642_v29  ;;  %v6270_v4 = vpop.permute.xlu2 %3767 }
 0x57c   :  { %v3407_v49 = vadd.f32 %v3385_v23, %v3289_v63  ;;  %v3678_v10 = vmax.f32 %v3662_v0, 0.0  ;;  %v6779_v23 = vld [vmem:[#allocation16_spill] sm:$0xff]  ;;  %v6780_v0 = vld [vmem:[#allocation11_spill] sm:$0xff] }
 0x57d   :  { %v3505_v15 = vpop.f32.mrf.mxu0 }
 0x57e   :  { %v3525_v47 = vadd.f32 %v3503_v21, %v3407_v49  ;;  %3721 = vrot.lane.b32.xlu2 %v3678_v10, %s4186_s21  ;;  %v3623_v18 = vpop.f32.mrf.mxu1 }
 0x580   :  { %v3643_v12 = vadd.f32 %v3621_v36, %v3525_v47  ;;  %v6782_v47 = vld [vmem:[#allocation18_spill] sm:$0xff] }
 0x581   :  { %v3269_v11 = vpop.f32.mrf.mxu2 }
 0x582   :  { %v3387_v22 = vpop.f32.mrf.mxu3  ;;  %v3290_v55 = vadd.f32 %v3269_v11, %v6201_v13  ;;  %v3663_v20 = vadd.f32 %v6213_v2, %v3643_v12 }
 0x584   :  { %v3408_v32 = vadd.f32 %v3387_v22, %v3290_v55  ;;  %v3679_v43 = vmax.f32 %v3663_v20, 0.0  ;;  %v6783_v20 = vld [vmem:[#allocation15_spill] sm:$0xff] }
 0x585   :  { %v3508_v60 = vpop.f32.mrf.mxu0 }
 0x586   :  { %v3526_v16 = vadd.f32 %v3505_v15, %v3408_v32  ;;  %3723 = vrot.lane.b32.xlu0 %v3679_v43, %s4186_s21  ;;  %v3626_v9 = vpop.f32.mrf.mxu1 }
 0x588   :  { %v3644_v5 = vadd.f32 %v3623_v18, %v3526_v16  ;;  %v6784_v18 = vld [vmem:[#allocation17_spill] sm:$0xff] }
 0x589   :  { %v3272_v39 = vpop.f32.mrf.mxu2 }
 0x58a   :  { %v3390_v44 = vpop.f32.mrf.mxu3  ;;  %v3291_v13 = vadd.f32 %v3272_v39, %v6204_v3  ;;  %v3664_v41 = vadd.f32 %v6213_v2, %v3644_v5 }
 0x58c   :  { %v3409_v34 = vadd.f32 %v3390_v44, %v3291_v13  ;;  %v3680_v45 = vmax.f32 %v3664_v41, 0.0  ;;  %v6785_v44 = vld [vmem:[#allocation7_spill] sm:$0xff] }
 0x58d   :  { %v3510_v19 = vpop.f32.mrf.mxu0 }
 0x58e   :  { %v3527_v62 = vadd.f32 %v3508_v60, %v3409_v34  ;;  %3725 = vrot.lane.b32.xlu1 %v3680_v45, %s4186_s21  ;;  %v3628_v61 = vpop.f32.mrf.mxu1  ;;  %v6786_v34 = vld [vmem:[#allocation90_spill] sm:$0xff] }
 0x590   :  { %v3645_v31 = vadd.f32 %v3626_v9, %v3527_v62  ;;  %v3704_v30 = vpop.permute.xlu2 %3703 }
 0x591   :  { %v3797_v3 = vsel %vm511_vm3, %v6776_v24, %v3704_v30  ;;  %v3274_v53 = vpop.f32.mrf.mxu2 }
 0x592   :  { %v3814_v54 = vsel %vm3811_vm5, %v3797_v3, %v3752_v52  ;;  %v3292_v6 = vadd.f32 %v3274_v53, %v6207_v26  ;;  %v3665_v28 = vadd.f32 %v6213_v2, %v3645_v31  ;;  %v3392_v51 = vpop.f32.mrf.mxu3  ;;  %v6787_v31 = vld [vmem:[#allocation92_spill] sm:$0xff] }
 0x593   :  { %v3831_v38 = vsel %vm3828_vm6, %v3814_v54, 0.0  ;;  %v6788_v53 = vld [vmem:[#allocation12_spill] sm:$0xff] }
 0x594   :  { %3847 = vst [vmem:[#allocation4 + $0x10] sm:$0xff] %v3831_v38  ;;  %v3410_v50 = vadd.f32 %v3392_v51, %v3292_v6  ;;  %v3681_v48 = vmax.f32 %v3665_v28, 0.0  ;;  %v6789_v38 = vld [vmem:[#allocation8_spill] sm:$0xff] }
 0x596   :  { %v3528_v59 = vadd.f32 %v3510_v19, %v3410_v50  ;;  %3777 = vrot.lane.b32.xlu1 %v6777_v40, %s4186_s21  ;;  %3727 = vrot.lane.b32.xlu2 %v3681_v48, %s4186_s21  ;;  %v6790_v19 = vld [vmem:[#allocation10_spill] sm:$0xff] }
 0x598   :  { %v3646_v52 = vadd.f32 %v3628_v61, %v3528_v59  ;;  %v3700_v26 = vpop.permute.xlu0 %3699 }
 0x599   :  { %v3795_v25 = vsel %vm511_vm3, %v6778_v56, %v3700_v26  ;;  %v6791_v56 = vld [vmem:[#allocation14_spill] sm:$0xff] }
 0x59a   :  { %v3812_v14 = vsel %vm3811_vm5, %v3795_v25, %v6247_v35  ;;  %v3666_v29 = vadd.f32 %v6213_v2, %v3646_v52  ;;  %v6781_v2 = vld [vmem:[#allocation88_spill] sm:$0xff] }
 0x59b   :  { %v3829_v21 = vsel %vm3828_vm6, %v3812_v14, 0.0 }
 0x59c   :  { %3845 = vst [vmem:[#allocation4] sm:$0xff] %v3829_v21  ;;  %v3682_v57 = vmax.f32 %v3666_v29, 0.0 }
 0x59e   :  { %3773 = vrot.lane.b32.xlu2 %v6779_v23, %s4186_s21  ;;  %3729 = vrot.lane.b32.xlu0 %v3682_v57, %s4186_s21 }
 0x5a0   :  { %v3702_v63 = vpop.permute.xlu1 %3701 }
 0x5a1   :  { %v3796_v36 = vsel %vm511_vm3, %v6780_v0, %v3702_v63 }
 0x5a2   :  { %v3813_v49 = vsel %vm3811_vm5, %v3796_v36, %v6242_v17 }
 0x5a3   :  { %v3830_v35 = vsel %vm3828_vm6, %v3813_v49, 0.0 }
 0x5a4   :  { %3846 = vst [vmem:[#allocation4 + $0x8] sm:$0xff] %v3830_v35 }
 0x5a6   :  { %3775 = vrot.lane.b32.xlu0 %v6781_v2, %s4186_s21 }
 0x5a8   :  { %v3710_v10 = vpop.permute.xlu2 %3709 }
 0x5a9   :  { %v3800_v12 = vsel %vm511_vm3, %v6782_v47, %v3710_v10 }
 0x5aa   :  { %v3817_v11 = vsel %vm3811_vm5, %v3800_v12, %v6258_v33 }
 0x5ab   :  { %v3834_v22 = vsel %vm3828_vm6, %v3817_v11, 0.0 }
 0x5ac   :  { %3850 = vst [vmem:[#allocation4 + $0x28] sm:$0xff] %v3834_v22 }
 0x5b0   :  { %v3706_v55 = vpop.permute.xlu0 %3705 }
 0x5b1   :  { %v3798_v17 = vsel %vm511_vm3, %v6783_v20, %v3706_v55 }
 0x5b2   :  { %v3815_v15 = vsel %vm3811_vm5, %v3798_v17, %v6254_v27 }
 0x5b3   :  { %v3832_v32 = vsel %vm3828_vm6, %v3815_v15, 0.0 }
 0x5b4   :  { %3848 = vst [vmem:[#allocation4 + $0x18] sm:$0xff] %v3832_v32 }
 0x5b8   :  { %v3708_v43 = vpop.permute.xlu1 %3707 }
 0x5b9   :  { %v3799_v16 = vsel %vm511_vm3, %v6784_v18, %v3708_v43 }
 0x5ba   :  { %v3816_v33 = vsel %vm3811_vm5, %v3799_v16, %v6251_v58 }
 0x5bb   :  { %v3833_v5 = vsel %vm3828_vm6, %v3816_v33, 0.0 }
 0x5bc   :  { %3849 = vst [vmem:[#allocation4 + $0x20] sm:$0xff] %v3833_v5 }
 0x5c0   :  { %v3716_v39 = vpop.permute.xlu2 %3715 }
 0x5c1   :  { %v3803_v13 = vsel %vm511_vm3, %v6785_v44, %v3716_v39 }
 0x5c2   :  { %v3820_v27 = vsel %vm3811_vm5, %v3803_v13, %v6267_v7 }
 0x5c3   :  { %v3837_v41 = vsel %vm3828_vm6, %v3820_v27, 0.0 }
 0x5c4   :  { %3853 = vst [vmem:[#allocation4 + $0x40] sm:$0xff] %v3837_v41 }
 0x5c8   :  { %v3712_v60 = vpop.permute.xlu0 %3711 }
 0x5c9   :  { %v3801_v45 = vsel %vm511_vm3, %v6786_v34, %v3712_v60 }
 0x5ca   :  { %v3818_v58 = vsel %vm3811_vm5, %v3801_v45, %v6265_v1 }
 0x5cb   :  { %v3835_v9 = vsel %vm3828_vm6, %v3818_v58, 0.0 }
 0x5cc   :  { %3851 = vst [vmem:[#allocation4 + $0x30] sm:$0xff] %v3835_v9 }
 0x5d0   :  { %v3714_v62 = vpop.permute.xlu1 %3713 }
 0x5d1   :  { %v3802_v30 = vsel %vm511_vm3, %v6787_v31, %v3714_v62 }
 0x5d2   :  { %v3819_v7 = vsel %vm3811_vm5, %v3802_v30, %v6260_v46 }
 0x5d3   :  { %v3836_v24 = vsel %vm3828_vm6, %v3819_v7, 0.0 }
 0x5d4   :  { %3852 = vst [vmem:[#allocation4 + $0x38] sm:$0xff] %v3836_v24 }
 0x5d8   :  { %v3722_v3 = vpop.permute.xlu2 %3721 }
 0x5d9   :  { %v3806_v54 = vsel %vm511_vm3, %v6788_v53, %v3722_v3 }
 0x5da   :  { %v3823_v1 = vsel %vm3811_vm5, %v3806_v54, %v6277_v37 }
 0x5db   :  { %v3840_v6 = vsel %vm3828_vm6, %v3823_v1, 0.0 }
 0x5dc   :  { %3856 = vst [vmem:[#allocation4 + $0x58] sm:$0xff] %v3840_v6 }
 0x5e0   :  { %v3718_v28 = vpop.permute.xlu0 %3717 }
 0x5e1   :  { %v3804_v51 = vsel %vm511_vm3, %v6789_v38, %v3718_v28 }
 0x5e2   :  { %v3821_v46 = vsel %vm3811_vm5, %v3804_v51, %v6274_v42 }
 0x5e3   :  { %v3838_v50 = vsel %vm3828_vm6, %v3821_v46, 0.0 }
 0x5e4   :  { %3854 = vst [vmem:[#allocation4 + $0x48] sm:$0xff] %v3838_v50 }
 0x5e8   :  { %v3720_v48 = vpop.permute.xlu1 %3719 }
 0x5e9   :  { %v3805_v59 = vsel %vm511_vm3, %v6790_v19, %v3720_v48 }
 0x5ea   :  { %v3822_v37 = vsel %vm3811_vm5, %v3805_v59, %v6270_v4 }
 0x5eb   :  { %v3839_v61 = vsel %vm3828_vm6, %v3822_v37, 0.0 }
 0x5ec   :  { %3855 = vst [vmem:[#allocation4 + $0x50] sm:$0xff] %v3839_v61 }
 0x5f0   :  { %v3728_v52 = vpop.permute.xlu2 %3727 }
 0x5f8   :  { %v3724_v26 = vpop.permute.xlu0 %3723  ;;  %v3774_v21 = vpop.permute.xlu2 %3773 }
 0x5f9   :  { %v3807_v25 = vsel %vm511_vm3, %v6791_v56, %v3724_v26 }
 0x5fa   :  { %v3824_v42 = vsel %vm3811_vm5, %v3807_v25, %v6288_v8 }
 0x5fb   :  { %v3841_v14 = vsel %vm3828_vm6, %v3824_v42, 0.0 }
 0x5fc   :  { %3857 = vst [vmem:[#allocation4 + $0x60] sm:$0xff] %v3841_v14 }
 0x600   :  { %v3726_v29 = vpop.permute.xlu1 %3725 }
 0x601   :  { %v3808_v57 = vsel %vm511_vm3, %v6779_v23, %v3726_v29  ;;  %v3809_v23 = vsel %vm511_vm3, %v6781_v2, %v3728_v52 }
 0x602   :  { %v3825_v4 = vsel %vm3811_vm5, %v3808_v57, %v3774_v21 }
 0x603   :  { %v3842_v63 = vsel %vm3828_vm6, %v3825_v4, 0.0 }
 0x604   :  { %3858 = vst [vmem:[#allocation4 + $0x68] sm:$0xff] %v3842_v63 }
 0x608   :  { %v3778_v36 = vpop.permute.xlu1 %3777 }
 0x610   :  { %v3730_v0 = vpop.permute.xlu0 %3729 }
 0x611   :  { %v3810_v49 = vsel %vm511_vm3, %v6777_v40, %v3730_v0 }
 0x612   :  { %v3827_v8 = vsel %vm3811_vm5, %v3810_v49, %v3778_v36 }
 0x613   :  { %v3844_v35 = vsel %vm3828_vm6, %v3827_v8, 0.0 }
 0x614   :  { %3860 = vst [vmem:[#allocation4 + $0x78] sm:$0xff] %v3844_v35 }
 0x618   :  { %v3776_v10 = vpop.permute.xlu0 %3775 }
 0x619   :  { %v3826_v47 = vsel %vm3811_vm5, %v3809_v23, %v3776_v10 }
 0x61a   :  { %v3843_v40 = vsel %vm3828_vm6, %v3826_v47, 0.0 }
 0x61b   :  { %3859 = vst [vmem:[#allocation4 + $0x70] sm:$0xff] %v3843_v40 }
 0x61c   :  { %3873 = dma.vmem_to_hbm [thread:$0]  %s3866_s0, 2048, %s3868_s2, [#allocation5], %s4188_s24, %s4188_s24, %s4186_s21  }
 0x61d   :  { %4180 = dma.done.wait [#allocation5], 2048  }
 0x61e   :  { %4181 = vsyncadd [#allocation5], 4294965248 }
 0x61f   :  { %3878 = vsyncpa [#allocation5], 1 }

</bundles_post_ra>
